<compile_context>
chip_gen: v6e
topology: v6e:2x2x1
jax: 0.10.0
libtpu: 0.0.40
codegen_flags: <defaults>
</compile_context>

<pallas_src>
import jax
import jax.numpy as jnp
from jax import lax
from jax.experimental import pallas as pl
from jax.experimental.pallas import tpu as pltpu


def _round_up(x, m):
    return ((x + m - 1) // m) * m


def _pick_tile(total, target):
    """Largest divisor of `total` that is <= `target`."""
    for t in range(min(target, total), 0, -1):
        if total % t == 0:
            return t
    return 1


def _make_conv_stats_kernel(H, W, Wp, Co):
    flat_len = H * Wp

    def kernel(x_ref, w_ref, b_ref, y_ref, s1_ref, s2_ref, acc_ref):
        # x_ref : (1, (H+3)*Wp, Ci) bf16  zero-padded input, rows/cols flattened
        #                                 so every 3x3 tap is one sublane-offset
        #                                 window (no per-tap reshape copies)
        # w_ref : (9, Ci, Co)       bf16  conv taps, index = kh*3 + kw
        # b_ref : (1, Co)           f32   conv bias
        # y_ref : (1, H, W, Co)     bf16  conv + bias output (pre-BN)
        # s1/s2 : (1, 1, Co)        f32   per-image sum / sum-of-squares
        # acc_ref: VMEM scratch (H*Wp, Co) f32
        acc_ref[...] = jnp.zeros_like(acc_ref)
        for dy in range(3):
            for dx in range(3):
                start = dy * Wp + dx                        # static offset
                lhs = x_ref[0, start:start + flat_len, :]   # (H*Wp, Ci) bf16
                acc_ref[...] += jnp.dot(lhs, w_ref[dy * 3 + dx],
                                        preferred_element_type=jnp.float32)
        # valid output columns are the first W of each Wp-wide flattened row
        # (Wp is 8-aligned, so this reshape is a pure re-tiling, no shuffle).
        conv = acc_ref[...].reshape(H, Wp, Co)[:, :W, :] + b_ref[...]  # f32
        y_ref[0] = conv.astype(y_ref.dtype)
        s1_ref[...] = jnp.sum(conv, axis=(0, 1), keepdims=True)
        s2_ref[...] = jnp.sum(conv * conv, axis=(0, 1), keepdims=True)

    return kernel


def _bn_relu_pool_kernel(y_ref, sc_ref, sh_ref, o_ref):
    # y_ref : (TR, 2, Wh, 2*Co) bf16  dim1 = row parity of the 2x2 pool window,
    #                                 minor dim packs (col parity, channel)
    # sc/sh : (1, 2*Co) f32           fused BN scale / shift (channel-tiled x2)
    # o_ref : (TR, Wh, Co) f32
    Co = o_ref.shape[-1]
    sc = sc_ref[...]
    sh = sh_ref[...]
    a = jnp.maximum(y_ref[:, 0, :, :].astype(jnp.float32) * sc + sh, 0.0)
    b = jnp.maximum(y_ref[:, 1, :, :].astype(jnp.float32) * sc + sh, 0.0)
    m = jnp.maximum(a, b)                                   # pool over rows
    o_ref[...] = jnp.maximum(m[:, :, :Co], m[:, :, Co:])    # pool over cols


@jax.jit
def conv_block_forward(x_nchw, w_oihw, b, gamma, beta):
    """Conv2d(3x3,'same') -> BatchNorm2d (batch stats) -> ReLU -> MaxPool2d(2).

    NCHW in / NCHW out, matching the PyTorch module."""
    N, Ci, H, W = x_nchw.shape
    Co = w_oihw.shape[0]
    assert w_oihw.shape == (Co, Ci, 3, 3)
    # TODO(synk): PyTorch MaxPool2d(2) floors odd H/W; only even sizes here.
    assert H % 2 == 0 and W % 2 == 0
    Hh, Wh = H // 2, W // 2
    Wp = _round_up(W + 2, 8)   # padded width (8-aligned -> cheap re-tiling)

    # ---- layout prep (wrapper glue) -----------------------------------------
    # TODO(synk): if the surrounding model runs NHWC, these transposes and the
    # pad could be folded into adjacent kernels instead of extra XLA ops.
    x = jnp.transpose(x_nchw, (0, 2, 3, 1))                           # NHWC
    x_pad = jnp.pad(x, ((0, 0), (1, 2), (1, Wp - W - 1), (0, 0)))     # halo+slack
    x_flat = x_pad.astype(jnp.bfloat16).reshape(N, (H + 3) * Wp, Ci)

    w9 = jnp.transpose(w_oihw, (2, 3, 1, 0)).astype(jnp.bfloat16).reshape(9, Ci, Co)
    b2 = b.reshape(1, Co).astype(jnp.float32)

    # ---- pass 1: conv + bias (bf16 MXU, f32 acc) + per-image BN partial sums
    y, s1, s2 = pl.pallas_call(
        _make_conv_stats_kernel(H, W, Wp, Co),
        out_shape=(jax.ShapeDtypeStruct((N, H, W, Co), jnp.bfloat16),
                   jax.ShapeDtypeStruct((N, 1, Co), jnp.float32),
                   jax.ShapeDtypeStruct((N, 1, Co), jnp.float32)),
        grid=(N,),
        in_specs=[pl.BlockSpec((1, (H + 3) * Wp, Ci), lambda n: (n, 0, 0)),
                  pl.BlockSpec((9, Ci, Co), lambda n: (0, 0, 0)),
                  pl.BlockSpec((1, Co), lambda n: (0, 0))],
        out_specs=(pl.BlockSpec((1, H, W, Co), lambda n: (n, 0, 0, 0)),
                   pl.BlockSpec((1, 1, Co), lambda n: (n, 0, 0)),
                   pl.BlockSpec((1, 1, Co), lambda n: (n, 0, 0))),
        scratch_shapes=[pltpu.VMEM((H * Wp, Co), jnp.float32)],
        compiler_params=pltpu.CompilerParams(
            dimension_semantics=("parallel",),
            vmem_limit_bytes=64 * 1024 * 1024),
    )(x_flat, w9, b2)

    # ---- BN finalize: tiny per-channel reduction, fused scale/shift (f32) ---
    cnt = N * H * W
    mean = jnp.sum(s1, axis=0).reshape(Co) / cnt
    var = jnp.maximum(jnp.sum(s2, axis=0).reshape(Co) / cnt - mean * mean, 0.0)
    scale = gamma.astype(jnp.float32) * lax.rsqrt(var + 1e-5)
    shift = beta.astype(jnp.float32) - mean * scale

    # ---- pass 2: fused normalize + ReLU + 2x2 max-pool (tiled, parallel) ----
    yp = y.reshape(N * Hh, 2, Wh, 2 * Co)          # metadata-only window repack
    sc2 = jnp.tile(scale.reshape(1, Co), (1, 2))   # match (col parity, channel)
    sh2 = jnp.tile(shift.reshape(1, Co), (1, 2))

    R = N * Hh
    TR = _pick_tile(R, max(1, min(64, R // 2)))
    o = pl.pallas_call(
        _bn_relu_pool_kernel,
        out_shape=jax.ShapeDtypeStruct((R, Wh, Co), jnp.float32),
        grid=(R // TR,),
        in_specs=[pl.BlockSpec((TR, 2, Wh, 2 * Co), lambda r: (r, 0, 0, 0)),
                  pl.BlockSpec((1, 2 * Co), lambda r: (0, 0)),
                  pl.BlockSpec((1, 2 * Co), lambda r: (0, 0))],
        out_specs=pl.BlockSpec((TR, Wh, Co), lambda r: (r, 0, 0)),
        compiler_params=pltpu.CompilerParams(
            dimension_semantics=("parallel",),
            vmem_limit_bytes=64 * 1024 * 1024),
    )(yp, sc2, sh2)

    o = o.reshape(N, Hh, Wh, Co)
    return jnp.transpose(o, (0, 3, 1, 2))                              # NCHW


def ref_forward(x_nchw, w_oihw, b, gamma, beta):
    """Pure-JAX reference mirroring the PyTorch forward (training-mode BN)."""
    y = lax.conv_general_dilated(
        x_nchw, w_oihw, window_strides=(1, 1), padding='SAME',
        dimension_numbers=('NCHW', 'OIHW', 'NCHW'),
        precision=lax.Precision.HIGHEST)
    y = y + b[None, :, None, None]
    mean = jnp.mean(y, axis=(0, 2, 3), keepdims=True)
    var = jnp.mean((y - mean) ** 2, axis=(0, 2, 3), keepdims=True)
    y = (y - mean) * lax.rsqrt(var + 1e-5) * gamma[None, :, None, None] \
        + beta[None, :, None, None]
    y = jnp.maximum(y, 0.0)
    N, C, H, W = y.shape
    return y.reshape(N, C, H // 2, 2, W // 2, 2).max(axis=(3, 5))


if __name__ == "__main__":
    key = jax.random.PRNGKey(0)
    k1, k2, k3, k4, k5 = jax.random.split(key, 5)

    N, fi, fo, H, W = 2, 4, 8, 16, 16
    x = jax.random.normal(k1, (N, fi, H, W), jnp.float32)
    w = 0.2 * jax.random.normal(k2, (fo, fi, 3, 3), jnp.float32)   # Conv2d weight (OIHW)
    b = 0.1 * jax.random.normal(k3, (fo,), jnp.float32)            # Conv2d bias
    gamma = 1.0 + 0.1 * jax.random.normal(k4, (fo,), jnp.float32)  # BN weight
    beta = 0.1 * jax.random.normal(k5, (fo,), jnp.float32)         # BN bias

    out = jax.block_until_ready(conv_block_forward(x, w, b, gamma, beta))
    assert out.shape == (N, fo, H // 2, W // 2), out.shape

    ref = ref_forward(x, w, b, gamma, beta)
    max_err = float(jnp.max(jnp.abs(out - ref)))
    # bf16 MXU operands + bf16 pre-BN intermediate -> relaxed (but still tight) tolerance.
    assert max_err < 3e-2, f"mismatch vs reference: {max_err}"

    print("KERNEL_OK")
</pallas_src>

<mosaic_0001>
module attributes {stable_mosaic.version = 11 : i64} {
  func.func @_bn_relu_pool_kernel(%arg0: i32, %arg1: memref<8x2x8x16xbf16, #tpu.memory_space<vmem>>, %arg2: memref<1x16xf32, #tpu.memory_space<vmem>>, %arg3: memref<1x16xf32, #tpu.memory_space<vmem>>, %arg4: memref<8x8x8xf32, #tpu.memory_space<vmem>>) attributes {dimension_semantics = [#tpu.dimension_semantics<parallel>], iteration_bounds = array<i64: 2>, scalar_prefetch = 0 : i64, scratch_operands = 0 : i64, tpu.core_type = #tpu.core_type<tc>, window_params = [{transform_indices = @transform_0, window_bounds = array<i64: 8, 2, 8, 16>}, {pipeline_mode = #tpu.pipeline_mode<synchronous>, transform_indices = @transform_1, window_bounds = array<i64: 1, 16>}, {pipeline_mode = #tpu.pipeline_mode<synchronous>, transform_indices = @transform_2, window_bounds = array<i64: 1, 16>}, {transform_indices = @transform_3, window_bounds = array<i64: 8, 8, 8>}]} {
    %c0 = arith.constant 0 : index
    %c0_0 = arith.constant 0 : index
    %0 = vector.load %arg2[%c0, %c0_0] : memref<1x16xf32, #tpu.memory_space<vmem>>, vector<1x16xf32>
    %c0_1 = arith.constant 0 : index
    %c0_2 = arith.constant 0 : index
    %1 = vector.load %arg3[%c0_1, %c0_2] : memref<1x16xf32, #tpu.memory_space<vmem>>, vector<1x16xf32>
    %c0_3 = arith.constant 0 : index
    %c0_4 = arith.constant 0 : index
    %c0_5 = arith.constant 0 : index
    %c0_6 = arith.constant 0 : index
    %2 = vector.load %arg1[%c0_3, %c0_4, %c0_5, %c0_6] : memref<8x2x8x16xbf16, #tpu.memory_space<vmem>>, vector<8x1x8x16xbf16>
    %3 = vector.shape_cast %2 : vector<8x1x8x16xbf16> to vector<8x8x16xbf16>
    %4 = arith.extf %3 : vector<8x8x16xbf16> to vector<8x8x16xf32>
    %5 = vector.shape_cast %0 : vector<1x16xf32> to vector<1x1x16xf32>
    %6 = vector.broadcast %5 : vector<1x1x16xf32> to vector<8x8x16xf32>
    %7 = arith.mulf %4, %6 : vector<8x8x16xf32>
    %8 = vector.shape_cast %1 : vector<1x16xf32> to vector<1x1x16xf32>
    %9 = vector.broadcast %8 : vector<1x1x16xf32> to vector<8x8x16xf32>
    %10 = arith.addf %7, %9 : vector<8x8x16xf32>
    %cst = arith.constant 0.000000e+00 : f32
    %11 = vector.broadcast %cst : f32 to vector<8x8x16xf32>
    %12 = arith.maximumf %10, %11 : vector<8x8x16xf32>
    %c0_7 = arith.constant 0 : index
    %c1 = arith.constant 1 : index
    %c0_8 = arith.constant 0 : index
    %c0_9 = arith.constant 0 : index
    %13 = vector.load %arg1[%c0_7, %c1, %c0_8, %c0_9] : memref<8x2x8x16xbf16, #tpu.memory_space<vmem>>, vector<8x1x8x16xbf16>
    %14 = vector.shape_cast %13 : vector<8x1x8x16xbf16> to vector<8x8x16xbf16>
    %15 = arith.extf %14 : vector<8x8x16xbf16> to vector<8x8x16xf32>
    %16 = vector.shape_cast %0 : vector<1x16xf32> to vector<1x1x16xf32>
    %17 = vector.broadcast %16 : vector<1x1x16xf32> to vector<8x8x16xf32>
    %18 = arith.mulf %15, %17 : vector<8x8x16xf32>
    %19 = vector.shape_cast %1 : vector<1x16xf32> to vector<1x1x16xf32>
    %20 = vector.broadcast %19 : vector<1x1x16xf32> to vector<8x8x16xf32>
    %21 = arith.addf %18, %20 : vector<8x8x16xf32>
    %cst_10 = arith.constant 0.000000e+00 : f32
    %22 = vector.broadcast %cst_10 : f32 to vector<8x8x16xf32>
    %23 = arith.maximumf %21, %22 : vector<8x8x16xf32>
    %24 = arith.maximumf %12, %23 : vector<8x8x16xf32>
    %25 = vector.extract_strided_slice %24 {offsets = [0, 0, 0], sizes = [8, 8, 8], strides = [1, 1, 1]} : vector<8x8x16xf32> to vector<8x8x8xf32>
    %26 = vector.extract_strided_slice %24 {offsets = [0, 0, 8], sizes = [8, 8, 8], strides = [1, 1, 1]} : vector<8x8x16xf32> to vector<8x8x8xf32>
    %27 = arith.maximumf %25, %26 : vector<8x8x8xf32>
    %c0_11 = arith.constant 0 : index
    %c0_12 = arith.constant 0 : index
    %c0_13 = arith.constant 0 : index
    %28 = vector.load %arg4[%c0_11, %c0_12, %c0_13] : memref<8x8x8xf32, #tpu.memory_space<vmem>>, vector<8x8x8xf32>
    tpu.vector_store %arg4[%c0_11, %c0_12, %c0_13], %27 {strides = array<i32>} : memref<8x8x8xf32, #tpu.memory_space<vmem>>, vector<8x8x8xf32>,
    return
  }
  func.func @transform_0(%arg0: i32) -> (i32, i32, i32, i32) {
    %c0_i32 = arith.constant 0 : i32
    %c0_i32_0 = arith.constant 0 : i32
    %c0_i32_1 = arith.constant 0 : i32
    %c0_i32_2 = arith.constant 0 : i32
    return %arg0, %c0_i32, %c0_i32_0, %c0_i32_1 : i32, i32, i32, i32
  }
  func.func @transform_1(%arg0: i32) -> (i32, i32) {
    %c0_i32 = arith.constant 0 : i32
    %c0_i32_0 = arith.constant 0 : i32
    %c0_i32_1 = arith.constant 0 : i32
    return %c0_i32, %c0_i32_0 : i32, i32
  }
  func.func @transform_2(%arg0: i32) -> (i32, i32) {
    %c0_i32 = arith.constant 0 : i32
    %c0_i32_0 = arith.constant 0 : i32
    %c0_i32_1 = arith.constant 0 : i32
    return %c0_i32, %c0_i32_0 : i32, i32
  }
  func.func @transform_3(%arg0: i32) -> (i32, i32, i32) {
    %c0_i32 = arith.constant 0 : i32
    %c0_i32_0 = arith.constant 0 : i32
    %c0_i32_1 = arith.constant 0 : i32
    return %arg0, %c0_i32, %c0_i32_0 : i32, i32, i32
  }
}

module attributes {stable_mosaic.version = 11 : i64} {
  func.func @kernel(%arg0: i32, %arg1: memref<1x456x4xbf16, #tpu.memory_space<vmem>>, %arg2: memref<9x4x8xbf16, #tpu.memory_space<vmem>>, %arg3: memref<1x8xf32, #tpu.memory_space<vmem>>, %arg4: memref<1x16x16x8xbf16, #tpu.memory_space<vmem>>, %arg5: memref<1x1x8xf32, #tpu.memory_space<vmem>>, %arg6: memref<1x1x8xf32, #tpu.memory_space<vmem>>, %arg7: memref<384x8xf32, #tpu.memory_space<vmem>>) attributes {dimension_semantics = [#tpu.dimension_semantics<parallel>], iteration_bounds = array<i64: 2>, scalar_prefetch = 0 : i64, scratch_operands = 1 : i64, tpu.core_type = #tpu.core_type<tc>, window_params = [{transform_indices = @transform_0, window_bounds = array<i64: 1, 456, 4>}, {pipeline_mode = #tpu.pipeline_mode<synchronous>, transform_indices = @transform_1, window_bounds = array<i64: 9, 4, 8>}, {pipeline_mode = #tpu.pipeline_mode<synchronous>, transform_indices = @transform_2, window_bounds = array<i64: 1, 8>}, {transform_indices = @transform_3, window_bounds = array<i64: 1, 16, 16, 8>}, {transform_indices = @transform_4, window_bounds = array<i64: 1, 1, 8>}, {transform_indices = @transform_5, window_bounds = array<i64: 1, 1, 8>}]} {
    %cst = arith.constant 0.000000e+00 : f32
    %0 = vector.broadcast %cst : f32 to vector<384x8xf32>
    %c0 = arith.constant 0 : index
    %c0_0 = arith.constant 0 : index
    %1 = vector.load %arg7[%c0, %c0_0] : memref<384x8xf32, #tpu.memory_space<vmem>>, vector<384x8xf32>
    tpu.vector_store %arg7[%c0, %c0_0], %0 {strides = array<i32>} : memref<384x8xf32, #tpu.memory_space<vmem>>, vector<384x8xf32>,
    %c0_1 = arith.constant 0 : index
    %c0_2 = arith.constant 0 : index
    %c0_3 = arith.constant 0 : index
    %2 = vector.load %arg1[%c0_1, %c0_2, %c0_3] : memref<1x456x4xbf16, #tpu.memory_space<vmem>>, vector<1x384x4xbf16>
    %3 = vector.shape_cast %2 : vector<1x384x4xbf16> to vector<384x4xbf16>
    %c0_4 = arith.constant 0 : index
    %c0_5 = arith.constant 0 : index
    %4 = vector.load %arg7[%c0_4, %c0_5] : memref<384x8xf32, #tpu.memory_space<vmem>>, vector<384x8xf32>
    %c0_6 = arith.constant 0 : index
    %c0_7 = arith.constant 0 : index
    %c0_8 = arith.constant 0 : index
    %5 = vector.load %arg2[%c0_6, %c0_7, %c0_8] : memref<9x4x8xbf16, #tpu.memory_space<vmem>>, vector<1x4x8xbf16>
    %6 = vector.shape_cast %5 : vector<1x4x8xbf16> to vector<4x8xbf16>
    %cst_9 = arith.constant dense<0.000000e+00> : vector<384x8xf32>
    %7 = tpu.matmul %3, %6, %cst_9 {dimension_numbers = #tpu.dot_dimension_numbers<[1], [0], [0], [1], [0, 0, 1, 1], [], []>} : vector<384x4xbf16>, vector<4x8xbf16>, vector<384x8xf32> -> vector<384x8xf32>
    %8 = arith.addf %4, %7 : vector<384x8xf32>
    %c0_10 = arith.constant 0 : index
    %c0_11 = arith.constant 0 : index
    %9 = vector.load %arg7[%c0_10, %c0_11] : memref<384x8xf32, #tpu.memory_space<vmem>>, vector<384x8xf32>
    tpu.vector_store %arg7[%c0_10, %c0_11], %8 {strides = array<i32>} : memref<384x8xf32, #tpu.memory_space<vmem>>, vector<384x8xf32>,
    %c0_12 = arith.constant 0 : index
    %c1 = arith.constant 1 : index
    %c0_13 = arith.constant 0 : index
    %10 = vector.load %arg1[%c0_12, %c1, %c0_13] : memref<1x456x4xbf16, #tpu.memory_space<vmem>>, vector<1x384x4xbf16>
    %11 = vector.shape_cast %10 : vector<1x384x4xbf16> to vector<384x4xbf16>
    %c0_14 = arith.constant 0 : index
    %c0_15 = arith.constant 0 : index
    %12 = vector.load %arg7[%c0_14, %c0_15] : memref<384x8xf32, #tpu.memory_space<vmem>>, vector<384x8xf32>
    %c1_16 = arith.constant 1 : index
    %c0_17 = arith.constant 0 : index
    %c0_18 = arith.constant 0 : index
    %13 = vector.load %arg2[%c1_16, %c0_17, %c0_18] : memref<9x4x8xbf16, #tpu.memory_space<vmem>>, vector<1x4x8xbf16>
    %14 = vector.shape_cast %13 : vector<1x4x8xbf16> to vector<4x8xbf16>
    %cst_19 = arith.constant dense<0.000000e+00> : vector<384x8xf32>
    %15 = tpu.matmul %11, %14, %cst_19 {dimension_numbers = #tpu.dot_dimension_numbers<[1], [0], [0], [1], [0, 0, 1, 1], [], []>} : vector<384x4xbf16>, vector<4x8xbf16>, vector<384x8xf32> -> vector<384x8xf32>
    %16 = arith.addf %12, %15 : vector<384x8xf32>
    %c0_20 = arith.constant 0 : index
    %c0_21 = arith.constant 0 : index
    %17 = vector.load %arg7[%c0_20, %c0_21] : memref<384x8xf32, #tpu.memory_space<vmem>>, vector<384x8xf32>
    tpu.vector_store %arg7[%c0_20, %c0_21], %16 {strides = array<i32>} : memref<384x8xf32, #tpu.memory_space<vmem>>, vector<384x8xf32>,
    %c0_22 = arith.constant 0 : index
    %c2 = arith.constant 2 : index
    %c0_23 = arith.constant 0 : index
    %18 = vector.load %arg1[%c0_22, %c2, %c0_23] : memref<1x456x4xbf16, #tpu.memory_space<vmem>>, vector<1x384x4xbf16>
    %19 = vector.shape_cast %18 : vector<1x384x4xbf16> to vector<384x4xbf16>
    %c0_24 = arith.constant 0 : index
    %c0_25 = arith.constant 0 : index
    %20 = vector.load %arg7[%c0_24, %c0_25] : memref<384x8xf32, #tpu.memory_space<vmem>>, vector<384x8xf32>
    %c2_26 = arith.constant 2 : index
    %c0_27 = arith.constant 0 : index
    %c0_28 = arith.constant 0 : index
    %21 = vector.load %arg2[%c2_26, %c0_27, %c0_28] : memref<9x4x8xbf16, #tpu.memory_space<vmem>>, vector<1x4x8xbf16>
    %22 = vector.shape_cast %21 : vector<1x4x8xbf16> to vector<4x8xbf16>
    %cst_29 = arith.constant dense<0.000000e+00> : vector<384x8xf32>
    %23 = tpu.matmul %19, %22, %cst_29 {dimension_numbers = #tpu.dot_dimension_numbers<[1], [0], [0], [1], [0, 0, 1, 1], [], []>} : vector<384x4xbf16>, vector<4x8xbf16>, vector<384x8xf32> -> vector<384x8xf32>
    %24 = arith.addf %20, %23 : vector<384x8xf32>
    %c0_30 = arith.constant 0 : index
    %c0_31 = arith.constant 0 : index
    %25 = vector.load %arg7[%c0_30, %c0_31] : memref<384x8xf32, #tpu.memory_space<vmem>>, vector<384x8xf32>
    tpu.vector_store %arg7[%c0_30, %c0_31], %24 {strides = array<i32>} : memref<384x8xf32, #tpu.memory_space<vmem>>, vector<384x8xf32>,
    %c0_32 = arith.constant 0 : index
    %c24 = arith.constant 24 : index
    %c0_33 = arith.constant 0 : index
    %26 = vector.load %arg1[%c0_32, %c24, %c0_33] : memref<1x456x4xbf16, #tpu.memory_space<vmem>>, vector<1x384x4xbf16>
    %27 = vector.shape_cast %26 : vector<1x384x4xbf16> to vector<384x4xbf16>
    %c0_34 = arith.constant 0 : index
    %c0_35 = arith.constant 0 : index
    %28 = vector.load %arg7[%c0_34, %c0_35] : memref<384x8xf32, #tpu.memory_space<vmem>>, vector<384x8xf32>
    %c3 = arith.constant 3 : index
    %c0_36 = arith.constant 0 : index
    %c0_37 = arith.constant 0 : index
    %29 = vector.load %arg2[%c3, %c0_36, %c0_37] : memref<9x4x8xbf16, #tpu.memory_space<vmem>>, vector<1x4x8xbf16>
    %30 = vector.shape_cast %29 : vector<1x4x8xbf16> to vector<4x8xbf16>
    %cst_38 = arith.constant dense<0.000000e+00> : vector<384x8xf32>
    %31 = tpu.matmul %27, %30, %cst_38 {dimension_numbers = #tpu.dot_dimension_numbers<[1], [0], [0], [1], [0, 0, 1, 1], [], []>} : vector<384x4xbf16>, vector<4x8xbf16>, vector<384x8xf32> -> vector<384x8xf32>
    %32 = arith.addf %28, %31 : vector<384x8xf32>
    %c0_39 = arith.constant 0 : index
    %c0_40 = arith.constant 0 : index
    %33 = vector.load %arg7[%c0_39, %c0_40] : memref<384x8xf32, #tpu.memory_space<vmem>>, vector<384x8xf32>
    tpu.vector_store %arg7[%c0_39, %c0_40], %32 {strides = array<i32>} : memref<384x8xf32, #tpu.memory_space<vmem>>, vector<384x8xf32>,
    %c0_41 = arith.constant 0 : index
    %c25 = arith.constant 25 : index
    %c0_42 = arith.constant 0 : index
    %34 = vector.load %arg1[%c0_41, %c25, %c0_42] : memref<1x456x4xbf16, #tpu.memory_space<vmem>>, vector<1x384x4xbf16>
    %35 = vector.shape_cast %34 : vector<1x384x4xbf16> to vector<384x4xbf16>
    %c0_43 = arith.constant 0 : index
    %c0_44 = arith.constant 0 : index
    %36 = vector.load %arg7[%c0_43, %c0_44] : memref<384x8xf32, #tpu.memory_space<vmem>>, vector<384x8xf32>
    %c4 = arith.constant 4 : index
    %c0_45 = arith.constant 0 : index
    %c0_46 = arith.constant 0 : index
    %37 = vector.load %arg2[%c4, %c0_45, %c0_46] : memref<9x4x8xbf16, #tpu.memory_space<vmem>>, vector<1x4x8xbf16>
    %38 = vector.shape_cast %37 : vector<1x4x8xbf16> to vector<4x8xbf16>
    %cst_47 = arith.constant dense<0.000000e+00> : vector<384x8xf32>
    %39 = tpu.matmul %35, %38, %cst_47 {dimension_numbers = #tpu.dot_dimension_numbers<[1], [0], [0], [1], [0, 0, 1, 1], [], []>} : vector<384x4xbf16>, vector<4x8xbf16>, vector<384x8xf32> -> vector<384x8xf32>
    %40 = arith.addf %36, %39 : vector<384x8xf32>
    %c0_48 = arith.constant 0 : index
    %c0_49 = arith.constant 0 : index
    %41 = vector.load %arg7[%c0_48, %c0_49] : memref<384x8xf32, #tpu.memory_space<vmem>>, vector<384x8xf32>
    tpu.vector_store %arg7[%c0_48, %c0_49], %40 {strides = array<i32>} : memref<384x8xf32, #tpu.memory_space<vmem>>, vector<384x8xf32>,
    %c0_50 = arith.constant 0 : index
    %c26 = arith.constant 26 : index
    %c0_51 = arith.constant 0 : index
    %42 = vector.load %arg1[%c0_50, %c26, %c0_51] : memref<1x456x4xbf16, #tpu.memory_space<vmem>>, vector<1x384x4xbf16>
    %43 = vector.shape_cast %42 : vector<1x384x4xbf16> to vector<384x4xbf16>
    %c0_52 = arith.constant 0 : index
    %c0_53 = arith.constant 0 : index
    %44 = vector.load %arg7[%c0_52, %c0_53] : memref<384x8xf32, #tpu.memory_space<vmem>>, vector<384x8xf32>
    %c5 = arith.constant 5 : index
    %c0_54 = arith.constant 0 : index
    %c0_55 = arith.constant 0 : index
    %45 = vector.load %arg2[%c5, %c0_54, %c0_55] : memref<9x4x8xbf16, #tpu.memory_space<vmem>>, vector<1x4x8xbf16>
    %46 = vector.shape_cast %45 : vector<1x4x8xbf16> to vector<4x8xbf16>
    %cst_56 = arith.constant dense<0.000000e+00> : vector<384x8xf32>
    %47 = tpu.matmul %43, %46, %cst_56 {dimension_numbers = #tpu.dot_dimension_numbers<[1], [0], [0], [1], [0, 0, 1, 1], [], []>} : vector<384x4xbf16>, vector<4x8xbf16>, vector<384x8xf32> -> vector<384x8xf32>
    %48 = arith.addf %44, %47 : vector<384x8xf32>
    %c0_57 = arith.constant 0 : index
    %c0_58 = arith.constant 0 : index
    %49 = vector.load %arg7[%c0_57, %c0_58] : memref<384x8xf32, #tpu.memory_space<vmem>>, vector<384x8xf32>
    tpu.vector_store %arg7[%c0_57, %c0_58], %48 {strides = array<i32>} : memref<384x8xf32, #tpu.memory_space<vmem>>, vector<384x8xf32>,
    %c0_59 = arith.constant 0 : index
    %c48 = arith.constant 48 : index
    %c0_60 = arith.constant 0 : index
    %50 = vector.load %arg1[%c0_59, %c48, %c0_60] : memref<1x456x4xbf16, #tpu.memory_space<vmem>>, vector<1x384x4xbf16>
    %51 = vector.shape_cast %50 : vector<1x384x4xbf16> to vector<384x4xbf16>
    %c0_61 = arith.constant 0 : index
    %c0_62 = arith.constant 0 : index
    %52 = vector.load %arg7[%c0_61, %c0_62] : memref<384x8xf32, #tpu.memory_space<vmem>>, vector<384x8xf32>
    %c6 = arith.constant 6 : index
    %c0_63 = arith.constant 0 : index
    %c0_64 = arith.constant 0 : index
    %53 = vector.load %arg2[%c6, %c0_63, %c0_64] : memref<9x4x8xbf16, #tpu.memory_space<vmem>>, vector<1x4x8xbf16>
    %54 = vector.shape_cast %53 : vector<1x4x8xbf16> to vector<4x8xbf16>
    %cst_65 = arith.constant dense<0.000000e+00> : vector<384x8xf32>
    %55 = tpu.matmul %51, %54, %cst_65 {dimension_numbers = #tpu.dot_dimension_numbers<[1], [0], [0], [1], [0, 0, 1, 1], [], []>} : vector<384x4xbf16>, vector<4x8xbf16>, vector<384x8xf32> -> vector<384x8xf32>
    %56 = arith.addf %52, %55 : vector<384x8xf32>
    %c0_66 = arith.constant 0 : index
    %c0_67 = arith.constant 0 : index
    %57 = vector.load %arg7[%c0_66, %c0_67] : memref<384x8xf32, #tpu.memory_space<vmem>>, vector<384x8xf32>
    tpu.vector_store %arg7[%c0_66, %c0_67], %56 {strides = array<i32>} : memref<384x8xf32, #tpu.memory_space<vmem>>, vector<384x8xf32>,
    %c0_68 = arith.constant 0 : index
    %c49 = arith.constant 49 : index
    %c0_69 = arith.constant 0 : index
    %58 = vector.load %arg1[%c0_68, %c49, %c0_69] : memref<1x456x4xbf16, #tpu.memory_space<vmem>>, vector<1x384x4xbf16>
    %59 = vector.shape_cast %58 : vector<1x384x4xbf16> to vector<384x4xbf16>
    %c0_70 = arith.constant 0 : index
    %c0_71 = arith.constant 0 : index
    %60 = vector.load %arg7[%c0_70, %c0_71] : memref<384x8xf32, #tpu.memory_space<vmem>>, vector<384x8xf32>
    %c7 = arith.constant 7 : index
    %c0_72 = arith.constant 0 : index
    %c0_73 = arith.constant 0 : index
    %61 = vector.load %arg2[%c7, %c0_72, %c0_73] : memref<9x4x8xbf16, #tpu.memory_space<vmem>>, vector<1x4x8xbf16>
    %62 = vector.shape_cast %61 : vector<1x4x8xbf16> to vector<4x8xbf16>
    %cst_74 = arith.constant dense<0.000000e+00> : vector<384x8xf32>
    %63 = tpu.matmul %59, %62, %cst_74 {dimension_numbers = #tpu.dot_dimension_numbers<[1], [0], [0], [1], [0, 0, 1, 1], [], []>} : vector<384x4xbf16>, vector<4x8xbf16>, vector<384x8xf32> -> vector<384x8xf32>
    %64 = arith.addf %60, %63 : vector<384x8xf32>
    %c0_75 = arith.constant 0 : index
    %c0_76 = arith.constant 0 : index
    %65 = vector.load %arg7[%c0_75, %c0_76] : memref<384x8xf32, #tpu.memory_space<vmem>>, vector<384x8xf32>
    tpu.vector_store %arg7[%c0_75, %c0_76], %64 {strides = array<i32>} : memref<384x8xf32, #tpu.memory_space<vmem>>, vector<384x8xf32>,
    %c0_77 = arith.constant 0 : index
    %c50 = arith.constant 50 : index
    %c0_78 = arith.constant 0 : index
    %66 = vector.load %arg1[%c0_77, %c50, %c0_78] : memref<1x456x4xbf16, #tpu.memory_space<vmem>>, vector<1x384x4xbf16>
    %67 = vector.shape_cast %66 : vector<1x384x4xbf16> to vector<384x4xbf16>
    %c0_79 = arith.constant 0 : index
    %c0_80 = arith.constant 0 : index
    %68 = vector.load %arg7[%c0_79, %c0_80] : memref<384x8xf32, #tpu.memory_space<vmem>>, vector<384x8xf32>
    %c8 = arith.constant 8 : index
    %c0_81 = arith.constant 0 : index
    %c0_82 = arith.constant 0 : index
    %69 = vector.load %arg2[%c8, %c0_81, %c0_82] : memref<9x4x8xbf16, #tpu.memory_space<vmem>>, vector<1x4x8xbf16>
    %70 = vector.shape_cast %69 : vector<1x4x8xbf16> to vector<4x8xbf16>
    %cst_83 = arith.constant dense<0.000000e+00> : vector<384x8xf32>
    %71 = tpu.matmul %67, %70, %cst_83 {dimension_numbers = #tpu.dot_dimension_numbers<[1], [0], [0], [1], [0, 0, 1, 1], [], []>} : vector<384x4xbf16>, vector<4x8xbf16>, vector<384x8xf32> -> vector<384x8xf32>
    %72 = arith.addf %68, %71 : vector<384x8xf32>
    %c0_84 = arith.constant 0 : index
    %c0_85 = arith.constant 0 : index
    %73 = vector.load %arg7[%c0_84, %c0_85] : memref<384x8xf32, #tpu.memory_space<vmem>>, vector<384x8xf32>
    tpu.vector_store %arg7[%c0_84, %c0_85], %72 {strides = array<i32>} : memref<384x8xf32, #tpu.memory_space<vmem>>, vector<384x8xf32>,
    %c0_86 = arith.constant 0 : index
    %c0_87 = arith.constant 0 : index
    %74 = vector.load %arg7[%c0_86, %c0_87] : memref<384x8xf32, #tpu.memory_space<vmem>>, vector<384x8xf32>
    %75 = vector.shape_cast %74 : vector<384x8xf32> to vector<16x24x8xf32>
    %76 = vector.extract_strided_slice %75 {offsets = [0, 0, 0], sizes = [16, 16, 8], strides = [1, 1, 1]} : vector<16x24x8xf32> to vector<16x16x8xf32>
    %c0_88 = arith.constant 0 : index
    %c0_89 = arith.constant 0 : index
    %77 = vector.load %arg3[%c0_88, %c0_89] : memref<1x8xf32, #tpu.memory_space<vmem>>, vector<1x8xf32>
    %78 = vector.shape_cast %77 : vector<1x8xf32> to vector<1x1x8xf32>
    %79 = vector.broadcast %78 : vector<1x1x8xf32> to vector<16x16x8xf32>
    %80 = arith.addf %76, %79 : vector<16x16x8xf32>
    %81 = arith.truncf %80 : vector<16x16x8xf32> to vector<16x16x8xbf16>
    %c0_90 = arith.constant 0 : index
    %c0_91 = arith.constant 0 : index
    %c0_92 = arith.constant 0 : index
    %c0_93 = arith.constant 0 : index
    %82 = vector.load %arg4[%c0_90, %c0_91, %c0_92, %c0_93] : memref<1x16x16x8xbf16, #tpu.memory_space<vmem>>, vector<1x16x16x8xbf16>
    %83 = vector.shape_cast %82 : vector<1x16x16x8xbf16> to vector<16x16x8xbf16>
    %84 = vector.shape_cast %81 : vector<16x16x8xbf16> to vector<1x16x16x8xbf16>
    tpu.vector_store %arg4[%c0_90, %c0_91, %c0_92, %c0_93], %84 {strides = array<i32>} : memref<1x16x16x8xbf16, #tpu.memory_space<vmem>>, vector<1x16x16x8xbf16>,
    %cst_94 = arith.constant dense<0.000000e+00> : vector<8xf32>
    %85 = vector.multi_reduction <add>, %80, %cst_94 [0, 1] : vector<16x16x8xf32> to vector<8xf32>
    %86 = vector.shape_cast %85 : vector<8xf32> to vector<1x1x8xf32>
    %c0_95 = arith.constant 0 : index
    %c0_96 = arith.constant 0 : index
    %c0_97 = arith.constant 0 : index
    %87 = vector.load %arg5[%c0_95, %c0_96, %c0_97] : memref<1x1x8xf32, #tpu.memory_space<vmem>>, vector<1x1x8xf32>
    tpu.vector_store %arg5[%c0_95, %c0_96, %c0_97], %86 {strides = array<i32>} : memref<1x1x8xf32, #tpu.memory_space<vmem>>, vector<1x1x8xf32>,
    %88 = arith.mulf %80, %80 : vector<16x16x8xf32>
    %cst_98 = arith.constant dense<0.000000e+00> : vector<8xf32>
    %89 = vector.multi_reduction <add>, %88, %cst_98 [0, 1] : vector<16x16x8xf32> to vector<8xf32>
    %90 = vector.shape_cast %89 : vector<8xf32> to vector<1x1x8xf32>
    %c0_99 = arith.constant 0 : index
    %c0_100 = arith.constant 0 : index
    %c0_101 = arith.constant 0 : index
    %91 = vector.load %arg6[%c0_99, %c0_100, %c0_101] : memref<1x1x8xf32, #tpu.memory_space<vmem>>, vector<1x1x8xf32>
    tpu.vector_store %arg6[%c0_99, %c0_100, %c0_101], %90 {strides = array<i32>} : memref<1x1x8xf32, #tpu.memory_space<vmem>>, vector<1x1x8xf32>,
    return
  }
  func.func @transform_0(%arg0: i32) -> (i32, i32, i32) {
    %c0_i32 = arith.constant 0 : i32
    %c0_i32_0 = arith.constant 0 : i32
    %c0_i32_1 = arith.constant 0 : i32
    return %arg0, %c0_i32, %c0_i32_0 : i32, i32, i32
  }
  func.func @transform_1(%arg0: i32) -> (i32, i32, i32) {
    %c0_i32 = arith.constant 0 : i32
    %c0_i32_0 = arith.constant 0 : i32
    %c0_i32_1 = arith.constant 0 : i32
    %c0_i32_2 = arith.constant 0 : i32
    return %c0_i32, %c0_i32_0, %c0_i32_1 : i32, i32, i32
  }
  func.func @transform_2(%arg0: i32) -> (i32, i32) {
    %c0_i32 = arith.constant 0 : i32
    %c0_i32_0 = arith.constant 0 : i32
    %c0_i32_1 = arith.constant 0 : i32
    return %c0_i32, %c0_i32_0 : i32, i32
  }
  func.func @transform_3(%arg0: i32) -> (i32, i32, i32, i32) {
    %c0_i32 = arith.constant 0 : i32
    %c0_i32_0 = arith.constant 0 : i32
    %c0_i32_1 = arith.constant 0 : i32
    %c0_i32_2 = arith.constant 0 : i32
    return %arg0, %c0_i32, %c0_i32_0, %c0_i32_1 : i32, i32, i32, i32
  }
  func.func @transform_4(%arg0: i32) -> (i32, i32, i32) {
    %c0_i32 = arith.constant 0 : i32
    %c0_i32_0 = arith.constant 0 : i32
    %c0_i32_1 = arith.constant 0 : i32
    return %arg0, %c0_i32, %c0_i32_0 : i32, i32, i32
  }
  func.func @transform_5(%arg0: i32) -> (i32, i32, i32) {
    %c0_i32 = arith.constant 0 : i32
    %c0_i32_0 = arith.constant 0 : i32
    %c0_i32_1 = arith.constant 0 : i32
    return %arg0, %c0_i32, %c0_i32_0 : i32, i32, i32
  }
}

</mosaic_0001>

<bundles_post_ra>
// kernel: conv_block_forward.3
= control target key start
LH: loop header
LB: loop body
LE: loop exit
PB: predicated region body
PF: predicated region fallthrough
CT: control target
= control target key end

     0   :  { %s446_s12 = smov 0   ;;  %s538_s0 = inlined_call_operand.vmem [shape: bf16[16,2,8,16], index: 0, kind: input, shape index: {}]   ;;  %s539_s1 = inlined_call_operand.vmem [shape: f32[1,16], index: 1, kind: input, shape index: {}]   ;;  %s540_s2 = inlined_call_operand.vmem [shape: f32[1,16], index: 2, kind: input, shape index: {}]   ;;  %s541_s3 = inlined_call_operand.vmem [shape: f32[16,8,8], index: 3, kind: output, shape index: {}]  }
   0x1 LB: > { %s385_s13 = sadd.s32 4294967295, %s423_s12   ;;  %p389_p0 = scmp.ge.s32.totalorder %s423_s12, 1  ;;  %s423_s12 = sphi %s446_s12, %s13_s12  }
   0x2   : > { %p139_p1 = scmp.lt.s32.totalorder %s423_s12, 3 }
   0x4   : > { %p140_p2 = pnand %p389_p0, %p139_p1 }
   0x5   : > { %s390_s14 = sshll.u32 (!%p140_p2), %s385_s13, 3  ;;  %s425_s23 = smov (!%p140_p2), 120  }
   0x6   : > { %143 = sbr.rel (%p140_p2) target bundleno = 156 (0x9c), region = 32  ;;  %p165_p3 = scmp.lt.s32.totalorder (!%p140_p2), %s390_s14, 15 }
   0xb   : > { %s543_s14 = smov (!%p165_p3, %s390_s14), 15  ;;  %v467_v0 = vld [vmem:[%s539_s1] ss:$0 sm:$0xff]  ;;  %vm320_vm0 = vcmask 64512  }
   0xc   : > { %s407_s15 = sshll.u32 %s543_s14, 3  ;;  %v476_v9 = vld [vmem:[%s540_s2] ss:$0 sm:$0xff] }
   0xd   : > { %s462_s18 = scalar_lea.vmem %s538_s0, %s407_s15  ;;  %s175_s26 = scalar_lea.vmem %s541_s3, %s407_s15 }
   0xe   : > { %v181_v1 = vld [vmem:[%s462_s18 + $0x10] sm:$0xff]   ;;  %v179_v2 = vld [vmem:[%s462_s18] sm:$0xff]   ;;  %v182_v3 = vld [vmem:[%s462_s18 + $0x18] sm:$0xff]  }
   0xf   : > { %v189_v4 = vunpack.c.l.bf16 %v181_v1  ;;  %v242_v5 = vunpack.c.h.bf16 %v181_v1  ;;  %v187_v6 = vunpack.c.l.bf16 %v179_v2  ;;  %v240_v7 = vunpack.c.h.bf16 %v179_v2  ;;  %v180_v8 = vld [vmem:[%s462_s18 + $0x8] sm:$0xff]   ;;  %v183_v35 = vld [vmem:[%s462_s18 + $0x20] sm:$0xff]   ;;  %v186_v40 = vld [vmem:[%s462_s18 + $0x38] sm:$0xff]  }
  0x10   : > { %v190_v10 = vunpack.c.l.bf16 %v182_v3  ;;  %v243_v11 = vunpack.c.h.bf16 %v182_v3  ;;  %v188_v12 = vunpack.c.l.bf16 %v180_v8  ;;  %v241_v13 = vunpack.c.h.bf16 %v180_v8  ;;  %v184_v30 = vld [vmem:[%s462_s18 + $0x28] sm:$0xff]   ;;  %v185_v45 = vld [vmem:[%s462_s18 + $0x30] sm:$0xff]  }
  0x11   : > { %v203_v14 = vmul.f32 %v467_v0, %v189_v4  ;;  %v250_v15 = vmul.f32 %v467_v0, %v242_v5  ;;  %v201_v16 = vmul.f32 %v467_v0, %v187_v6  ;;  %v248_v17 = vmul.f32 %v467_v0, %v240_v7 }
  0x12   : > { %v204_v18 = vmul.f32 %v467_v0, %v190_v10  ;;  %v251_v19 = vmul.f32 %v467_v0, %v243_v11  ;;  %v202_v20 = vmul.f32 %v467_v0, %v188_v12  ;;  %v249_v21 = vmul.f32 %v467_v0, %v241_v13 }
  0x13   : > { %v217_v22 = vadd.f32 %v476_v9, %v203_v14  ;;  %v258_v23 = vadd.f32 %v476_v9, %v250_v15  ;;  %v215_v24 = vadd.f32 %v476_v9, %v201_v16  ;;  %v256_v25 = vadd.f32 %v476_v9, %v248_v17 }
  0x14   : > { %v218_v26 = vadd.f32 %v476_v9, %v204_v18  ;;  %v259_v27 = vadd.f32 %v476_v9, %v251_v19  ;;  %v216_v28 = vadd.f32 %v476_v9, %v202_v20  ;;  %v257_v29 = vadd.f32 %v476_v9, %v249_v21 }
  0x15   : > { %v225_v31 = vmax.f32 %v217_v22, 0.0  ;;  %v266_v32 = vmax.f32 %v258_v23, 0.0  ;;  %v223_v33 = vmax.f32 %v215_v24, 0.0  ;;  %v264_v34 = vmax.f32 %v256_v25, 0.0 }
  0x16   : > { %v226_v36 = vmax.f32 %v218_v26, 0.0  ;;  %v267_v37 = vmax.f32 %v259_v27, 0.0  ;;  %v224_v38 = vmax.f32 %v216_v28, 0.0  ;;  %v265_v39 = vmax.f32 %v257_v29, 0.0 }
  0x17   : > { %v274_v41 = vmax.f32 %v225_v31, %v266_v32  ;;  %v272_v42 = vmax.f32 %v223_v33, %v264_v34  ;;  %v192_v43 = vunpack.c.l.bf16 %v184_v30  ;;  %v245_v44 = vunpack.c.h.bf16 %v184_v30 }
  0x18   : > { %v275_v46 = vmax.f32 %v226_v36, %v267_v37  ;;  %v273_v47 = vmax.f32 %v224_v38, %v265_v39  ;;  %v191_v48 = vunpack.c.l.bf16 %v183_v35  ;;  %v244_v49 = vunpack.c.h.bf16 %v183_v35 }
  0x19   : > { %292 = vrot.lane.b32.xlu1 %v274_v41, %s425_s23  ;;  %288 = vrot.lane.b32.xlu0 %v272_v42, %s425_s23  ;;  %v206_v50 = vmul.f32 %v467_v0, %v192_v43  ;;  %v253_v51 = vmul.f32 %v467_v0, %v245_v44  ;;  %v194_v52 = vunpack.c.l.bf16 %v186_v40  ;;  %v247_v53 = vunpack.c.h.bf16 %v186_v40 }
  0x1a   : > { %v205_v54 = vmul.f32 %v467_v0, %v191_v48  ;;  %v252_v55 = vmul.f32 %v467_v0, %v244_v49  ;;  %v193_v56 = vunpack.c.l.bf16 %v185_v45  ;;  %v246_v57 = vunpack.c.h.bf16 %v185_v45 }
  0x1b   : > { %v220_v58 = vadd.f32 %v476_v9, %v206_v50  ;;  %v261_v59 = vadd.f32 %v476_v9, %v253_v51  ;;  %v208_v60 = vmul.f32 %v467_v0, %v194_v52  ;;  %v255_v61 = vmul.f32 %v467_v0, %v247_v53 }
  0x1c   : > { %v219_v62 = vadd.f32 %v476_v9, %v205_v54  ;;  %v260_v63 = vadd.f32 %v476_v9, %v252_v55  ;;  %v207_v1 = vmul.f32 %v467_v0, %v193_v56  ;;  %v254_v2 = vmul.f32 %v467_v0, %v246_v57 }
  0x1d   : > { %294 = vrot.lane.b32.xlu1 %v275_v46, %s425_s23  ;;  %290 = vrot.lane.b32.xlu0 %v273_v47, %s425_s23  ;;  %v228_v3 = vmax.f32 %v220_v58, 0.0  ;;  %v269_v4 = vmax.f32 %v261_v59, 0.0  ;;  %v222_v5 = vadd.f32 %v476_v9, %v208_v60  ;;  %v263_v6 = vadd.f32 %v476_v9, %v255_v61 }
  0x1e   : > { %v227_v7 = vmax.f32 %v219_v62, 0.0  ;;  %v268_v8 = vmax.f32 %v260_v63, 0.0  ;;  %v221_v10 = vadd.f32 %v476_v9, %v207_v1  ;;  %v262_v11 = vadd.f32 %v476_v9, %v254_v2 }
  0x1f   : > { %v277_v12 = vmax.f32 %v228_v3, %v269_v4  ;;  %v230_v13 = vmax.f32 %v222_v5, 0.0  ;;  %v271_v0 = vmax.f32 %v263_v6, 0.0 }
  0x20   : > { %v276_v14 = vmax.f32 %v227_v7, %v268_v8  ;;  %v229_v15 = vmax.f32 %v221_v10, 0.0  ;;  %v270_v16 = vmax.f32 %v262_v11, 0.0 }
  0x21   : > { %298 = vrot.lane.b32.xlu1 %v277_v12, %s425_s23  ;;  %v279_v17 = vmax.f32 %v230_v13, %v271_v0 }
  0x22   : > { %296 = vrot.lane.b32.xlu0 %v276_v14, %s425_s23  ;;  %v278_v18 = vmax.f32 %v229_v15, %v270_v16 }
  0x25   : > { %302 = vrot.lane.b32.xlu1 %v279_v17, %s425_s23 }
  0x26   : > { %300 = vrot.lane.b32.xlu0 %v278_v18, %s425_s23 }
  0x8b   : > { %v293_v9 = vpop.permute.xlu1 %292  ;;  %v289_v19 = vpop.permute.xlu0 %288 }
  0x8c   : > { %v314_v20 = vmax.f32 %v274_v41, %v293_v9  ;;  %v312_v21 = vmax.f32 %v272_v42, %v289_v19 }
  0x8e   : > { %323 = vst.msk [vmem:[%s175_s26 + $0x10] sm:$0xff] %vm320_vm0, %v314_v20  ;;  %321 = vst.msk [vmem:[%s175_s26] sm:$0xff] %vm320_vm0, %v312_v21 }
  0x8f   : > { %v295_v22 = vpop.permute.xlu1 %294  ;;  %v291_v23 = vpop.permute.xlu0 %290 }
  0x90   : > { %v315_v24 = vmax.f32 %v275_v46, %v295_v22  ;;  %v313_v25 = vmax.f32 %v273_v47, %v291_v23 }
  0x92   : > { %324 = vst.msk [vmem:[%s175_s26 + $0x18] sm:$0xff] %vm320_vm0, %v315_v24  ;;  %322 = vst.msk [vmem:[%s175_s26 + $0x8] sm:$0xff] %vm320_vm0, %v313_v25 }
  0x93   : > { %v299_v26 = vpop.permute.xlu1 %298 }
  0x94   : > { %v317_v27 = vmax.f32 %v277_v12, %v299_v26  ;;  %v297_v28 = vpop.permute.xlu0 %296 }
  0x95   : > { %v316_v29 = vmax.f32 %v276_v14, %v297_v28 }
  0x96   : > { %326 = vst.msk [vmem:[%s175_s26 + $0x28] sm:$0xff] %vm320_vm0, %v317_v27 }
  0x97   : > { %325 = vst.msk [vmem:[%s175_s26 + $0x20] sm:$0xff] %vm320_vm0, %v316_v29  ;;  %v303_v30 = vpop.permute.xlu1 %302 }
  0x98   : > { %v319_v31 = vmax.f32 %v279_v17, %v303_v30  ;;  %v301_v32 = vpop.permute.xlu0 %300 }
  0x99   : > { %v318_v33 = vmax.f32 %v278_v18, %v301_v32 }
  0x9a   : > { %328 = vst.msk [vmem:[%s175_s26 + $0x38] sm:$0xff] %vm320_vm0, %v319_v31 }
  0x9b   : > { %327 = vst.msk [vmem:[%s175_s26 + $0x30] sm:$0xff] %vm320_vm0, %v318_v33 }
  0x9c PF: > { %s13_s12 = sadd.s32 1, %s423_s12  }
  0x9d   : > { %p10_p4 = scmp.ge.s32.totalorder %s13_s12, 4  }
  0x9f   :  { %12 = sbr.rel (!%p10_p4) target bundleno = 1 (0x1), region = 63 }

// kernel: conv_block_forward.2
= control target key start
LH: loop header
LB: loop body
LE: loop exit
PB: predicated region body
PF: predicated region fallthrough
CT: control target
= control target key end

     0   :  { %s8573_s18 = smov 0   ;;  %s10311_s0 = inlined_call_operand.vmem [shape: bf16[2,456,4], index: 0, kind: input, shape index: {}]   ;;  %s10312_s1 = inlined_call_operand.vmem [shape: bf16[9,4,8], index: 1, kind: input, shape index: {}]   ;;  %s10313_s2 = inlined_call_operand.vmem [shape: f32[1,8], index: 2, kind: input, shape index: {}]   ;;  %s10314_s3 = inlined_call_operand.vmem [shape: bf16[2,16,16,8], index: 3, kind: output, shape index: {0}]   ;;  %s10315_s4 = inlined_call_operand.vmem [shape: f32[2,1,8], index: 4, kind: output, shape index: {1}]   ;;  %s10316_s5 = inlined_call_operand.vmem [shape: f32[2,1,8], index: 5, kind: output, shape index: {2}]  }
   0x1 LB: > { %s7090_s19 = sadd.s32 4294967295, %s8540_s18   ;;  %p7094_p0 = scmp.ge.s32.totalorder %s8540_s18, 1  ;;  %s8540_s18 = sphi %s8573_s18, %s16_s18  }
   0x2   : > { %p192_p1 = scmp.lt.s32.totalorder %s8540_s18, 3 }
   0x4   : > { %p193_p2 = pnand %p7094_p0, %p192_p1 }
   0x5   : > { %p226_p3 = scmp.lt.s32.totalorder (!%p193_p2), %s7090_s19, 1 }
   0x6   : > { %196 = sbr.rel (%p193_p2) target bundleno = 683 (0x2ab), region = 32 }
   0xb   : > { %v388_v0 = vld [vmem:[%s10312_s1] sm:$0x3]  ;;  %vm582_vm0 = vcmask 1041408   ;;  %v7146_v2 = vld [vmem:[%s10312_s1 + $0x2] sm:$0x3]  ;;  %s10318_s19 = smov (!%p226_p3, %s7090_s19), 1 }
   0xc   : > { %8290 = vmatprep.subr.msk.bf16.mxu1 %vm582_vm0, %v388_v0  ;;  %v584_v1 = vsel %vm582_vm0, %v388_v0, 0  ;;  %8289 = vmatprep.subr.msk.bf16.mxu0 %vm582_vm0, %v388_v0  ;;  %v7196_v3 = vld [vmem:[%s10312_s1 + $0x4] sm:$0x3]  ;;  %s8299_s26 = smul.u32 228, %s10318_s19  ;;  %vm509_vm1 = vcmask 31744   ;;  %v1399_v7 = vsel %vm582_vm0, %v7146_v2, 0  ;;  %s238_s8 = scalar_lea.vmem %s10315_s4, %s10318_s19 }
   0xd   : > { %8288 = vmatpush3.bf16.msra.mxu1 %v584_v1  ;;  %7838 = vmatpush3.bf16.msra.mxu0 %v584_v1  ;;  %v8607_v5 = vld [vmem:[%s10312_s1 + $0x6] sm:$0x3]  ;;  %v8616_v9 = vld [vmem:[%s10312_s1 + $0x8] sm:$0x3]  ;;  %v2067_v11 = vsel %vm582_vm0, %v7196_v3, 0  ;;  %vm1944_vm2 = vcmask 1046528   ;;  %s241_s11 = scalar_lea.vmem %s10316_s5, %s10318_s19 }
   0xe   : > { %8291 = vmatprep.subr.msk.bf16.mxu1 %vm582_vm0, %v7146_v2  ;;  %8292 = vmatprep.subr.msk.bf16.mxu0 %vm582_vm0, %v7196_v3  ;;  %s8601_s29 = scalar_lea.vmem %s10311_s0, %s8299_s26  ;;  %vm1129_vm3 = vsmask.f32 7424  ;;  %v2681_v1 = vsel %vm582_vm0, %v8607_v5, 0  ;;  %vm243_vm4 = vcmask 64512   ;;  %s7579_s25 = sshll.u32 %s10318_s19, 7  ;;  %vm6779_vm5 = vcmask 60416  }
   0xf   : > { %v8309_v4 = vld [vmem:[%s8601_s29 + $0x60] sm:$0xff]   ;;  %v8310_v6 = vld [vmem:[%s8601_s29 + $0x68] sm:$0xff]   ;;  %v8313_v12 = vld [vmem:[%s8601_s29 + $0x70] sm:$0xff]   ;;  %s9963_s28 = scalar_lea.vmem %s10314_s3, %s7579_s25  ;;  %vm6881_vm6 = vcmask 57344  }
  0x10   : > { %7863 = vmatprep.mubr.msk.bf16.mxu1 %vm509_vm1, %v8309_v4  ;;  %v8311_v8 = vld [vmem:[%s8601_s29] sm:$0xff]   ;;  %v8312_v10 = vld [vmem:[%s8601_s29 + $0x8] sm:$0xff]   ;;  %v8315_v13 = vld [vmem:[%s8601_s29 + $0x10] sm:$0xff]  }
  0x11   : > { %7864 = vmatmul.mubr.msk.bf16.vlgmr.msra.gmra.mxu1 %vm509_vm1, %v8310_v6  ;;  %7839 = vmatprep.mubr.msk.bf16.mxu0 %vm509_vm1, %v8311_v8  ;;  %v8314_v14 = vld [vmem:[%s8601_s29 + $0x78] sm:$0xff]   ;;  %v8317_v15 = vld [vmem:[%s8601_s29 + $0x80] sm:$0xff]   ;;  %v8318_v18 = vld [vmem:[%s8601_s29 + $0x88] sm:$0xff]  }
  0x12   : > { %7888 = vmatpush3.bf16.msra.mxu1 %v1399_v7  ;;  %7840 = vmatmul.mubr.msk.bf16.vlgmr.msra.gmra.mxu0 %vm509_vm1, %v8312_v10  ;;  %v8316_v16 = vld [vmem:[%s8601_s29 + $0x18] sm:$0xff]   ;;  %v8319_v17 = vld [vmem:[%s8601_s29 + $0x20] sm:$0xff]   ;;  %v8321_v19 = vld [vmem:[%s8601_s29 + $0x90] sm:$0xff]   ;;  %v3495_v10 = vsel %vm582_vm0, %v8616_v9, 0 }
  0x13   : > { %8293 = vmatprep.subr.msk.bf16.mxu1 %vm582_vm0, %v8607_v5  ;;  %7867 = vmatprep.mubr.msk.bf16.mxu1 %vm509_vm1, %v8313_v12  ;;  %v8320_v20 = vld [vmem:[%s8601_s29 + $0x28] sm:$0xff]   ;;  %v8323_v21 = vld [vmem:[%s8601_s29 + $0x30] sm:$0xff]   ;;  %v8322_v22 = vld [vmem:[%s8601_s29 + $0x98] sm:$0xff]  }
  0x14   : > { %7938 = vmatpush3.bf16.msra.mxu0 %v2067_v11  ;;  %7843 = vmatprep.mubr.msk.bf16.mxu0 %vm509_vm1, %v8315_v13  ;;  %v8325_v23 = vld [vmem:[%s8601_s29 + $0xa0] sm:$0xff]   ;;  %v8324_v24 = vld [vmem:[%s8601_s29 + $0x38] sm:$0xff]   ;;  %v8334_v27 = vld [vmem:[%s8601_s29 + $0x8] sm:$0xff]  }
  0x15   : > { %8294 = vmatprep.subr.msk.bf16.mxu0 %vm582_vm0, %v8616_v9  ;;  %v8333_v25 = vld [vmem:[%s8601_s29] sm:$0xff]   ;;  %v8326_v29 = vld [vmem:[%s8601_s29 + $0xa8] sm:$0xff]   ;;  %v8329_v31 = vld [vmem:[%s8601_s29 + $0xb0] sm:$0xff]   ;;  %v1138_v35 = vshll.u32 %v8334_v27, 16  ;;  %v1142_v47 = vshrl.u32 %v8334_v27, 16 }
  0x16   : > { %v8327_v26 = vld [vmem:[%s8601_s29 + $0x40] sm:$0xff]   ;;  %v1133_v28 = vshll.u32 %v8333_v25, 16  ;;  %v8328_v30 = vld [vmem:[%s8601_s29 + $0x48] sm:$0xff]   ;;  %v8331_v32 = vld [vmem:[%s8601_s29 + $0x50] sm:$0xff]   ;;  %v1131_v33 = vshrl.u32 %v8333_v25, 16 }
  0x17   : > { %v8335_v36 = vld [vmem:[%s8601_s29 + $0x10] sm:$0xff]   ;;  %v8337_v37 = vld [vmem:[%s8601_s29 + $0x8] sm:$0xff]   ;;  %v8336_v38 = vld [vmem:[%s8601_s29] sm:$0xfe]   ;;  %v1140_v40 = vrot.slane %v1138_v35, 1 }
  0x18   : > { %v1135_v34 = vrot.slane %v1133_v28, 1  ;;  %v8339_v41 = vld [vmem:[%s8601_s29 + $0x18] sm:$0xff]   ;;  %v1146_v43 = vshll.u32 %v8335_v36, 16  ;;  %v1945_v44 = vrot.slane %v8336_v38, 1  ;;  %v1946_v45 = vrot.slane %v8337_v37, 1  ;;  %v8338_v51 = vld [vmem:[%s8601_s29 + $0x10] sm:$0xff]  }
  0x19   : > { %7868 = vmatmul.mubr.msk.bf16.gmra.mxu1 %vm509_vm1, %v8314_v14  ;;  %v8330_v42 = vld [vmem:[%s8601_s29 + $0xb8] sm:$0xff]   ;;  %v1150_v49 = vshrl.u32 %v8335_v36, 16  ;;  %v1154_v50 = vshll.u32 %v8339_v41, 16  ;;  %v8340_v52 = vld [vmem:[%s8601_s29 + $0x20] sm:$0xff]   ;;  %v1144_v56 = vor.u32 %v1142_v47, %v1140_v40  ;;  %v8343_v59 = vld [vmem:[%s8601_s29 + $0x28] sm:$0xff]   ;;  %v1948_v60 = vrot.slane %v8338_v51, 1 }
  0x1a   : > { %7871 = vmatprep.mubr.msk.bf16.mxu1 %vm509_vm1, %v8317_v15  ;;  %7844 = vmatmul.mubr.msk.bf16.gmra.mxu0 %vm509_vm1, %v8316_v16  ;;  %v1136_v39 = vor.u32 %v1135_v34, %v1131_v33  ;;  %v8332_v46 = vld [vmem:[%s8601_s29 + $0x58] sm:$0xff]   ;;  %v1148_v53 = vrot.slane %v1146_v43, 1  ;;  %v1947_v54 = vsel %vm1944_vm2, %v1945_v44, %v1946_v45  ;;  %v1162_v61 = vshll.u32 %v8340_v52, 16  ;;  %v8342_v7 = vld [vmem:[%s8601_s29 + $0x20] sm:$0xff]   ;;  %v8344_v12 = vld [vmem:[%s8601_s29 + $0x30] sm:$0xff]  }
  0x1b   : > { %7847 = vmatprep.mubr.msk.bf16.mxu0 %vm509_vm1, %v8319_v17  ;;  %v8341_v55 = vld [vmem:[%s8601_s29 + $0x18] sm:$0xff]   ;;  %v1156_v58 = vrot.slane %v1154_v50, 1  ;;  %v1158_v0 = vshrl.u32 %v8339_v41, 16  ;;  %v1166_v3 = vshrl.u32 %v8340_v52, 16  ;;  %v1170_v4 = vshll.u32 %v8343_v59, 16  ;;  %v8345_v13 = vld [vmem:[%s8601_s29 + $0x28] sm:$0xff]  }
  0x1c   : > { %v1141_v48 = vsel %vm1129_vm3, %v1136_v39, %v1140_v40  ;;  %v1152_v57 = vor.u32 %v1150_v49, %v1148_v53  ;;  %v1950_v62 = vrot.slane %v8341_v55, 1  ;;  %v1149_v63 = vsel %vm1129_vm3, %v1144_v56, %v1148_v53  ;;  %v8347_v16 = vld [vmem:[%s8601_s29 + $0x38] sm:$0xff]   ;;  %v8351_v33 = vld [vmem:[%s8601_s29 + $0x48] sm:$0xff]   ;;  %v8350_v39 = vld [vmem:[%s8601_s29 + $0x40] sm:$0xff]  }
  0x1d   : > { %v1949_v6 = vsel %vm1944_vm2, %v1946_v45, %v1948_v60  ;;  %v1164_v8 = vrot.slane %v1162_v61, 1  ;;  %v1160_v5 = vor.u32 %v1158_v0, %v1156_v58  ;;  %v1172_v15 = vrot.slane %v1170_v4, 1  ;;  %v8353_v47 = vld [vmem:[%s8601_s29 + $0x48] sm:$0xff]   ;;  %v8355_v51 = vld [vmem:[%s8601_s29 + $0x58] sm:$0xff]   ;;  %v8354_v61 = vld [vmem:[%s8601_s29 + $0x50] sm:$0xff]  }
  0x1e   : > { %v1157_v2 = vsel %vm1129_vm3, %v1152_v57, %v1156_v58  ;;  %v1951_v11 = vsel %vm1944_vm2, %v1948_v60, %v1950_v62  ;;  %v1952_v9 = vrot.slane %v8342_v7, 1  ;;  %v1178_v17 = vshll.u32 %v8344_v12, 16 }
  0x1f   : > { %v1168_v14 = vor.u32 %v1166_v3, %v1164_v8  ;;  %v1190_v38 = vshrl.u32 %v8347_v16, 16  ;;  %v1960_v52 = vrot.slane %v8350_v39, 1  ;;  %v1206_v56 = vshrl.u32 %v8351_v33, 16  ;;  %v8733_v3 = vld [vmem:[%s8601_s29 + $0x68] sm:$0xff]   ;;  %v8365_v39 = vld [vmem:[%s8601_s29 + $0x78] sm:$0xff]  }
  0x20   : > { %v1953_v25 = vsel %vm1944_vm2, %v1950_v62, %v1952_v9  ;;  %v1180_v27 = vrot.slane %v1178_v17, 1  ;;  %v8356_v62 = vld [vmem:[%s8601_s29 + $0x60] sm:$0xff]   ;;  %v1964_v7 = vrot.slane %v8354_v61, 1 }
  0x21   : > { %7872 = vmatmul.mubr.msk.bf16.gmra.mxu1 %vm509_vm1, %v8318_v18  ;;  %v1954_v18 = vrot.slane %v8345_v13, 1  ;;  %v1230_v13 = vshrl.u32 %v8356_v62, 16 }
  0x22   : > { %7875 = vmatprep.mubr.msk.bf16.mxu1 %vm509_vm1, %v8321_v19  ;;  %7848 = vmatmul.mubr.msk.bf16.gmra.mxu0 %vm509_vm1, %v8320_v20  ;;  %v1165_v19 = vsel %vm1129_vm3, %v1160_v5, %v1164_v8  ;;  %v1174_v20 = vshrl.u32 %v8343_v59, 16  ;;  %v1218_v59 = vshll.u32 %v8355_v51, 16  ;;  %v1226_v8 = vshll.u32 %v8356_v62, 16 }
  0x23   : > { %7851 = vmatprep.mubr.msk.bf16.mxu0 %vm509_vm1, %v8323_v21  ;;  %v8346_v21 = vld [vmem:[%s8601_s29 + $0x30] sm:$0xff]   ;;  %v1955_v28 = vsel %vm1944_vm2, %v1952_v9, %v1954_v18  ;;  %v1234_v5 = vshll.u32 %v8733_v3, 16 }
  0x24   : > { %v1956_v34 = vrot.slane %v8346_v21, 1  ;;  %v8746_v9 = vld [vmem:[%s8601_s29 + $0x70] sm:$0xff]   ;;  %v8749_v17 = vrot.slane %v1226_v8, 1 }
  0x26   : > { %v1957_v43 = vsel %vm1944_vm2, %v1954_v18, %v1956_v34 }
  0x29   : > { %7876 = vmatmul.mubr.msk.bf16.gmra.mxu1 %vm509_vm1, %v8322_v22  ;;  %v1173_v22 = vsel %vm1129_vm3, %v1168_v14, %v1172_v15 }
  0x2a   : > { %7879 = vmatprep.mubr.msk.bf16.mxu1 %vm509_vm1, %v8325_v23  ;;  %7852 = vmatmul.mubr.msk.bf16.gmra.mxu0 %vm509_vm1, %v8324_v24  ;;  %v1182_v23 = vshrl.u32 %v8344_v12, 16  ;;  %v1186_v24 = vshll.u32 %v8347_v16, 16  ;;  %v1222_v12 = vshrl.u32 %v8355_v51, 16  ;;  %v8743_v16 = vld [vmem:[%s8601_s29 + $0x60] sm:$0xff]  }
  0x2b   : > { %7855 = vmatprep.mubr.msk.bf16.mxu0 %vm509_vm1, %v8327_v26  ;;  %v8348_v26 = vld [vmem:[%s8601_s29 + $0x40] sm:$0xff]  }
  0x2c   : > { %v1194_v35 = vshll.u32 %v8348_v26, 16  ;;  %v1198_v41 = vshrl.u32 %v8348_v26, 16  ;;  %v1242_v26 = vshll.u32 %v8746_v9, 16 }
  0x2e   : > { %v1196_v44 = vrot.slane %v1194_v35, 1  ;;  %v8362_v35 = vld [vmem:[%s8601_s29 + $0x70] sm:$0xff]  }
  0x30   : > { %v1200_v49 = vor.u32 %v1198_v41, %v1196_v44 }
  0x31   : > { %7880 = vmatmul.mubr.msk.bf16.gmra.mxu1 %vm509_vm1, %v8326_v29  ;;  %v8349_v29 = vld [vmem:[%s8601_s29 + $0x38] sm:$0xff]  }
  0x32   : > { %7883 = vmatprep.mubr.msk.bf16.mxu1 %vm509_vm1, %v8329_v31  ;;  %7856 = vmatmul.mubr.msk.bf16.gmra.mxu0 %vm509_vm1, %v8328_v30  ;;  %v1176_v30 = vor.u32 %v1174_v20, %v1172_v15  ;;  %v1184_v31 = vor.u32 %v1182_v23, %v1180_v27  ;;  %v1958_v36 = vrot.slane %v8349_v29, 1  ;;  %v8760_v20 = vld [vmem:[%s10312_s1 + $0xa] sm:$0x3]  ;;  %v8767_v23 = vrot.slane %v1234_v5, 1  ;;  %v8373_v5 = vld [vmem:[%s8601_s29 + $0x98] sm:$0xff]  }
  0x33   : > { %7859 = vmatprep.mubr.msk.bf16.mxu0 %vm509_vm1, %v8331_v32  ;;  %v1188_v32 = vrot.slane %v1186_v24, 1  ;;  %v8770_v24 = vld [vmem:[%s8601_s29 + $0x78] sm:$0xff]  }
  0x34   : > { %v1181_v37 = vsel %vm1129_vm3, %v1176_v30, %v1180_v27  ;;  %v1959_v45 = vsel %vm1944_vm2, %v1956_v34, %v1958_v36  ;;  %v1961_v60 = vsel %vm1944_vm2, %v1958_v36, %v1960_v52  ;;  %v1238_v30 = vshrl.u32 %v8733_v3, 16  ;;  %v8364_v36 = vld [vmem:[%s8601_s29 + $0x80] sm:$0xff]  }
  0x35   : > { %v1189_v40 = vsel %vm1129_vm3, %v1184_v31, %v1188_v32 }
  0x36   : > { %v1240_v41 = vor.u32 %v1238_v30, %v8767_v23  ;;  %v8376_v30 = vld [vmem:[%s8601_s29 + $0xb0] sm:$0xff]  }
  0x39   : > { %7884 = vmatmul.mubr.msk.bf16.gmra.mxu1 %vm509_vm1, %v8330_v42  ;;  %v1202_v42 = vshll.u32 %v8351_v33, 16  ;;  %v1250_v33 = vshll.u32 %v8770_v24, 16 }
  0x3a   : > { %7889 = vmatprep.mubr.msk.bf16.mxu1 %vm509_vm1, %v1141_v48  ;;  %7860 = vmatmul.mubr.msk.bf16.gmra.mxu0 %vm509_vm1, %v8332_v46  ;;  %v8352_v46 = vld [vmem:[%s8601_s29 + $0x50] sm:$0xff]   ;;  %v1192_v48 = vor.u32 %v1190_v38, %v1188_v32  ;;  %v1246_v32 = vshrl.u32 %v8746_v9, 16  ;;  %v8375_v9 = vld [vmem:[%s8601_s29 + $0xa8] sm:$0xff]  }
  0x3b   : > { %7939 = vmatprep.mubr.msk.bf16.mxu0 %vm509_vm1, %v1947_v54  ;;  %v1204_v50 = vrot.slane %v1202_v42, 1  ;;  %v1210_v53 = vshll.u32 %v8352_v46, 16  ;;  %v1962_v54 = vrot.slane %v8353_v47, 1  ;;  %v1214_v58 = vshrl.u32 %v8352_v46, 16 }
  0x3c   : > { %v1197_v55 = vsel %vm1129_vm3, %v1192_v48, %v1196_v44  ;;  %v8367_v44 = vld [vmem:[%s8601_s29 + $0x88] sm:$0xff]   ;;  %v1258_v46 = vshll.u32 %v8364_v36, 16  ;;  %v1974_v47 = vrot.slane %v8365_v39, 1 }
  0x3d   : > { %v1205_v57 = vsel %vm1129_vm3, %v1200_v49, %v1204_v50  ;;  %v1963_v0 = vsel %vm1944_vm2, %v1960_v52, %v1962_v54  ;;  %v1965_v15 = vsel %vm1944_vm2, %v1962_v54, %v1964_v7  ;;  %v1254_v49 = vshrl.u32 %v8770_v24, 16 }
  0x3e   : > { %v1262_v52 = vshrl.u32 %v8364_v36, 16  ;;  %v1270_v3 = vshrl.u32 %v8367_v44, 16 }
  0x41   : > { %7890 = vmatmul.mubr.msk.bf16.vlgmr.msra.gmra.mxu1 %vm509_vm1, %v1149_v63  ;;  %v1212_v63 = vrot.slane %v1210_v53, 1  ;;  %v1266_v53 = vshll.u32 %v8367_v44, 16  ;;  %v1310_v44 = vshrl.u32 %v8376_v30, 16 }
  0x42   : > { %7988 = vmatpush3.bf16.msra.mxu1 %v2681_v1  ;;  %7893 = vmatprep.mubr.msk.bf16.mxu1 %vm509_vm1, %v1157_v2  ;;  %v8729_v1 = vld [vmem:[%s8601_s29 + $0x58] sm:$0xff]   ;;  %v1208_v2 = vor.u32 %v1206_v56, %v1204_v50  ;;  %v8366_v50 = vld [vmem:[%s8601_s29 + $0x80] sm:$0xff]   ;;  %v1260_v56 = vrot.slane %v1258_v46, 1 }
  0x43   : > { %7940 = vmatmul.mubr.msk.bf16.vlgmr.msra.gmra.mxu0 %vm509_vm1, %v1949_v6  ;;  %v1216_v4 = vor.u32 %v1214_v58, %v1212_v63  ;;  %v1220_v6 = vrot.slane %v1218_v59, 1  ;;  %8295 = vmatprep.subr.msk.bf16.mxu1 %vm582_vm0, %v8760_v20  ;;  %v8369_v58 = vld [vmem:[%s8601_s29 + $0x88] sm:$0xff]   ;;  %v1268_v62 = vrot.slane %v1266_v53, 1 }
  0x44   : > { %8038 = vmatpush3.bf16.msra.mxu0 %v3495_v10  ;;  %7943 = vmatprep.mubr.msk.bf16.mxu0 %vm509_vm1, %v1951_v11  ;;  %v1966_v10 = vrot.slane %v8729_v1, 1  ;;  %v1213_v11 = vsel %vm1129_vm3, %v1208_v2, %v1212_v63  ;;  %v1264_v61 = vor.u32 %v1262_v52, %v1260_v56  ;;  %v8371_v63 = vld [vmem:[%s8601_s29 + $0x98] sm:$0xff]   ;;  %v1978_v1 = vrot.slane %v8369_v58, 1 }
  0x45   : > { %v1221_v14 = vsel %vm1129_vm3, %v1216_v4, %v1220_v6  ;;  %v1224_v21 = vor.u32 %v1222_v12, %v1220_v6  ;;  %v8370_v6 = vld [vmem:[%s8601_s29 + $0x90] sm:$0xff]   ;;  %v1282_v8 = vshll.u32 %v8371_v63, 16 }
  0x46   : > { %v1967_v18 = vsel %vm1944_vm2, %v1964_v7, %v1966_v10  ;;  %v1269_v4 = vsel %vm1129_vm3, %v1264_v61, %v1268_v62 }
  0x47   : > { %v1229_v29 = vsel %vm1129_vm3, %v1224_v21, %v8749_v17 }
  0x49   : > { %7894 = vmatmul.mubr.msk.bf16.gmra.mxu1 %vm509_vm1, %v1165_v19  ;;  %v8755_v19 = vld [vmem:[%s8601_s29 + $0x68] sm:$0xff]  }
  0x4a   : > { %7897 = vmatprep.mubr.msk.bf16.mxu1 %vm509_vm1, %v1173_v22  ;;  %v1232_v22 = vor.u32 %v1230_v13, %v8749_v17  ;;  %v1970_v27 = vrot.slane %v8755_v19, 1  ;;  %v1980_v17 = vrot.slane %v8370_v6, 1  ;;  %v1982_v19 = vrot.slane %v8373_v5, 1 }
  0x4b   : > { %7944 = vmatmul.mubr.msk.bf16.gmra.mxu0 %vm509_vm1, %v1953_v25  ;;  %v1968_v25 = vrot.slane %v8743_v16, 1  ;;  %v1284_v16 = vrot.slane %v1282_v8, 1  ;;  %v8387_v8 = vld [vmem:[%s8601_s29 + $0x1c] sm:$0xff]  }
  0x4c   : > { %7947 = vmatprep.mubr.msk.bf16.mxu0 %vm509_vm1, %v1955_v28  ;;  %v8542_v28 = vmov 0.0   ;;  %v1237_v31 = vsel %vm1129_vm3, %v1232_v22, %v8767_v23  ;;  %v1286_v22 = vshrl.u32 %v8371_v63, 16 }
  0x4d   : > { %270 = vst.msk [vmem:[#allocation2 + $0xd0] sm:$0xff] %vm243_vm4, %v8542_v28  ;;  %244 = vst.msk [vmem:[#allocation2] sm:$0xff] %vm243_vm4, %v8542_v28  ;;  %v1969_v34 = vsel %vm1944_vm2, %v1966_v10, %v1968_v25  ;;  %v1971_v38 = vsel %vm1944_vm2, %v1968_v25, %v1970_v27  ;;  %v8372_v10 = vld [vmem:[%s8601_s29 + $0xa0] sm:$0xff]   ;;  %v1298_v25 = vshll.u32 %v8375_v9, 16 }
  0x4e   : > { %245 = vst.msk [vmem:[#allocation2 + $0x8] sm:$0xff] %vm243_vm4, %v8542_v28  ;;  %246 = vst.msk [vmem:[#allocation2 + $0x10] sm:$0xff] %vm243_vm4, %v8542_v28  ;;  %v1294_v24 = vshrl.u32 %v8372_v10, 16 }
  0x4f   : > { %247 = vst.msk [vmem:[#allocation2 + $0x18] sm:$0xff] %vm243_vm4, %v8542_v28  ;;  %248 = vst.msk [vmem:[#allocation2 + $0x20] sm:$0xff] %vm243_vm4, %v8542_v28 }
  0x50   : > { %249 = vst.msk [vmem:[#allocation2 + $0x28] sm:$0xff] %vm243_vm4, %v8542_v28  ;;  %250 = vst.msk [vmem:[#allocation2 + $0x30] sm:$0xff] %vm243_vm4, %v8542_v28 }
  0x51   : > { %7898 = vmatmul.mubr.msk.bf16.gmra.mxu1 %vm509_vm1, %v1181_v37  ;;  %251 = vst.msk [vmem:[#allocation2 + $0x38] sm:$0xff] %vm243_vm4, %v8542_v28  ;;  %252 = vst.msk [vmem:[#allocation2 + $0x40] sm:$0xff] %vm243_vm4, %v8542_v28  ;;  %v1244_v37 = vrot.slane %v1242_v26, 1  ;;  %v1981_v26 = vsel %vm1944_vm2, %v1978_v1, %v1980_v17 }
  0x52   : > { %7901 = vmatprep.mubr.msk.bf16.mxu1 %vm509_vm1, %v1189_v40  ;;  %253 = vst.msk [vmem:[#allocation2 + $0x48] sm:$0xff] %vm243_vm4, %v8542_v28  ;;  %254 = vst.msk [vmem:[#allocation2 + $0x50] sm:$0xff] %vm243_vm4, %v8542_v28  ;;  %v8848_v40 = vld [vmem:[%s10312_s1 + $0xc] sm:$0x3] }
  0x53   : > { %7948 = vmatmul.mubr.msk.bf16.gmra.mxu0 %vm509_vm1, %v1957_v43  ;;  %255 = vst.msk [vmem:[#allocation2 + $0x58] sm:$0xff] %vm243_vm4, %v8542_v28  ;;  %256 = vst.msk [vmem:[#allocation2 + $0x60] sm:$0xff] %vm243_vm4, %v8542_v28  ;;  %8296 = vmatprep.subr.msk.bf16.mxu0 %vm582_vm0, %v8848_v40  ;;  %v1248_v42 = vor.u32 %v1246_v32, %v1244_v37  ;;  %v1252_v43 = vrot.slane %v1250_v33, 1  ;;  %v1245_v48 = vsel %vm1129_vm3, %v1240_v41, %v1244_v37 }
  0x54   : > { %7951 = vmatprep.mubr.msk.bf16.mxu0 %vm509_vm1, %v1959_v45  ;;  %257 = vst.msk [vmem:[#allocation2 + $0x68] sm:$0xff] %vm243_vm4, %v8542_v28  ;;  %258 = vst.msk [vmem:[#allocation2 + $0x70] sm:$0xff] %vm243_vm4, %v8542_v28  ;;  %v1972_v45 = vrot.slane %v8362_v35, 1  ;;  %v1288_v32 = vor.u32 %v1286_v22, %v1284_v16  ;;  %v8379_v35 = vld [vmem:[%s8601_s29 + $0xb8] sm:$0xff]   ;;  %v1306_v37 = vshll.u32 %v8376_v30, 16  ;;  %v1302_v41 = vshrl.u32 %v8375_v9, 16 }
  0x55   : > { %259 = vst.msk [vmem:[#allocation2 + $0x78] sm:$0xff] %vm243_vm4, %v8542_v28  ;;  %260 = vst.msk [vmem:[#allocation2 + $0x80] sm:$0xff] %vm243_vm4, %v8542_v28  ;;  %v1253_v51 = vsel %vm1129_vm3, %v1248_v42, %v1252_v43  ;;  %v1256_v59 = vor.u32 %v1254_v49, %v1252_v43  ;;  %v8378_v43 = vld [vmem:[%s8601_s29 + $0xb0] sm:$0xff]  }
  0x56   : > { %261 = vst.msk [vmem:[#allocation2 + $0x88] sm:$0xff] %vm243_vm4, %v8542_v28  ;;  %262 = vst.msk [vmem:[#allocation2 + $0x90] sm:$0xff] %vm243_vm4, %v8542_v28  ;;  %v1973_v54 = vsel %vm1944_vm2, %v1970_v27, %v1972_v45  ;;  %v8374_v27 = vld [vmem:[%s8601_s29 + $0xa0] sm:$0xff]   ;;  %v8391_v22 = vld [vmem:[%s8601_s29 + $0x2c] sm:$0xff]  }
  0x57   : > { %263 = vst.msk [vmem:[#allocation2 + $0x98] sm:$0xff] %vm243_vm4, %v8542_v28  ;;  %264 = vst.msk [vmem:[#allocation2 + $0xa0] sm:$0xff] %vm243_vm4, %v8542_v28  ;;  %v1261_v2 = vsel %vm1129_vm3, %v1256_v59, %v1260_v56  ;;  %v1984_v36 = vrot.slane %v8374_v27, 1  ;;  %v8394_v27 = vld [vmem:[%s8601_s29 + $0x34] sm:$0xff]   ;;  %v3258_v30 = vshll.u32 %v8391_v22, 16 }
  0x58   : > { %265 = vst.msk [vmem:[#allocation2 + $0xa8] sm:$0xff] %vm243_vm4, %v8542_v28  ;;  %266 = vst.msk [vmem:[#allocation2 + $0xb0] sm:$0xff] %vm243_vm4, %v8542_v28 }
  0x59   : > { %7902 = vmatmul.mubr.msk.bf16.gmra.mxu1 %vm509_vm1, %v1197_v55  ;;  %267 = vst.msk [vmem:[#allocation2 + $0xb8] sm:$0xff] %vm243_vm4, %v8542_v28  ;;  %268 = vst.msk [vmem:[#allocation2 + $0xc0] sm:$0xff] %vm243_vm4, %v8542_v28  ;;  %v8368_v55 = vld [vmem:[%s8601_s29 + $0x90] sm:$0xff]   ;;  %v1985_v46 = vsel %vm1944_vm2, %v1982_v19, %v1984_v36 }
  0x5a   : > { %7905 = vmatprep.mubr.msk.bf16.mxu1 %vm509_vm1, %v1205_v57  ;;  %269 = vst.msk [vmem:[#allocation2 + $0xc8] sm:$0xff] %vm243_vm4, %v8542_v28  ;;  %271 = vst.msk [vmem:[#allocation2 + $0xd8] sm:$0xff] %vm243_vm4, %v8542_v28  ;;  %v1975_v57 = vsel %vm1944_vm2, %v1972_v45, %v1974_v47  ;;  %v1278_v7 = vshrl.u32 %v8368_v55, 16  ;;  %v1314_v45 = vshll.u32 %v8379_v35, 16 }
  0x5b   : > { %7952 = vmatmul.mubr.msk.bf16.gmra.mxu0 %vm509_vm1, %v1961_v60  ;;  %272 = vst.msk [vmem:[#allocation2 + $0xe0] sm:$0xff] %vm243_vm4, %v8542_v28  ;;  %273 = vst.msk [vmem:[#allocation2 + $0xe8] sm:$0xff] %vm243_vm4, %v8542_v28  ;;  %v1976_v60 = vrot.slane %v8366_v50, 1  ;;  %v8380_v50 = vld [vmem:[%s8601_s29 + $0xc0] ss:$0 sps:$4 sm:$0x11]  }
  0x5c   : > { %7955 = vmatprep.mubr.msk.bf16.mxu0 %vm509_vm1, %v1963_v0  ;;  %274 = vst.msk [vmem:[#allocation2 + $0xf0] sm:$0xff] %vm243_vm4, %v8542_v28  ;;  %275 = vst.msk [vmem:[#allocation2 + $0xf8] sm:$0xff] %vm243_vm4, %v8542_v28  ;;  %v1274_v0 = vshll.u32 %v8368_v55, 16  ;;  %v1988_v55 = vrot.slane %v8378_v43, 1  ;;  %v1322_v61 = vshll.u32 %v8380_v50, 16  ;;  %v8392_v43 = vld [vmem:[%s8601_s29 + $0x2c] sm:$0xff]  }
  0x5d   : > { %276 = vst.msk [vmem:[#allocation2 + $0x100] sm:$0xff] %vm243_vm4, %v8542_v28  ;;  %277 = vst.msk [vmem:[#allocation2 + $0x108] sm:$0xff] %vm243_vm4, %v8542_v28  ;;  %v1979_v13 = vsel %vm1944_vm2, %v1976_v60, %v1978_v1 }
  0x5e   : > { %278 = vst.msk [vmem:[#allocation2 + $0x110] sm:$0xff] %vm243_vm4, %v8542_v28  ;;  %279 = vst.msk [vmem:[#allocation2 + $0x118] sm:$0xff] %vm243_vm4, %v8542_v28  ;;  %v1276_v12 = vrot.slane %v1274_v0, 1  ;;  %v8382_v0 = vld [vmem:[%s8601_s29 + $0xc0] ss:$0 sps:$4 sm:$0x11]  }
  0x5f   : > { %280 = vst.msk [vmem:[#allocation2 + $0x120] sm:$0xff] %vm243_vm4, %v8542_v28  ;;  %281 = vst.msk [vmem:[#allocation2 + $0x128] sm:$0xff] %vm243_vm4, %v8542_v28 }
  0x60   : > { %282 = vst.msk [vmem:[#allocation2 + $0x130] sm:$0xff] %vm243_vm4, %v8542_v28  ;;  %283 = vst.msk [vmem:[#allocation2 + $0x138] sm:$0xff] %vm243_vm4, %v8542_v28 }
  0x61   : > { %7906 = vmatmul.mubr.msk.bf16.gmra.mxu1 %vm509_vm1, %v1213_v11  ;;  %284 = vst.msk [vmem:[#allocation2 + $0x140] sm:$0xff] %vm243_vm4, %v8542_v28  ;;  %285 = vst.msk [vmem:[#allocation2 + $0x148] sm:$0xff] %vm243_vm4, %v8542_v28  ;;  %v1977_v11 = vsel %vm1944_vm2, %v1974_v47, %v1976_v60  ;;  %v8381_v47 = vld [vmem:[%s8601_s29 + $0xb8] sm:$0xff]   ;;  %v1318_v60 = vshrl.u32 %v8379_v35, 16  ;;  %v3262_v35 = vshrl.u32 %v8391_v22, 16 }
  0x62   : > { %7909 = vmatprep.mubr.msk.bf16.mxu1 %vm509_vm1, %v1221_v14  ;;  %286 = vst.msk [vmem:[#allocation2 + $0x150] sm:$0xff] %vm243_vm4, %v8542_v28  ;;  %287 = vst.msk [vmem:[#allocation2 + $0x158] sm:$0xff] %vm243_vm4, %v8542_v28  ;;  %v1272_v14 = vor.u32 %v1270_v3, %v1268_v62  ;;  %v1990_v56 = vrot.slane %v8381_v47, 1  ;;  %v3270_v47 = vshrl.u32 %v8394_v27, 16 }
  0x63   : > { %7956 = vmatmul.mubr.msk.bf16.gmra.mxu0 %vm509_vm1, %v1965_v15  ;;  %288 = vst.msk [vmem:[#allocation2 + $0x160] sm:$0xff] %vm243_vm4, %v8542_v28  ;;  %289 = vst.msk [vmem:[#allocation2 + $0x168] sm:$0xff] %vm243_vm4, %v8542_v28  ;;  %v1280_v15 = vor.u32 %v1278_v7, %v1276_v12  ;;  %v1324_v7 = vrot.slane %v1322_v61, 1 }
  0x64   : > { %7959 = vmatprep.mubr.msk.bf16.mxu0 %vm509_vm1, %v1967_v18  ;;  %290 = vst.msk [vmem:[#allocation2 + $0x170] sm:$0xff] %vm243_vm4, %v8542_v28  ;;  %291 = vst.msk [vmem:[#allocation2 + $0x178] sm:$0xff] %vm243_vm4, %v8542_v28  ;;  %v1290_v18 = vshll.u32 %v8372_v10, 16  ;;  %v1277_v21 = vsel %vm1129_vm3, %v1272_v14, %v1276_v12  ;;  %v1991_v1 = vsel %vm1944_vm2, %v1988_v55, %v1990_v56  ;;  %v1992_v10 = vrot.slane %v8382_v0, 1  ;;  %v8383_v14 = vld [vmem:[%s8601_s29 + $0xc] sm:$0xff]  }
  0x65   : > { %v1285_v23 = vsel %vm1129_vm3, %v1280_v15, %v1284_v16  ;;  %v3242_v15 = vshll.u32 %v8387_v8, 16 }
  0x66   : > { %v1292_v28 = vrot.slane %v1290_v18, 1  ;;  %v1993_v16 = vsel %vm1944_vm2, %v1990_v56, %v1992_v10  ;;  %v3246_v18 = vshrl.u32 %v8387_v8, 16  ;;  %v8406_v10 = vld [vmem:[%s8601_s29 + $0x64] sm:$0xff]  }
  0x68   : > { %v1296_v33 = vor.u32 %v1294_v24, %v1292_v28  ;;  %v1293_v39 = vsel %vm1129_vm3, %v1288_v32, %v1292_v28  ;;  %v8384_v24 = vld [vmem:[%s8601_s29 + $0x14] sm:$0xff]   ;;  %v8388_v28 = vld [vmem:[%s8601_s29 + $0x1c] sm:$0xff]   ;;  %v4776_v32 = vsel %vm582_vm0, %v8848_v40, 0 }
  0x69   : > { %7910 = vmatmul.mubr.msk.bf16.gmra.mxu1 %vm509_vm1, %v1229_v29  ;;  %v1983_v29 = vsel %vm1944_vm2, %v1980_v17, %v1982_v19 }
  0x6a   : > { %7913 = vmatprep.mubr.msk.bf16.mxu1 %vm509_vm1, %v1237_v31  ;;  %v8377_v31 = vld [vmem:[%s8601_s29 + $0xa8] sm:$0xff]  }
  0x6b   : > { %7960 = vmatmul.mubr.msk.bf16.gmra.mxu0 %vm509_vm1, %v1969_v34  ;;  %v1300_v34 = vrot.slane %v1298_v25, 1 }
  0x6c   : > { %7963 = vmatprep.mubr.msk.bf16.mxu0 %vm509_vm1, %v1971_v38  ;;  %v1986_v38 = vrot.slane %v8377_v31, 1 }
  0x6d   : > { %v1301_v42 = vsel %vm1129_vm3, %v1296_v33, %v1300_v34  ;;  %v1304_v52 = vor.u32 %v1302_v41, %v1300_v34 }
  0x6e   : > { %v1987_v49 = vsel %vm1944_vm2, %v1984_v36, %v1986_v38  ;;  %v1989_v63 = vsel %vm1944_vm2, %v1986_v38, %v1988_v55  ;;  %v3266_v36 = vshll.u32 %v8394_v27, 16  ;;  %v8389_v38 = vld [vmem:[%s8601_s29 + $0x24] sm:$0xff]   ;;  %v7494_v55 = vld [vmem:[%s10312_s1 + $0x10] sm:$0x3]  ;;  %v3318_v27 = vshrl.u32 %v8406_v10, 16 }
  0x70   : > { %v3268_v41 = vrot.slane %v3266_v36, 1 }
  0x71   : > { %7914 = vmatmul.mubr.msk.bf16.gmra.mxu1 %vm509_vm1, %v1245_v48  ;;  %v1308_v48 = vrot.slane %v1306_v37, 1  ;;  %v8395_v37 = vld [vmem:[%s8601_s29 + $0x3c] sm:$0xff]  }
  0x72   : > { %7917 = vmatprep.mubr.msk.bf16.mxu1 %vm509_vm1, %v1253_v51  ;;  %v8385_v51 = vld [vmem:[%s8601_s29 + $0xc] sm:$0xff]  }
  0x73   : > { %7964 = vmatmul.mubr.msk.bf16.gmra.mxu0 %vm509_vm1, %v1973_v54  ;;  %v1312_v53 = vor.u32 %v1310_v44, %v1308_v48  ;;  %v1316_v54 = vrot.slane %v1314_v45, 1  ;;  %v3229_v58 = vshll.u32 %v8385_v51, 16  ;;  %v1309_v59 = vsel %vm1129_vm3, %v1304_v52, %v1308_v48  ;;  %v7444_v45 = vld [vmem:[%s10312_s1 + $0xe] sm:$0x3] }
  0x74   : > { %7967 = vmatprep.mubr.msk.bf16.mxu0 %vm509_vm1, %v1975_v57  ;;  %v8386_v57 = vld [vmem:[%s8601_s29 + $0x14] sm:$0xff]   ;;  %v3274_v44 = vshll.u32 %v8395_v37, 16  ;;  %v8399_v52 = vld [vmem:[%s8601_s29 + $0x4c] sm:$0xff]  }
  0x75   : > { %v1317_v62 = vsel %vm1129_vm3, %v1312_v53, %v1316_v54  ;;  %v3231_v3 = vrot.slane %v3229_v58, 1  ;;  %v1320_v6 = vor.u32 %v1318_v60, %v1316_v54  ;;  %v3238_v9 = vshrl.u32 %v8386_v57, 16  ;;  %v8393_v53 = vld [vmem:[%s8601_s29 + $0x34] sm:$0xff]  }
  0x76   : > { %v3272_v54 = vor.u32 %v3270_v47, %v3268_v41  ;;  %v8402_v58 = vld [vmem:[%s8601_s29 + $0x54] sm:$0xff]   ;;  %v3290_v60 = vshll.u32 %v8399_v52, 16  ;;  %v3294_v0 = vshrl.u32 %v8399_v52, 16  ;;  %v8412_v52 = vld [vmem:[%s8601_s29 + $0x7c] sm:$0xff]  }
  0x77   : > { %v1325_v5 = vsel %vm1129_vm3, %v1320_v6, %v1324_v7  ;;  %v9002_v47 = vld [vmem:[%s8601_s29 + $0x94] sm:$0xff]  }
  0x79   : > { %7918 = vmatmul.mubr.msk.bf16.gmra.mxu1 %vm509_vm1, %v1261_v2  ;;  %v3227_v2 = vshrl.u32 %v8385_v51, 16  ;;  %v3276_v51 = vrot.slane %v3274_v44, 1 }
  0x7a   : > { %7921 = vmatprep.mubr.msk.bf16.mxu1 %vm509_vm1, %v1269_v4  ;;  %v3234_v4 = vshll.u32 %v8386_v57, 16 }
  0x7b   : > { %7968 = vmatmul.mubr.msk.bf16.gmra.mxu0 %vm509_vm1, %v1977_v11  ;;  %v3232_v11 = vor.u32 %v3231_v3, %v3227_v2  ;;  %v3277_v61 = vsel %vm1129_vm3, %v3272_v54, %v3276_v51  ;;  %v3292_v2 = vrot.slane %v3290_v60, 1  ;;  %v8403_v3 = vld [vmem:[%s8601_s29 + $0x5c] sm:$0xff]  }
  0x7c   : > { %7971 = vmatprep.mubr.msk.bf16.mxu0 %vm509_vm1, %v1979_v13  ;;  %v3236_v12 = vrot.slane %v3234_v4, 1  ;;  %v8390_v13 = vld [vmem:[%s8601_s29 + $0x24] sm:$0xff]   ;;  %v367_v60 = vld [vmem:[#allocation2 + $0xd8] sm:$0xff] }
  0x7d   : > { %v3250_v19 = vshll.u32 %v8390_v13, 16  ;;  %v3254_v33 = vshrl.u32 %v8390_v13, 16  ;;  %v8397_v4 = vld [vmem:[%s8601_s29 + $0x44] sm:$0xff]   ;;  %v3296_v7 = vor.u32 %v3294_v0, %v3292_v2 }
  0x7e   : > { %v3237_v17 = vsel %vm1129_vm3, %v3232_v11, %v3236_v12  ;;  %v8400_v11 = vld [vmem:[%s8601_s29 + $0x4c] sm:$0xff]  }
  0x81   : > { %7922 = vmatmul.mubr.msk.bf16.gmra.mxu1 %vm509_vm1, %v1277_v21  ;;  %v3244_v21 = vrot.slane %v3242_v15, 1  ;;  %v3310_v15 = vshrl.u32 %v8403_v3, 16 }
  0x82   : > { %7925 = vmatprep.mubr.msk.bf16.mxu1 %vm509_vm1, %v1285_v23  ;;  %v3240_v23 = vor.u32 %v3238_v9, %v3236_v12  ;;  %v3306_v12 = vshll.u32 %v8403_v3, 16 }
  0x83   : > { %7972 = vmatmul.mubr.msk.bf16.gmra.mxu0 %vm509_vm1, %v1981_v26  ;;  %v3248_v25 = vor.u32 %v3246_v18, %v3244_v21  ;;  %v3252_v26 = vrot.slane %v3250_v19, 1  ;;  %v8401_v18 = vld [vmem:[%s8601_s29 + $0x54] sm:$0xff]  }
  0x84   : > { %7975 = vmatprep.mubr.msk.bf16.mxu0 %vm509_vm1, %v1983_v29  ;;  %v4162_v29 = vsel %vm582_vm0, %v8760_v20, 0  ;;  %v3245_v31 = vsel %vm1129_vm3, %v3240_v23, %v3244_v21  ;;  %v3260_v20 = vrot.slane %v3258_v30, 1  ;;  %v3308_v9 = vrot.slane %v3306_v12, 1  ;;  %v8410_v23 = vld [vmem:[%s8601_s29 + $0x74] sm:$0xff]  }
  0x85   : > { %v3253_v34 = vsel %vm1129_vm3, %v3248_v25, %v3252_v26  ;;  %v3256_v40 = vor.u32 %v3254_v33, %v3252_v26  ;;  %v3330_v30 = vshll.u32 %v8410_v23, 16  ;;  %v8405_v33 = vld [vmem:[%s8601_s29 + $0x64] sm:$0xff]  }
  0x86   : > { %v3312_v21 = vor.u32 %v3310_v15, %v3308_v9 }
  0x87   : > { %v3332_v36 = vrot.slane %v3330_v30, 1  ;;  %v346_v30 = vld [vmem:[#allocation2 + $0x30] sm:$0xff] }
  0x89   : > { %7926 = vmatmul.mubr.msk.bf16.gmra.mxu1 %vm509_vm1, %v1293_v39  ;;  %v3264_v39 = vor.u32 %v3262_v35, %v3260_v20 }
  0x8a   : > { %7929 = vmatprep.mubr.msk.bf16.mxu1 %vm509_vm1, %v1301_v42  ;;  %v8398_v42 = vld [vmem:[%s8601_s29 + $0x44] sm:$0xff]  }
  0x8b   : > { %7976 = vmatmul.mubr.msk.bf16.gmra.mxu0 %vm509_vm1, %v1985_v46  ;;  %v3261_v46 = vsel %vm1129_vm3, %v3256_v40, %v3260_v20  ;;  %v3269_v48 = vsel %vm1129_vm3, %v3264_v39, %v3268_v41  ;;  %v3282_v50 = vshll.u32 %v8398_v42, 16  ;;  %v8414_v20 = vld [vmem:[%s8601_s29 + $0x84] sm:$0xff]   ;;  %v3334_v39 = vshrl.u32 %v8410_v23, 16 }
  0x8c   : > { %7979 = vmatprep.mubr.msk.bf16.mxu0 %vm509_vm1, %v1987_v49  ;;  %v3278_v49 = vshrl.u32 %v8395_v37, 16  ;;  %v8408_v37 = vld [vmem:[%s8601_s29 + $0x6c] sm:$0xff]   ;;  %v3350_v54 = vshrl.u32 %v8414_v20, 16 }
  0x8d   : > { %v3284_v57 = vrot.slane %v3282_v50, 1 }
  0x8e   : > { %v3280_v56 = vor.u32 %v3278_v49, %v3276_v51  ;;  %v8409_v49 = vld [vmem:[%s8601_s29 + $0x74] sm:$0xff]  }
  0x91   : > { %7930 = vmatmul.mubr.msk.bf16.gmra.mxu1 %vm509_vm1, %v1309_v59  ;;  %v8396_v59 = vld [vmem:[%s8601_s29 + $0x3c] sm:$0xff]  }
  0x92   : > { %7933 = vmatprep.mubr.msk.bf16.mxu1 %vm509_vm1, %v1317_v62  ;;  %v3286_v62 = vshrl.u32 %v8398_v42, 16 }
  0x93   : > { %7980 = vmatmul.mubr.msk.bf16.gmra.mxu0 %vm509_vm1, %v1989_v63  ;;  %v3285_v63 = vsel %vm1129_vm3, %v3280_v56, %v3284_v57  ;;  %v342_v56 = vld [vmem:[#allocation2 + $0x10] sm:$0xff] }
  0x94   : > { %7983 = vmatprep.mubr.msk.bf16.mxu0 %vm509_vm1, %v1991_v1  ;;  %v3298_v1 = vshll.u32 %v8402_v58, 16  ;;  %v3288_v6 = vor.u32 %v3286_v62, %v3284_v57 }
  0x96   : > { %v3300_v8 = vrot.slane %v3298_v1, 1  ;;  %v3293_v13 = vsel %vm1129_vm3, %v3288_v6, %v3292_v2  ;;  %v9012_v1 = vld [vmem:[%s8601_s29 + $0x9c] sm:$0xff]  }
  0x97   : > { %v343_v6 = vld [vmem:[#allocation2 + $0x18] sm:$0xff]  ;;  %v3370_v23 = vshll.u32 %v9012_v1, 16 }
  0x99   : > { %7934 = vmatmul.mubr.msk.bf16.gmra.mxu1 %vm509_vm1, %v1325_v5  ;;  %v3302_v5 = vshrl.u32 %v8402_v58, 16  ;;  %v3362_v58 = vshll.u32 %v9002_v47, 16 }
  0x9a   : > { %7989 = vmatprep.mubr.msk.bf16.mxu1 %vm509_vm1, %v8383_v14  ;;  %v3301_v14 = vsel %vm1129_vm3, %v3296_v7, %v3300_v8  ;;  %v8413_v7 = vld [vmem:[%s8601_s29 + $0x84] sm:$0xff]  }
  0x9b   : > { %7984 = vmatmul.mubr.msk.bf16.gmra.mxu0 %vm509_vm1, %v1993_v16  ;;  %v3314_v16 = vshll.u32 %v8406_v10, 16  ;;  %v3304_v19 = vor.u32 %v3302_v5, %v3300_v8  ;;  %v3364_v5 = vrot.slane %v3362_v58, 1 }
  0x9c   : > { %8039 = vmatprep.mubr.msk.bf16.mxu0 %vm509_vm1, %v3237_v17  ;;  %v8407_v17 = vld [vmem:[%s8601_s29 + $0x6c] sm:$0xff]  }
  0x9d   : > { %v3316_v22 = vrot.slane %v3314_v16, 1  ;;  %v3322_v25 = vshll.u32 %v8407_v17, 16  ;;  %v3309_v26 = vsel %vm1129_vm3, %v3304_v19, %v3308_v9  ;;  %v370_v9 = vld [vmem:[#allocation2 + $0xf0] sm:$0xff] }
  0xa1   : > { %7990 = vmatmul.mubr.msk.bf16.vlgmr.msra.gmra.mxu1 %vm509_vm1, %v8384_v24  ;;  %v8404_v24 = vld [vmem:[%s8601_s29 + $0x5c] sm:$0xff]  }
  0xa2   : > { %8088 = vmatpush3.bf16.msra.mxu1 %v4162_v29  ;;  %7993 = vmatprep.mubr.msk.bf16.mxu1 %vm509_vm1, %v8388_v28  ;;  %v3317_v28 = vsel %vm1129_vm3, %v3312_v21, %v3316_v22  ;;  %v3326_v29 = vshrl.u32 %v8407_v17, 16  ;;  %v341_v17 = vld [vmem:[#allocation2 + $0x8] sm:$0xff] }
  0xa3   : > { %8040 = vmatmul.mubr.msk.bf16.vlgmr.msra.gmra.mxu0 %vm509_vm1, %v3245_v31  ;;  %8297 = vmatprep.subr.msk.bf16.mxu1 %vm582_vm0, %v7444_v45  ;;  %v3324_v31 = vrot.slane %v3322_v25, 1  ;;  %v8415_v45 = vld [vmem:[%s8601_s29 + $0x8c] sm:$0xff]  }
  0xa4   : > { %8138 = vmatpush3.bf16.msra.mxu0 %v4776_v32  ;;  %8043 = vmatprep.mubr.msk.bf16.mxu0 %vm509_vm1, %v3253_v34  ;;  %v8411_v32 = vld [vmem:[%s8601_s29 + $0x7c] sm:$0xff]   ;;  %v3320_v34 = vor.u32 %v3318_v27, %v3316_v22  ;;  %v3366_v22 = vshrl.u32 %v9002_v47, 16  ;;  %v8417_v47 = vld [vmem:[%s8601_s29 + $0x94] sm:$0xff]  }
  0xa5   : > { %8298 = vmatprep.subr.msk.bf16.mxu0 %vm582_vm0, %v7494_v55  ;;  %v3328_v35 = vor.u32 %v3326_v29, %v3324_v31  ;;  %v3342_v42 = vshrl.u32 %v8411_v32, 16  ;;  %v3354_v55 = vshll.u32 %v8415_v45, 16  ;;  %v368_v29 = vld [vmem:[#allocation2 + $0xe0] sm:$0xff] }
  0xa6   : > { %v3325_v40 = vsel %vm1129_vm3, %v3320_v34, %v3324_v31  ;;  %v3374_v31 = vshrl.u32 %v9012_v1, 16 }
  0xa7   : > { %v3333_v41 = vsel %vm1129_vm3, %v3328_v35, %v3332_v36  ;;  %v3356_v10 = vrot.slane %v3354_v55, 1 }
  0xa9   : > { %7994 = vmatmul.mubr.msk.bf16.gmra.mxu1 %vm509_vm1, %v8389_v38  ;;  %v3338_v38 = vshll.u32 %v8411_v32, 16 }
  0xaa   : > { %7997 = vmatprep.mubr.msk.bf16.mxu1 %vm509_vm1, %v8392_v43  ;;  %v3346_v43 = vshll.u32 %v8414_v20, 16 }
  0xab   : > { %8044 = vmatmul.mubr.msk.bf16.gmra.mxu0 %vm509_vm1, %v3261_v46  ;;  %v3340_v44 = vrot.slane %v3338_v38, 1  ;;  %v3336_v46 = vor.u32 %v3334_v39, %v3332_v36  ;;  %v344_v38 = vld [vmem:[#allocation2 + $0x20] sm:$0xff] }
  0xac   : > { %8047 = vmatprep.mubr.msk.bf16.mxu0 %vm509_vm1, %v3269_v48  ;;  %v366_v48 = vld [vmem:[#allocation2 + $0xd0] sm:$0xff]  ;;  %v3348_v51 = vrot.slane %v3346_v43, 1  ;;  %v3372_v43 = vrot.slane %v3370_v23, 1 }
  0xad   : > { %v3344_v50 = vor.u32 %v3342_v42, %v3340_v44  ;;  %v3341_v57 = vsel %vm1129_vm3, %v3336_v46, %v3340_v44  ;;  %v347_v42 = vld [vmem:[#allocation2 + $0x38] sm:$0xff]  ;;  %v8423_v44 = vld [vmem:[%s8601_s29 + $0xac] sm:$0xff]  }
  0xae   : > { %v3352_v8 = vor.u32 %v3350_v54, %v3348_v51  ;;  %v9044_v54 = vld [vmem:[%s8601_s29 + $0xb4] sm:$0xff]  }
  0xaf   : > { %v3349_v62 = vsel %vm1129_vm3, %v3344_v50, %v3348_v51  ;;  %v8420_v51 = vld [vmem:[%s8601_s29 + $0x9c] sm:$0xff]  }
  0xb1   : > { %7998 = vmatmul.mubr.msk.bf16.gmra.mxu1 %vm509_vm1, %v8393_v53  ;;  %v364_v53 = vld [vmem:[#allocation2 + $0xc0] sm:$0xff] }
  0xb2   : > { %8001 = vmatprep.mubr.msk.bf16.mxu1 %vm509_vm1, %v8396_v59 }
  0xb3   : > { %8048 = vmatmul.mubr.msk.bf16.gmra.mxu0 %vm509_vm1, %v3277_v61  ;;  %v340_v61 = vld [vmem:[#allocation2] sm:$0xff] }
  0xb4   : > { %8051 = vmatprep.mubr.msk.bf16.mxu0 %vm509_vm1, %v3285_v63  ;;  %v3358_v63 = vshrl.u32 %v8415_v45, 16 }
  0xb9   : > { %8002 = vmatmul.mubr.msk.bf16.gmra.mxu1 %vm509_vm1, %v8397_v4  ;;  %v365_v4 = vld [vmem:[#allocation2 + $0xc8] sm:$0xff] }
  0xba   : > { %8005 = vmatprep.mubr.msk.bf16.mxu1 %vm509_vm1, %v8400_v11 }
  0xbb   : > { %8052 = vmatmul.mubr.msk.bf16.gmra.mxu0 %vm509_vm1, %v3293_v13  ;;  %v8416_v13 = vld [vmem:[%s8601_s29 + $0x8c] sm:$0xff]  }
  0xbc   : > { %8055 = vmatprep.mubr.msk.bf16.mxu0 %vm509_vm1, %v3301_v14  ;;  %v9020_v14 = vld [vmem:[%s8601_s29 + $0xa4] sm:$0xff]  }
  0xbd   : > { %v3378_v32 = vshll.u32 %v9020_v14, 16  ;;  %v3382_v1 = vshrl.u32 %v9020_v14, 16 }
  0xc1   : > { %8006 = vmatmul.mubr.msk.bf16.gmra.mxu1 %vm509_vm1, %v8401_v18  ;;  %v3360_v18 = vor.u32 %v3358_v63, %v3356_v10 }
  0xc2   : > { %8009 = vmatprep.mubr.msk.bf16.mxu1 %vm509_vm1, %v8404_v24 }
  0xc3   : > { %8056 = vmatmul.mubr.msk.bf16.gmra.mxu0 %vm509_vm1, %v3309_v26  ;;  %v3357_v26 = vsel %vm1129_vm3, %v3352_v8, %v3356_v10  ;;  %v3365_v35 = vsel %vm1129_vm3, %v3360_v18, %v3364_v5  ;;  %v3390_v8 = vshrl.u32 %v8423_v44, 16  ;;  %v3394_v10 = vshll.u32 %v9044_v54, 16  ;;  %v9060_v18 = vld [vmem:[%s8601_s29 + $0xbc] sm:$0xff]  }
  0xc4   : > { %8059 = vmatprep.mubr.msk.bf16.mxu0 %vm509_vm1, %v3317_v28 }
  0xc9   : > { %8010 = vmatmul.mubr.msk.bf16.gmra.mxu1 %vm509_vm1, %v8405_v33 }
  0xca   : > { %8013 = vmatprep.mubr.msk.bf16.mxu1 %vm509_vm1, %v8408_v37  ;;  %v371_v37 = vld [vmem:[#allocation2 + $0xf8] sm:$0xff] }
  0xcb   : > { %8060 = vmatmul.mubr.msk.bf16.gmra.mxu0 %vm509_vm1, %v3325_v40 }
  0xcc   : > { %8063 = vmatprep.mubr.msk.bf16.mxu0 %vm509_vm1, %v3333_v41  ;;  %v369_v41 = vld [vmem:[#allocation2 + $0xe8] sm:$0xff] }
  0xd1   : > { %v7865_v59 = vpop.f32.mrf.mxu1  ;;  %8014 = vmatmul.mubr.msk.bf16.gmra.mxu1 %vm509_vm1, %v8409_v49 }
  0xd2   : > { %v837_v0 = vadd.f32 %v7865_v59, %v366_v48  ;;  %8017 = vmatprep.mubr.msk.bf16.mxu1 %vm509_vm1, %v8412_v52  ;;  %v7841_v3 = vpop.f32.mrf.mxu0  ;;  %v3368_v48 = vor.u32 %v3366_v22, %v3364_v5  ;;  %v3376_v52 = vor.u32 %v3374_v31, %v3372_v43  ;;  %v374_v59 = vld [vmem:[#allocation2 + $0x110] sm:$0xff]  ;;  %v348_v5 = vld [vmem:[#allocation2 + $0x40] sm:$0xff] }
  0xd3   : > { %v716_v2 = vpop.f32.mrf.mxu1  ;;  %8064 = vmatmul.mubr.msk.bf16.gmra.mxu0 %vm509_vm1, %v3341_v57  ;;  %v813_v12 = vadd.f32 %v7841_v3, %v342_v56 }
  0xd4   : > { %885 = vst.msk [vmem:[#allocation2 + $0xd0] sm:$0xff] %vm243_vm4, %v837_v0  ;;  %v835_v11 = vadd.f32 %v716_v2, %v364_v53  ;;  %8067 = vmatprep.mubr.msk.bf16.mxu0 %vm509_vm1, %v3349_v62  ;;  %v620_v16 = vpop.f32.mrf.mxu0  ;;  %v3380_v53 = vrot.slane %v3378_v32, 1  ;;  %v3373_v0 = vsel %vm1129_vm3, %v3368_v48, %v3372_v43  ;;  %v354_v43 = vld [vmem:[#allocation2 + $0x70] sm:$0xff] }
  0xd5   : > { %v7866_v15 = vpop.f32.mrf.mxu1  ;;  %861 = vst.msk [vmem:[#allocation2 + $0x10] sm:$0xff] %vm243_vm4, %v813_v12  ;;  %v811_v21 = vadd.f32 %v620_v16, %v340_v61  ;;  %v3386_v61 = vshll.u32 %v8423_v44, 16  ;;  %v373_v16 = vld [vmem:[#allocation2 + $0x108] sm:$0xff] }
  0xd6   : > { %883 = vst.msk [vmem:[#allocation2 + $0xc0] sm:$0xff] %vm243_vm4, %v835_v11  ;;  %v838_v19 = vadd.f32 %v7866_v15, %v367_v60  ;;  %v7842_v25 = vpop.f32.mrf.mxu0  ;;  %v345_v60 = vld [vmem:[#allocation2 + $0x28] sm:$0xff]  ;;  %v3384_v22 = vor.u32 %v3382_v1, %v3380_v53 }
  0xd7   : > { %v719_v24 = vpop.f32.mrf.mxu1  ;;  %859 = vst.msk [vmem:[#allocation2] sm:$0xff] %vm243_vm4, %v811_v21  ;;  %v814_v28 = vadd.f32 %v7842_v25, %v343_v6  ;;  %v350_v6 = vld [vmem:[#allocation2 + $0x50] sm:$0xff]  ;;  %v8421_v25 = vld [vmem:[%s8601_s29 + $0xa4] sm:$0xff]  }
  0xd8   : > { %886 = vst.msk [vmem:[#allocation2 + $0xd8] sm:$0xff] %vm243_vm4, %v838_v19  ;;  %v836_v27 = vadd.f32 %v719_v24, %v365_v4  ;;  %v623_v34 = vpop.f32.mrf.mxu0  ;;  %v372_v4 = vld [vmem:[#allocation2 + $0x100] sm:$0xff] }
  0xd9   : > { %v7869_v33 = vpop.f32.mrf.mxu1  ;;  %8018 = vmatmul.mubr.msk.bf16.gmra.mxu1 %vm509_vm1, %v8413_v7  ;;  %862 = vst.msk [vmem:[#allocation2 + $0x18] sm:$0xff] %vm243_vm4, %v814_v28  ;;  %v812_v20 = vadd.f32 %v623_v34, %v341_v17  ;;  %v3381_v7 = vsel %vm1129_vm3, %v3376_v52, %v3380_v53  ;;  %v3388_v17 = vrot.slane %v3386_v61, 1  ;;  %v3396_v28 = vrot.slane %v3394_v10, 1  ;;  %v378_v34 = vld [vmem:[#allocation2 + $0x130] sm:$0xff]  ;;  %v377_v53 = vld [vmem:[#allocation2 + $0x128] sm:$0xff] }
  0xda   : > { %884 = vst.msk [vmem:[#allocation2 + $0xc8] sm:$0xff] %vm243_vm4, %v836_v27  ;;  %v841_v36 = vadd.f32 %v7869_v33, %v370_v9  ;;  %8021 = vmatprep.mubr.msk.bf16.mxu1 %vm509_vm1, %v8416_v13  ;;  %v7845_v39 = vpop.f32.mrf.mxu0  ;;  %v375_v13 = vld [vmem:[#allocation2 + $0x118] sm:$0xff] }
  0xdb   : > { %v732_v40 = vpop.f32.mrf.mxu1  ;;  %8068 = vmatmul.mubr.msk.bf16.gmra.mxu0 %vm509_vm1, %v3357_v26  ;;  %860 = vst.msk [vmem:[#allocation2 + $0x8] sm:$0xff] %vm243_vm4, %v812_v20  ;;  %v817_v46 = vadd.f32 %v7845_v39, %v346_v30  ;;  %v351_v9 = vld [vmem:[#allocation2 + $0x58] sm:$0xff]  ;;  %v8424_v26 = vld [vmem:[%s8601_s29 + $0xac] sm:$0xff]   ;;  %v3392_v27 = vor.u32 %v3390_v8, %v3388_v17  ;;  %v3402_v20 = vshll.u32 %v9060_v18, 16 }
  0xdc   : > { %889 = vst.msk [vmem:[#allocation2 + $0xf0] sm:$0xff] %vm243_vm4, %v841_v36  ;;  %v839_v45 = vadd.f32 %v732_v40, %v368_v29  ;;  %8071 = vmatprep.mubr.msk.bf16.mxu0 %vm509_vm1, %v3365_v35  ;;  %v636_v50 = vpop.f32.mrf.mxu0  ;;  %v9068_v29 = vld [vmem:[%s8601_s29 + $0xc4] sm:$0xff]   ;;  %v3398_v36 = vshrl.u32 %v9044_v54, 16  ;;  %v3389_v40 = vsel %vm1129_vm3, %v3384_v22, %v3388_v17 }
  0xdd   : > { %v7870_v49 = vpop.f32.mrf.mxu1  ;;  %865 = vst.msk [vmem:[#allocation2 + $0x30] sm:$0xff] %vm243_vm4, %v817_v46  ;;  %v815_v56 = vadd.f32 %v636_v50, %v344_v38  ;;  %v349_v35 = vld [vmem:[#allocation2 + $0x48] sm:$0xff]  ;;  %v3397_v44 = vsel %vm1129_vm3, %v3392_v27, %v3396_v28  ;;  %v3410_v46 = vshll.u32 %v9068_v29, 16  ;;  %v352_v50 = vld [vmem:[#allocation2 + $0x60] sm:$0xff] }
  0xde   : > { %887 = vst.msk [vmem:[#allocation2 + $0xe0] sm:$0xff] %vm243_vm4, %v839_v45  ;;  %v842_v55 = vadd.f32 %v7870_v49, %v371_v37  ;;  %v7846_v58 = vpop.f32.mrf.mxu0  ;;  %v3406_v45 = vshrl.u32 %v9060_v18, 16  ;;  %v379_v49 = vld [vmem:[#allocation2 + $0x138] sm:$0xff]  ;;  %v3400_v54 = vor.u32 %v3398_v36, %v3396_v28  ;;  %v353_v8 = vld [vmem:[#allocation2 + $0x68] sm:$0xff]  ;;  %v380_v17 = vld [vmem:[#allocation2 + $0x140] sm:$0xff] }
  0xdf   : > { %v735_v57 = vpop.f32.mrf.mxu1  ;;  %863 = vst.msk [vmem:[#allocation2 + $0x20] sm:$0xff] %vm243_vm4, %v815_v56  ;;  %v818_v63 = vadd.f32 %v7846_v58, %v347_v42  ;;  %v376_v42 = vld [vmem:[#allocation2 + $0x120] sm:$0xff]  ;;  %v8431_v56 = vld [vmem:[%s8601_s29 + $0xcc] ss:$0 sps:$4 sm:$0x11]   ;;  %v358_v18 = vld [vmem:[#allocation2 + $0x90] sm:$0xff] }
  0xe0   : > { %890 = vst.msk [vmem:[#allocation2 + $0xf8] sm:$0xff] %vm243_vm4, %v842_v55  ;;  %v840_v62 = vadd.f32 %v735_v57, %v369_v41  ;;  %v639_v3 = vpop.f32.mrf.mxu0  ;;  %v3404_v55 = vrot.slane %v3402_v20, 1  ;;  %v381_v27 = vld [vmem:[#allocation2 + $0x148] sm:$0xff] }
  0xe1   : > { %v7873_v2 = vpop.f32.mrf.mxu1  ;;  %8022 = vmatmul.mubr.msk.bf16.gmra.mxu1 %vm509_vm1, %v8417_v47  ;;  %866 = vst.msk [vmem:[#allocation2 + $0x38] sm:$0xff] %vm243_vm4, %v818_v63  ;;  %v816_v12 = vadd.f32 %v639_v3, %v345_v60  ;;  %v8425_v63 = vld [vmem:[%s8601_s29 + $0xb4] sm:$0xff]   ;;  %v8429_v20 = vld [vmem:[%s8601_s29 + $0xc4] sm:$0xff]  }
  0xe2   : > { %888 = vst.msk [vmem:[#allocation2 + $0xe8] sm:$0xff] %vm243_vm4, %v840_v62  ;;  %v845_v11 = vadd.f32 %v7873_v2, %v374_v59  ;;  %8025 = vmatprep.mubr.msk.bf16.mxu1 %vm509_vm1, %v8420_v51  ;;  %v7849_v15 = vpop.f32.mrf.mxu0  ;;  %v355_v59 = vld [vmem:[#allocation2 + $0x78] sm:$0xff]  ;;  %v382_v62 = vld [vmem:[#allocation2 + $0x150] sm:$0xff]  ;;  %v3408_v1 = vor.u32 %v3406_v45, %v3404_v55  ;;  %v3412_v2 = vrot.slane %v3410_v46, 1  ;;  %v3405_v10 = vsel %vm1129_vm3, %v3400_v54, %v3404_v55  ;;  %v9117_v45 = vld [vmem:[%s8601_s29 + $0x24] sm:$0xff]  }
  0xe3   : > { %v748_v14 = vpop.f32.mrf.mxu1  ;;  %8072 = vmatmul.mubr.msk.bf16.gmra.mxu0 %vm509_vm1, %v3373_v0  ;;  %864 = vst.msk [vmem:[#allocation2 + $0x28] sm:$0xff] %vm243_vm4, %v816_v12  ;;  %v821_v21 = vadd.f32 %v7849_v15, %v350_v6  ;;  %v8428_v0 = vld [vmem:[%s8601_s29 + $0xbc] sm:$0xff]   ;;  %v9096_v12 = vld [vmem:[%s8601_s29 + $0x14] sm:$0xff]   ;;  %v3418_v15 = vshll.u32 %v8431_v56, 16 }
  0xe4   : > { %893 = vst.msk [vmem:[#allocation2 + $0x110] sm:$0xff] %vm243_vm4, %v845_v11  ;;  %v843_v19 = vadd.f32 %v748_v14, %v372_v4  ;;  %8075 = vmatprep.mubr.msk.bf16.mxu0 %vm509_vm1, %v3381_v7  ;;  %v652_v24 = vpop.f32.mrf.mxu0  ;;  %v8432_v11 = vld [vmem:[%s8601_s29 + $0xc] sm:$0xfe]   ;;  %v3414_v14 = vshrl.u32 %v9068_v29, 16  ;;  %v4041_v29 = vrot.slane %v9096_v12, 1 }
  0xe5   : > { %v7874_v23 = vpop.f32.mrf.mxu1  ;;  %869 = vst.msk [vmem:[#allocation2 + $0x50] sm:$0xff] %vm243_vm4, %v821_v21  ;;  %v819_v31 = vadd.f32 %v652_v24, %v348_v5  ;;  %v4040_v28 = vrot.slane %v8432_v11, 1  ;;  %v8531_v12 = vld [vmem:[%s10312_s1 + $0xe] sm:$0x3] }
  0xe6   : > { %891 = vst.msk [vmem:[#allocation2 + $0x100] sm:$0xff] %vm243_vm4, %v843_v19  ;;  %v846_v30 = vadd.f32 %v7874_v23, %v375_v13  ;;  %v7850_v33 = vpop.f32.mrf.mxu0  ;;  %v3413_v19 = vsel %vm1129_vm3, %v3408_v1, %v3412_v2  ;;  %v383_v23 = vld [vmem:[#allocation2 + $0x158] sm:$0xff] }
  0xe7   : > { %v751_v32 = vpop.f32.mrf.mxu1  ;;  %867 = vst.msk [vmem:[#allocation2 + $0x40] sm:$0xff] %vm243_vm4, %v819_v31  ;;  %v822_v38 = vadd.f32 %v7850_v33, %v351_v9  ;;  %v3416_v33 = vor.u32 %v3414_v14, %v3412_v2  ;;  %v8436_v14 = vld [vmem:[%s8601_s29 + $0x20] sm:$0xff]  }
  0xe8   : > { %894 = vst.msk [vmem:[#allocation2 + $0x118] sm:$0xff] %vm243_vm4, %v846_v30  ;;  %v844_v37 = vadd.f32 %v751_v32, %v373_v16  ;;  %v655_v41 = vpop.f32.mrf.mxu0  ;;  %v359_v32 = vld [vmem:[#allocation2 + $0x98] sm:$0xff] }
  0xe9   : > { %v7877_v39 = vpop.f32.mrf.mxu1  ;;  %8026 = vmatmul.mubr.msk.bf16.gmra.mxu1 %vm509_vm1, %v8421_v25  ;;  %870 = vst.msk [vmem:[#allocation2 + $0x58] sm:$0xff] %vm243_vm4, %v822_v38  ;;  %v820_v48 = vadd.f32 %v655_v41, %v349_v35 }
  0xea   : > { %892 = vst.msk [vmem:[#allocation2 + $0x108] sm:$0xff] %vm243_vm4, %v844_v37  ;;  %v849_v47 = vadd.f32 %v7877_v39, %v378_v34  ;;  %8029 = vmatprep.mubr.msk.bf16.mxu1 %vm509_vm1, %v8424_v26  ;;  %v7853_v52 = vpop.f32.mrf.mxu0  ;;  %v356_v26 = vld [vmem:[#allocation2 + $0x80] sm:$0xff]  ;;  %v3420_v34 = vrot.slane %v3418_v15, 1 }
  0xeb   : > { %v764_v51 = vpop.f32.mrf.mxu1  ;;  %8076 = vmatmul.mubr.msk.bf16.gmra.mxu0 %vm509_vm1, %v3389_v40  ;;  %868 = vst.msk [vmem:[#allocation2 + $0x48] sm:$0xff] %vm243_vm4, %v820_v48  ;;  %v825_v58 = vadd.f32 %v7853_v52, %v354_v43  ;;  %v8434_v37 = vld [vmem:[%s8601_s29 + $0x1c] sm:$0xff]   ;;  %v357_v43 = vld [vmem:[#allocation2 + $0x88] sm:$0xff] }
  0xec   : > { %897 = vst.msk [vmem:[#allocation2 + $0x130] sm:$0xff] %vm243_vm4, %v849_v47  ;;  %v847_v57 = vadd.f32 %v764_v51, %v376_v42  ;;  %8079 = vmatprep.mubr.msk.bf16.mxu0 %vm509_vm1, %v3397_v44  ;;  %v668_v61 = vpop.f32.mrf.mxu0  ;;  %v386_v42 = vld [vmem:[#allocation2 + $0x170] sm:$0xff]  ;;  %v4042_v44 = vsel %vm1944_vm2, %v4040_v28, %v4041_v29  ;;  %v3421_v48 = vsel %vm1129_vm3, %v3416_v33, %v3420_v34  ;;  %v384_v52 = vld [vmem:[#allocation2 + $0x160] sm:$0xff]  ;;  %v4043_v56 = vrot.slane %v8434_v37, 1  ;;  %v959_v33 = vld [vmem:[#allocation2 + $0x18] sm:$0xff] }
  0xed   : > { %v7878_v60 = vpop.f32.mrf.mxu1  ;;  %873 = vst.msk [vmem:[#allocation2 + $0x70] sm:$0xff] %vm243_vm4, %v825_v58  ;;  %v823_v4 = vadd.f32 %v668_v61, %v352_v50  ;;  %v4045_v61 = vrot.slane %v9117_v45, 1  ;;  %v956_v28 = vld [vmem:[#allocation2] sm:$0xff]  ;;  %v8443_v45 = vld [vmem:[%s8601_s29 + $0x38] sm:$0xff]  }
  0xee   : > { %895 = vst.msk [vmem:[#allocation2 + $0x120] sm:$0xff] %vm243_vm4, %v847_v57  ;;  %v850_v3 = vadd.f32 %v7878_v60, %v379_v49  ;;  %v7854_v7 = vpop.f32.mrf.mxu0  ;;  %v8435_v49 = vld [vmem:[%s8601_s29 + $0x18] sm:$0xff]   ;;  %v360_v60 = vld [vmem:[#allocation2 + $0xa0] sm:$0xff] }
  0xef   : > { %v767_v6 = vpop.f32.mrf.mxu1  ;;  %871 = vst.msk [vmem:[#allocation2 + $0x60] sm:$0xff] %vm243_vm4, %v823_v4  ;;  %v826_v5 = vadd.f32 %v7854_v7, %v355_v59  ;;  %v387_v59 = vld [vmem:[#allocation2 + $0x178] sm:$0xff]  ;;  %v8438_v4 = vld [vmem:[%s8601_s29 + $0x2c] sm:$0xff]   ;;  %v4046_v15 = vsel %vm1944_vm2, %v4043_v56, %v4045_v61 }
  0xf0   : > { %898 = vst.msk [vmem:[#allocation2 + $0x138] sm:$0xff] %vm243_vm4, %v850_v3  ;;  %v848_v13 = vadd.f32 %v767_v6, %v377_v53  ;;  %v671_v9 = vpop.f32.mrf.mxu0  ;;  %v362_v53 = vld [vmem:[#allocation2 + $0xb0] sm:$0xff]  ;;  %v363_v3 = vld [vmem:[#allocation2 + $0xb8] sm:$0xff] }
  0xf1   : > { %v7881_v16 = vpop.f32.mrf.mxu1  ;;  %8030 = vmatmul.mubr.msk.bf16.gmra.mxu1 %vm509_vm1, %v8425_v63  ;;  %874 = vst.msk [vmem:[#allocation2 + $0x78] sm:$0xff] %vm243_vm4, %v826_v5  ;;  %v824_v22 = vadd.f32 %v671_v9, %v353_v8  ;;  %v4044_v8 = vsel %vm1944_vm2, %v4041_v29, %v4043_v56  ;;  %v361_v5 = vld [vmem:[#allocation2 + $0xa8] sm:$0xff] }
  0xf2   : > { %896 = vst.msk [vmem:[#allocation2 + $0x128] sm:$0xff] %vm243_vm4, %v848_v13  ;;  %v853_v21 = vadd.f32 %v7881_v16, %v382_v62  ;;  %8033 = vmatprep.mubr.msk.bf16.mxu1 %vm509_vm1, %v8428_v0  ;;  %v7857_v25 = vpop.f32.mrf.mxu0  ;;  %v385_v0 = vld [vmem:[#allocation2 + $0x168] sm:$0xff]  ;;  %v5590_v13 = vsel %vm582_vm0, %v8531_v12, 0  ;;  %v9143_v16 = vld [vmem:[%s8601_s29 + $0x34] sm:$0xff]  }
  0xf3   : > { %v780_v24 = vpop.f32.mrf.mxu1  ;;  %8080 = vmatmul.mubr.msk.bf16.gmra.mxu0 %vm509_vm1, %v3405_v10  ;;  %872 = vst.msk [vmem:[#allocation2 + $0x68] sm:$0xff] %vm243_vm4, %v824_v22  ;;  %v829_v31 = vadd.f32 %v7857_v25, %v358_v18  ;;  %v8439_v18 = vld [vmem:[%s8601_s29 + $0x28] sm:$0xff]  }
  0xf4   : > { %901 = vst.msk [vmem:[#allocation2 + $0x150] sm:$0xff] %vm243_vm4, %v853_v21  ;;  %v851_v30 = vadd.f32 %v780_v24, %v380_v17  ;;  %8083 = vmatprep.mubr.msk.bf16.mxu0 %vm509_vm1, %v3413_v19  ;;  %v684_v36 = vpop.f32.mrf.mxu0  ;;  %v958_v19 = vld [vmem:[#allocation2 + $0x10] sm:$0xff] }
  0xf5   : > { %v7882_v35 = vpop.f32.mrf.mxu1  ;;  %877 = vst.msk [vmem:[#allocation2 + $0x90] sm:$0xff] %vm243_vm4, %v829_v31  ;;  %v827_v40 = vadd.f32 %v684_v36, %v356_v26  ;;  %v4049_v31 = vrot.slane %v9143_v16, 1  ;;  %v8442_v36 = vld [vmem:[%s8601_s29 + $0x3c] sm:$0xff]  }
  0xf6   : > { %899 = vst.msk [vmem:[#allocation2 + $0x140] sm:$0xff] %vm243_vm4, %v851_v30  ;;  %v854_v38 = vadd.f32 %v7882_v35, %v383_v23  ;;  %v7858_v41 = vpop.f32.mrf.mxu0  ;;  %v8532_v23 = vld [vmem:[%s10312_s1 + $0x10] sm:$0x3] }
  0xf7   : > { %v783_v39 = vpop.f32.mrf.mxu1  ;;  %875 = vst.msk [vmem:[#allocation2 + $0x80] sm:$0xff] %vm243_vm4, %v827_v40  ;;  %v830_v47 = vadd.f32 %v7858_v41, %v359_v32  ;;  %v6257_v24 = vsel %vm582_vm0, %v8532_v23, 0  ;;  %v8440_v41 = vld [vmem:[%s8601_s29 + $0x30] sm:$0xff]  }
  0xf8   : > { %902 = vst.msk [vmem:[#allocation2 + $0x158] sm:$0xff] %vm243_vm4, %v854_v38  ;;  %v852_v46 = vadd.f32 %v783_v39, %v381_v27  ;;  %v687_v51 = vpop.f32.mrf.mxu0  ;;  %v4047_v27 = vrot.slane %v8438_v4, 1  ;;  %v957_v38 = vld [vmem:[#allocation2 + $0x8] sm:$0xff] }
  0xf9   : > { %v7885_v50 = vpop.f32.mrf.mxu1  ;;  %8034 = vmatmul.mubr.msk.bf16.gmra.mxu1 %vm509_vm1, %v8429_v20  ;;  %878 = vst.msk [vmem:[#allocation2 + $0x98] sm:$0xff] %vm243_vm4, %v830_v47  ;;  %v828_v55 = vadd.f32 %v687_v51, %v357_v43  ;;  %v9167_v43 = vld [vmem:[%s8601_s29 + $0x44] sm:$0xff]  }
  0xfa   : > { %900 = vst.msk [vmem:[#allocation2 + $0x148] sm:$0xff] %vm243_vm4, %v852_v46  ;;  %v857_v54 = vadd.f32 %v7885_v50, %v386_v42  ;;  %8089 = vmatprep.mubr.msk.bf16.mxu1 %vm509_vm1, %v4042_v44  ;;  %v7861_v58 = vpop.f32.mrf.mxu0  ;;  %v4048_v37 = vsel %vm1944_vm2, %v4045_v61, %v4047_v27  ;;  %v4050_v42 = vsel %vm1944_vm2, %v4047_v27, %v4049_v31  ;;  %v962_v46 = vld [vmem:[#allocation2 + $0x30] sm:$0xff]  ;;  %v4051_v50 = vrot.slane %v8442_v36, 1  ;;  %v8450_v27 = vld [vmem:[%s8601_s29 + $0x5c] sm:$0xff]  }
  0xfb   : > { %v796_v57 = vpop.f32.mrf.mxu1  ;;  %8084 = vmatmul.mubr.msk.bf16.gmra.mxu0 %vm509_vm1, %v3421_v48  ;;  %876 = vst.msk [vmem:[#allocation2 + $0x88] sm:$0xff] %vm243_vm4, %v828_v55  ;;  %v833_v63 = vadd.f32 %v7861_v58, %v362_v53  ;;  %v4053_v55 = vrot.slane %v9167_v43, 1  ;;  %v8446_v58 = vld [vmem:[%s8601_s29 + $0x4c] sm:$0xff]   ;;  %v8451_v43 = vld [vmem:[%s8601_s29 + $0x58] sm:$0xff]  }
  0xfc   : > { %905 = vst.msk [vmem:[#allocation2 + $0x170] sm:$0xff] %vm243_vm4, %v857_v54  ;;  %v855_v62 = vadd.f32 %v796_v57, %v384_v52  ;;  %8139 = vmatprep.mubr.msk.bf16.mxu0 %vm509_vm1, %v8435_v49  ;;  %v700_v2 = vpop.f32.mrf.mxu0  ;;  %v960_v52 = vld [vmem:[#allocation2 + $0x20] sm:$0xff] }
  0xfd   : > { %v7886_v1 = vpop.f32.mrf.mxu1  ;;  %881 = vst.msk [vmem:[#allocation2 + $0xb0] sm:$0xff] %vm243_vm4, %v833_v63  ;;  %v831_v7 = vadd.f32 %v700_v2, %v360_v60  ;;  %v963_v60 = vld [vmem:[#allocation2 + $0x38] sm:$0xff]  ;;  %v8444_v63 = vld [vmem:[%s8601_s29 + $0x40] sm:$0xff]  }
  0xfe   : > { %903 = vst.msk [vmem:[#allocation2 + $0x160] sm:$0xff] %vm243_vm4, %v855_v62  ;;  %v858_v6 = vadd.f32 %v7886_v1, %v387_v59  ;;  %v7862_v11 = vpop.f32.mrf.mxu0 }
  0xff   : > { %v799_v10 = vpop.f32.mrf.mxu1  ;;  %879 = vst.msk [vmem:[#allocation2 + $0xa0] sm:$0xff] %vm243_vm4, %v831_v7  ;;  %v834_v17 = vadd.f32 %v7862_v11, %v363_v3  ;;  %v4052_v3 = vsel %vm1944_vm2, %v4049_v31, %v4051_v50 }
 0x100   : > { %906 = vst.msk [vmem:[#allocation2 + $0x178] sm:$0xff] %vm243_vm4, %v858_v6  ;;  %v856_v9 = vadd.f32 %v799_v10, %v385_v0  ;;  %v703_v22 = vpop.f32.mrf.mxu0  ;;  %v9181_v0 = vld [vmem:[%s8601_s29 + $0x54] sm:$0xff]   ;;  %v961_v6 = vld [vmem:[#allocation2 + $0x28] sm:$0xff]  ;;  %v4054_v10 = vsel %vm1944_vm2, %v4051_v50, %v4053_v55  ;;  %v4059_v50 = vrot.slane %v8450_v27, 1 }
 0x101   : > { %v7891_v21 = vpop.f32.mrf.mxu1  ;;  %8090 = vmatmul.mubr.msk.bf16.vlgmr.msra.gmra.mxu1 %vm509_vm1, %v4044_v8  ;;  %882 = vst.msk [vmem:[#allocation2 + $0xb8] sm:$0xff] %vm243_vm4, %v834_v17  ;;  %v832_v26 = vadd.f32 %v703_v22, %v361_v5  ;;  %v8447_v5 = vld [vmem:[%s8601_s29 + $0x48] sm:$0xff]  }
 0x102   : > { %904 = vst.msk [vmem:[#allocation2 + $0x168] sm:$0xff] %vm243_vm4, %v856_v9  ;;  %v1628_v25 = vadd.f32 %v7891_v21, %v958_v19  ;;  %8188 = vmatpush3.bf16.msra.mxu1 %v5590_v13  ;;  %8093 = vmatprep.mubr.msk.bf16.mxu1 %vm509_vm1, %v4046_v15  ;;  %v966_v13 = vld [vmem:[#allocation2 + $0x50] sm:$0xff]  ;;  %v4055_v19 = vrot.slane %v8446_v58, 1 }
 0x103   : > { %v1435_v29 = vpop.f32.mrf.mxu1  ;;  %v7941_v30 = vpop.f32.mrf.mxu0  ;;  %8140 = vmatmul.mubr.msk.bf16.vlgmr.msra.gmra.mxu0 %vm509_vm1, %v8436_v14  ;;  %880 = vst.msk [vmem:[#allocation2 + $0xa8] sm:$0xff] %vm243_vm4, %v832_v26  ;;  %v8454_v58 = vld [vmem:[%s8601_s29 + $0x6c] sm:$0xff]  }
 0x104   : > { %1676 = vst.msk [vmem:[#allocation2 + $0x10] sm:$0xff] %vm243_vm4, %v1628_v25  ;;  %v1626_v32 = vadd.f32 %v1435_v29, %v956_v28  ;;  %8238 = vmatpush3.bf16.msra.mxu0 %v6257_v24  ;;  %8143 = vmatprep.mubr.msk.bf16.mxu0 %vm509_vm1, %v8439_v18  ;;  %v964_v18 = vld [vmem:[#allocation2 + $0x40] sm:$0xff]  ;;  %v4057_v24 = vrot.slane %v9181_v0, 1  ;;  %v967_v29 = vld [vmem:[#allocation2 + $0x58] sm:$0xff] }
 0x105   : > { %v7892_v34 = vpop.f32.mrf.mxu1  ;;  %v2103_v35 = vpop.f32.mrf.mxu0 }
 0x106   : > { %1674 = vst.msk [vmem:[#allocation2] sm:$0xff] %vm243_vm4, %v1626_v32  ;;  %v1629_v20 = vadd.f32 %v7892_v34, %v959_v33  ;;  %v8448_v32 = vld [vmem:[%s8601_s29 + $0x50] sm:$0xff]  }
 0x107   : > { %v1438_v40 = vpop.f32.mrf.mxu1  ;;  %v7942_v39 = vpop.f32.mrf.mxu0 }
 0x108   : > { %1677 = vst.msk [vmem:[#allocation2 + $0x18] sm:$0xff] %vm243_vm4, %v1629_v20  ;;  %v1627_v44 = vadd.f32 %v1438_v40, %v957_v38  ;;  %v965_v20 = vld [vmem:[#allocation2 + $0x48] sm:$0xff]  ;;  %v4058_v40 = vsel %vm1944_vm2, %v4055_v19, %v4057_v24 }
 0x109   : > { %v7895_v47 = vpop.f32.mrf.mxu1  ;;  %8094 = vmatmul.mubr.msk.bf16.gmra.mxu1 %vm509_vm1, %v4048_v37  ;;  %v2106_v48 = vpop.f32.mrf.mxu0 }
 0x10a   : > { %1675 = vst.msk [vmem:[#allocation2 + $0x8] sm:$0xff] %vm243_vm4, %v1627_v44  ;;  %v1632_v49 = vadd.f32 %v7895_v47, %v962_v46  ;;  %8097 = vmatprep.mubr.msk.bf16.mxu1 %vm509_vm1, %v4050_v42 }
 0x10b   : > { %v1773_v51 = vld [vmem:[#allocation2 + $0x10] sm:$0xff]  ;;  %v1451_v53 = vpop.f32.mrf.mxu1  ;;  %v7945_v54 = vpop.f32.mrf.mxu0  ;;  %8144 = vmatmul.mubr.msk.bf16.gmra.mxu0 %vm509_vm1, %v8440_v41 }
 0x10c   : > { %v2296_v56 = vadd.f32 %v7941_v30, %v1773_v51  ;;  %1680 = vst.msk [vmem:[#allocation2 + $0x30] sm:$0xff] %vm243_vm4, %v1632_v49  ;;  %v1630_v57 = vadd.f32 %v1451_v53, %v960_v52  ;;  %8147 = vmatprep.mubr.msk.bf16.mxu0 %vm509_vm1, %v8443_v45  ;;  %v970_v45 = vld [vmem:[#allocation2 + $0x70] sm:$0xff]  ;;  %v968_v52 = vld [vmem:[#allocation2 + $0x60] sm:$0xff] }
 0x10d   : > { %v1771_v59 = vld [vmem:[#allocation2] sm:$0xff]  ;;  %v7896_v61 = vpop.f32.mrf.mxu1  ;;  %v2119_v62 = vpop.f32.mrf.mxu0 }
 0x10e   : > { %2344 = vst.msk [vmem:[#allocation2 + $0x10] sm:$0xff] %vm243_vm4, %v2296_v56  ;;  %v2294_v1 = vadd.f32 %v2103_v35, %v1771_v59  ;;  %1678 = vst.msk [vmem:[#allocation2 + $0x20] sm:$0xff] %vm243_vm4, %v1630_v57  ;;  %v1633_v2 = vadd.f32 %v7896_v61, %v963_v60  ;;  %v4056_v35 = vsel %vm1944_vm2, %v4053_v55, %v4055_v19  ;;  %v971_v60 = vld [vmem:[#allocation2 + $0x78] sm:$0xff] }
 0x10f   : > { %v1774_v4 = vld [vmem:[#allocation2 + $0x18] sm:$0xff]  ;;  %v1454_v7 = vpop.f32.mrf.mxu1  ;;  %v7946_v8 = vpop.f32.mrf.mxu0 }
 0x110   : > { %2342 = vst.msk [vmem:[#allocation2] sm:$0xff] %vm243_vm4, %v2294_v1  ;;  %v2297_v11 = vadd.f32 %v7942_v39, %v1774_v4  ;;  %1681 = vst.msk [vmem:[#allocation2 + $0x38] sm:$0xff] %vm243_vm4, %v1633_v2  ;;  %v1631_v12 = vadd.f32 %v1454_v7, %v961_v6  ;;  %v9206_v39 = vld [vmem:[%s8601_s29 + $0x64] sm:$0xff]   ;;  %v4060_v2 = vsel %vm1944_vm2, %v4057_v24, %v4059_v50 }
 0x111   : > { %v1772_v14 = vld [vmem:[#allocation2 + $0x8] sm:$0xff]  ;;  %v7899_v15 = vpop.f32.mrf.mxu1  ;;  %8098 = vmatmul.mubr.msk.bf16.gmra.mxu1 %vm509_vm1, %v4052_v3  ;;  %v2122_v16 = vpop.f32.mrf.mxu0  ;;  %v4061_v55 = vrot.slane %v9206_v39, 1 }
 0x112   : > { %2345 = vst.msk [vmem:[#allocation2 + $0x18] sm:$0xff] %vm243_vm4, %v2297_v11  ;;  %v2295_v9 = vadd.f32 %v2106_v48, %v1772_v14  ;;  %1679 = vst.msk [vmem:[#allocation2 + $0x28] sm:$0xff] %vm243_vm4, %v1631_v12  ;;  %v1636_v17 = vadd.f32 %v7899_v15, %v966_v13  ;;  %8101 = vmatprep.mubr.msk.bf16.mxu1 %vm509_vm1, %v4054_v10  ;;  %v969_v4 = vld [vmem:[#allocation2 + $0x68] sm:$0xff]  ;;  %v9227_v10 = vld [vmem:[%s8601_s29 + $0x74] sm:$0xff]  }
 0x113   : > { %v1777_v21 = vld [vmem:[#allocation2 + $0x30] sm:$0xff]  ;;  %v1467_v22 = vpop.f32.mrf.mxu1  ;;  %v7949_v23 = vpop.f32.mrf.mxu0  ;;  %8148 = vmatmul.mubr.msk.bf16.gmra.mxu0 %vm509_vm1, %v8444_v63  ;;  %v8452_v63 = vld [vmem:[%s8601_s29 + $0x60] sm:$0xff]   ;;  %v8455_v13 = vld [vmem:[%s8601_s29 + $0x68] sm:$0xff]   ;;  %v4065_v24 = vrot.slane %v9227_v10, 1 }
 0x114   : > { %2343 = vst.msk [vmem:[#allocation2 + $0x8] sm:$0xff] %vm243_vm4, %v2295_v9  ;;  %v2300_v25 = vadd.f32 %v7945_v54, %v1777_v21  ;;  %1684 = vst.msk [vmem:[#allocation2 + $0x50] sm:$0xff] %vm243_vm4, %v1636_v17  ;;  %v1634_v26 = vadd.f32 %v1467_v22, %v964_v18  ;;  %8151 = vmatprep.mubr.msk.bf16.mxu0 %vm509_vm1, %v8447_v5  ;;  %v974_v14 = vld [vmem:[#allocation2 + $0x90] sm:$0xff]  ;;  %v4063_v18 = vrot.slane %v8454_v58, 1  ;;  %v972_v21 = vld [vmem:[#allocation2 + $0x80] sm:$0xff] }
 0x115   : > { %v1775_v28 = vld [vmem:[#allocation2 + $0x20] sm:$0xff]  ;;  %v7900_v30 = vpop.f32.mrf.mxu1  ;;  %v2135_v31 = vpop.f32.mrf.mxu0  ;;  %v9269_v10 = vld [vmem:[%s8601_s29 + $0x94] sm:$0xff]  }
 0x116   : > { %2348 = vst.msk [vmem:[#allocation2 + $0x30] sm:$0xff] %vm243_vm4, %v2300_v25  ;;  %v2298_v33 = vadd.f32 %v2119_v62, %v1775_v28  ;;  %1682 = vst.msk [vmem:[#allocation2 + $0x40] sm:$0xff] %vm243_vm4, %v1634_v26  ;;  %v1637_v34 = vadd.f32 %v7900_v30, %v967_v29  ;;  %v975_v28 = vld [vmem:[#allocation2 + $0x98] sm:$0xff]  ;;  %v9248_v39 = vld [vmem:[%s8601_s29 + $0x84] sm:$0xff]  }
 0x117   : > { %v1778_v36 = vld [vmem:[#allocation2 + $0x38] sm:$0xff]  ;;  %v1470_v37 = vpop.f32.mrf.mxu1  ;;  %v7950_v38 = vpop.f32.mrf.mxu0 }
 0x118   : > { %2346 = vst.msk [vmem:[#allocation2 + $0x20] sm:$0xff] %vm243_vm4, %v2298_v33  ;;  %v2301_v41 = vadd.f32 %v7946_v8, %v1778_v36  ;;  %1685 = vst.msk [vmem:[#allocation2 + $0x58] sm:$0xff] %vm243_vm4, %v1637_v34  ;;  %v1635_v42 = vadd.f32 %v1470_v37, %v965_v20  ;;  %v4062_v8 = vsel %vm1944_vm2, %v4059_v50, %v4061_v55  ;;  %v8456_v34 = vld [vmem:[%s8601_s29 + $0x70] sm:$0xff]   ;;  %v973_v20 = vld [vmem:[#allocation2 + $0x88] sm:$0xff] }
 0x119   : > { %v1776_v44 = vld [vmem:[#allocation2 + $0x28] sm:$0xff]  ;;  %v7903_v46 = vpop.f32.mrf.mxu1  ;;  %8102 = vmatmul.mubr.msk.bf16.gmra.mxu1 %vm509_vm1, %v4056_v35  ;;  %v2138_v47 = vpop.f32.mrf.mxu0  ;;  %v4064_v33 = vsel %vm1944_vm2, %v4061_v55, %v4063_v18  ;;  %v8458_v35 = vld [vmem:[%s8601_s29 + $0x7c] sm:$0xff]   ;;  %v4069_v55 = vrot.slane %v9248_v39, 1 }
 0x11a   : > { %2349 = vst.msk [vmem:[#allocation2 + $0x38] sm:$0xff] %vm243_vm4, %v2301_v41  ;;  %v2299_v48 = vadd.f32 %v2122_v16, %v1776_v44  ;;  %1683 = vst.msk [vmem:[#allocation2 + $0x48] sm:$0xff] %vm243_vm4, %v1635_v42  ;;  %v1640_v49 = vadd.f32 %v7903_v46, %v970_v45  ;;  %8105 = vmatprep.mubr.msk.bf16.mxu1 %vm509_vm1, %v4058_v40  ;;  %v4066_v40 = vsel %vm1944_vm2, %v4063_v18, %v4065_v24  ;;  %v978_v45 = vld [vmem:[#allocation2 + $0xb0] sm:$0xff]  ;;  %v9290_v39 = vld [vmem:[%s8601_s29 + $0xa4] sm:$0xff]  }
 0x11b   : > { %v1781_v51 = vld [vmem:[#allocation2 + $0x50] sm:$0xff]  ;;  %v1483_v53 = vpop.f32.mrf.mxu1  ;;  %v7953_v54 = vpop.f32.mrf.mxu0  ;;  %8152 = vmatmul.mubr.msk.bf16.gmra.mxu0 %vm509_vm1, %v8448_v32  ;;  %v4067_v50 = vrot.slane %v8458_v35, 1  ;;  %v8466_v35 = vld [vmem:[%s8601_s29 + $0x9c] sm:$0xff]  }
 0x11c   : > { %2347 = vst.msk [vmem:[#allocation2 + $0x28] sm:$0xff] %vm243_vm4, %v2299_v48  ;;  %v2304_v56 = vadd.f32 %v7949_v23, %v1781_v51  ;;  %1688 = vst.msk [vmem:[#allocation2 + $0x70] sm:$0xff] %vm243_vm4, %v1640_v49  ;;  %v1638_v57 = vadd.f32 %v1483_v53, %v968_v52  ;;  %8155 = vmatprep.mubr.msk.bf16.mxu0 %vm509_vm1, %v8451_v43  ;;  %v8459_v43 = vld [vmem:[%s8601_s29 + $0x78] sm:$0xff]   ;;  %v976_v52 = vld [vmem:[#allocation2 + $0xa0] sm:$0xff] }
 0x11d   : > { %v1779_v59 = vld [vmem:[#allocation2 + $0x40] sm:$0xff]  ;;  %v7904_v61 = vpop.f32.mrf.mxu1  ;;  %v2151_v62 = vpop.f32.mrf.mxu0 }
 0x11e   : > { %2352 = vst.msk [vmem:[#allocation2 + $0x50] sm:$0xff] %vm243_vm4, %v2304_v56  ;;  %v2302_v0 = vadd.f32 %v2135_v31, %v1779_v59  ;;  %1686 = vst.msk [vmem:[#allocation2 + $0x60] sm:$0xff] %vm243_vm4, %v1638_v57  ;;  %v1641_v1 = vadd.f32 %v7904_v61, %v971_v60  ;;  %v979_v59 = vld [vmem:[#allocation2 + $0xb8] sm:$0xff] }
 0x11f   : > { %v1782_v3 = vld [vmem:[#allocation2 + $0x58] sm:$0xff]  ;;  %v1486_v6 = vpop.f32.mrf.mxu1  ;;  %v7954_v7 = vpop.f32.mrf.mxu0 }
 0x120   : > { %2350 = vst.msk [vmem:[#allocation2 + $0x40] sm:$0xff] %vm243_vm4, %v2302_v0  ;;  %v2305_v11 = vadd.f32 %v7950_v38, %v1782_v3  ;;  %1689 = vst.msk [vmem:[#allocation2 + $0x78] sm:$0xff] %vm243_vm4, %v1641_v1  ;;  %v1639_v12 = vadd.f32 %v1486_v6, %v969_v4  ;;  %v4068_v0 = vsel %vm1944_vm2, %v4065_v24, %v4067_v50  ;;  %v8460_v1 = vld [vmem:[%s8601_s29 + $0x80] sm:$0xff]   ;;  %v977_v4 = vld [vmem:[#allocation2 + $0xa8] sm:$0xff]  ;;  %v4073_v24 = vrot.slane %v9269_v10, 1 }
 0x121   : > { %v1780_v5 = vld [vmem:[#allocation2 + $0x48] sm:$0xff]  ;;  %v7907_v15 = vpop.f32.mrf.mxu1  ;;  %8106 = vmatmul.mubr.msk.bf16.gmra.mxu1 %vm509_vm1, %v4060_v2  ;;  %v2154_v16 = vpop.f32.mrf.mxu0  ;;  %v9311_v10 = vld [vmem:[%s8601_s29 + $0xb4] sm:$0xff]  }
 0x122   : > { %2353 = vst.msk [vmem:[#allocation2 + $0x58] sm:$0xff] %vm243_vm4, %v2305_v11  ;;  %v2303_v9 = vadd.f32 %v2138_v47, %v1780_v5  ;;  %1687 = vst.msk [vmem:[#allocation2 + $0x68] sm:$0xff] %vm243_vm4, %v1639_v12  ;;  %v1644_v17 = vadd.f32 %v7907_v15, %v974_v14  ;;  %8109 = vmatprep.mubr.msk.bf16.mxu1 %vm509_vm1, %v4062_v8  ;;  %v8462_v2 = vld [vmem:[%s8601_s29 + $0x8c] sm:$0xff]   ;;  %v4070_v8 = vsel %vm1944_vm2, %v4067_v50, %v4069_v55 }
 0x123   : > { %v1785_v19 = vld [vmem:[#allocation2 + $0x70] sm:$0xff]  ;;  %v1499_v22 = vpop.f32.mrf.mxu1  ;;  %v7957_v23 = vpop.f32.mrf.mxu0  ;;  %8156 = vmatmul.mubr.msk.bf16.gmra.mxu0 %vm509_vm1, %v8452_v63  ;;  %v4071_v18 = vrot.slane %v8462_v2, 1  ;;  %v4075_v50 = vrot.slane %v8466_v35, 1  ;;  %v8474_v35 = vld [vmem:[%s8601_s29 + $0xbc] sm:$0xff]  }
 0x124   : > { %2351 = vst.msk [vmem:[#allocation2 + $0x48] sm:$0xff] %vm243_vm4, %v2303_v9  ;;  %v2308_v25 = vadd.f32 %v7953_v54, %v1785_v19  ;;  %1692 = vst.msk [vmem:[#allocation2 + $0x90] sm:$0xff] %vm243_vm4, %v1644_v17  ;;  %v1642_v26 = vadd.f32 %v1499_v22, %v972_v21  ;;  %8159 = vmatprep.mubr.msk.bf16.mxu0 %vm509_vm1, %v8455_v13  ;;  %v8463_v13 = vld [vmem:[%s8601_s29 + $0x88] sm:$0xff]   ;;  %v982_v14 = vld [vmem:[#allocation2 + $0xd0] sm:$0xff] }
 0x125   : > { %v1783_v27 = vld [vmem:[#allocation2 + $0x60] sm:$0xff]  ;;  %v7908_v29 = vpop.f32.mrf.mxu1  ;;  %v2167_v30 = vpop.f32.mrf.mxu0  ;;  %v8470_v2 = vld [vmem:[%s8601_s29 + $0xac] sm:$0xff]  }
 0x126   : > { %2356 = vst.msk [vmem:[#allocation2 + $0x70] sm:$0xff] %vm243_vm4, %v2308_v25  ;;  %v2306_v31 = vadd.f32 %v2151_v62, %v1783_v27  ;;  %1690 = vst.msk [vmem:[#allocation2 + $0x80] sm:$0xff] %vm243_vm4, %v1642_v26  ;;  %v1645_v32 = vadd.f32 %v7908_v29, %v975_v28  ;;  %v980_v21 = vld [vmem:[#allocation2 + $0xc0] sm:$0xff]  ;;  %v983_v28 = vld [vmem:[#allocation2 + $0xd8] sm:$0xff] }
 0x127   : > { %v1786_v36 = vld [vmem:[#allocation2 + $0x78] sm:$0xff]  ;;  %v1502_v37 = vpop.f32.mrf.mxu1  ;;  %v7958_v38 = vpop.f32.mrf.mxu0 }
 0x128   : > { %2354 = vst.msk [vmem:[#allocation2 + $0x60] sm:$0xff] %vm243_vm4, %v2306_v31  ;;  %v2309_v41 = vadd.f32 %v7954_v7, %v1786_v36  ;;  %1693 = vst.msk [vmem:[#allocation2 + $0x98] sm:$0xff] %vm243_vm4, %v1645_v32  ;;  %v1643_v42 = vadd.f32 %v1502_v37, %v973_v20  ;;  %v981_v20 = vld [vmem:[#allocation2 + $0xc8] sm:$0xff] }
 0x129   : > { %v1784_v44 = vld [vmem:[#allocation2 + $0x68] sm:$0xff]  ;;  %v7911_v46 = vpop.f32.mrf.mxu1  ;;  %8110 = vmatmul.mubr.msk.bf16.gmra.mxu1 %vm509_vm1, %v4064_v33  ;;  %v2170_v47 = vpop.f32.mrf.mxu0  ;;  %v4072_v33 = vsel %vm1944_vm2, %v4069_v55, %v4071_v18  ;;  %v4077_v55 = vrot.slane %v9290_v39, 1 }
 0x12a   : > { %2357 = vst.msk [vmem:[#allocation2 + $0x78] sm:$0xff] %vm243_vm4, %v2309_v41  ;;  %v2307_v48 = vadd.f32 %v2154_v16, %v1784_v44  ;;  %1691 = vst.msk [vmem:[#allocation2 + $0x88] sm:$0xff] %vm243_vm4, %v1643_v42  ;;  %v1648_v49 = vadd.f32 %v7911_v46, %v978_v45  ;;  %8113 = vmatprep.mubr.msk.bf16.mxu1 %vm509_vm1, %v4066_v40  ;;  %v4074_v40 = vsel %vm1944_vm2, %v4071_v18, %v4073_v24  ;;  %v986_v45 = vld [vmem:[#allocation2 + $0xf0] sm:$0xff] }
 0x12b   : > { %v1789_v51 = vld [vmem:[#allocation2 + $0x90] sm:$0xff]  ;;  %v1515_v53 = vpop.f32.mrf.mxu1  ;;  %v7961_v54 = vpop.f32.mrf.mxu0  ;;  %8160 = vmatmul.mubr.msk.bf16.gmra.mxu0 %vm509_vm1, %v8456_v34  ;;  %v4079_v18 = vrot.slane %v8470_v2, 1 }
 0x12c   : > { %2355 = vst.msk [vmem:[#allocation2 + $0x68] sm:$0xff] %vm243_vm4, %v2307_v48  ;;  %v2312_v56 = vadd.f32 %v7957_v23, %v1789_v51  ;;  %1696 = vst.msk [vmem:[#allocation2 + $0xb0] sm:$0xff] %vm243_vm4, %v1648_v49  ;;  %v1646_v57 = vadd.f32 %v1515_v53, %v976_v52  ;;  %8163 = vmatprep.mubr.msk.bf16.mxu0 %vm509_vm1, %v8459_v43  ;;  %v8464_v34 = vld [vmem:[%s8601_s29 + $0x90] sm:$0xff]   ;;  %v8467_v43 = vld [vmem:[%s8601_s29 + $0x98] sm:$0xff]  }
 0x12d   : > { %v1787_v58 = vld [vmem:[#allocation2 + $0x80] sm:$0xff]  ;;  %v7912_v60 = vpop.f32.mrf.mxu1  ;;  %v2183_v61 = vpop.f32.mrf.mxu0 }
 0x12e   : > { %2360 = vst.msk [vmem:[#allocation2 + $0x90] sm:$0xff] %vm243_vm4, %v2312_v56  ;;  %v2310_v62 = vadd.f32 %v2167_v30, %v1787_v58  ;;  %1694 = vst.msk [vmem:[#allocation2 + $0xa0] sm:$0xff] %vm243_vm4, %v1646_v57  ;;  %v1649_v63 = vadd.f32 %v7912_v60, %v979_v59  ;;  %v984_v52 = vld [vmem:[#allocation2 + $0xe0] sm:$0xff]  ;;  %v987_v59 = vld [vmem:[#allocation2 + $0xf8] sm:$0xff] }
 0x12f   : > { %v1790_v3 = vld [vmem:[#allocation2 + $0x98] sm:$0xff]  ;;  %v1518_v6 = vpop.f32.mrf.mxu1  ;;  %v7962_v7 = vpop.f32.mrf.mxu0 }
 0x130   : > { %2358 = vst.msk [vmem:[#allocation2 + $0x80] sm:$0xff] %vm243_vm4, %v2310_v62  ;;  %v2313_v11 = vadd.f32 %v7958_v38, %v1790_v3  ;;  %1697 = vst.msk [vmem:[#allocation2 + $0xb8] sm:$0xff] %vm243_vm4, %v1649_v63  ;;  %v1647_v12 = vadd.f32 %v1518_v6, %v977_v4  ;;  %v985_v4 = vld [vmem:[#allocation2 + $0xe8] sm:$0xff] }
 0x131   : > { %v1788_v5 = vld [vmem:[#allocation2 + $0x88] sm:$0xff]  ;;  %v7915_v15 = vpop.f32.mrf.mxu1  ;;  %8114 = vmatmul.mubr.msk.bf16.gmra.mxu1 %vm509_vm1, %v4068_v0  ;;  %v2186_v16 = vpop.f32.mrf.mxu0  ;;  %v4076_v0 = vsel %vm1944_vm2, %v4073_v24, %v4075_v50  ;;  %v4081_v24 = vrot.slane %v9311_v10, 1 }
 0x132   : > { %2361 = vst.msk [vmem:[#allocation2 + $0x98] sm:$0xff] %vm243_vm4, %v2313_v11  ;;  %v2311_v9 = vadd.f32 %v2170_v47, %v1788_v5  ;;  %1695 = vst.msk [vmem:[#allocation2 + $0xa8] sm:$0xff] %vm243_vm4, %v1647_v12  ;;  %v1652_v17 = vadd.f32 %v7915_v15, %v982_v14  ;;  %8117 = vmatprep.mubr.msk.bf16.mxu1 %vm509_vm1, %v4070_v8  ;;  %v4078_v8 = vsel %vm1944_vm2, %v4075_v50, %v4077_v55  ;;  %v990_v14 = vld [vmem:[#allocation2 + $0x110] sm:$0xff] }
 0x133   : > { %v1793_v19 = vld [vmem:[#allocation2 + $0xb0] sm:$0xff]  ;;  %v1531_v22 = vpop.f32.mrf.mxu1  ;;  %v7965_v23 = vpop.f32.mrf.mxu0  ;;  %8164 = vmatmul.mubr.msk.bf16.gmra.mxu0 %vm509_vm1, %v8460_v1  ;;  %v8468_v1 = vld [vmem:[%s8601_s29 + $0xa0] sm:$0xff]   ;;  %v4082_v39 = vsel %vm1944_vm2, %v4079_v18, %v4081_v24 }
 0x134   : > { %2359 = vst.msk [vmem:[#allocation2 + $0x88] sm:$0xff] %vm243_vm4, %v2311_v9  ;;  %v2316_v25 = vadd.f32 %v7961_v54, %v1793_v19  ;;  %1700 = vst.msk [vmem:[#allocation2 + $0xd0] sm:$0xff] %vm243_vm4, %v1652_v17  ;;  %v1650_v26 = vadd.f32 %v1531_v22, %v980_v21  ;;  %8167 = vmatprep.mubr.msk.bf16.mxu0 %vm509_vm1, %v8463_v13  ;;  %v8471_v13 = vld [vmem:[%s8601_s29 + $0xa8] sm:$0xff]   ;;  %v988_v21 = vld [vmem:[#allocation2 + $0x100] sm:$0xff] }
 0x135   : > { %v1791_v27 = vld [vmem:[#allocation2 + $0xa0] sm:$0xff]  ;;  %v7916_v29 = vpop.f32.mrf.mxu1  ;;  %v2199_v30 = vpop.f32.mrf.mxu0 }
 0x136   : > { %2364 = vst.msk [vmem:[#allocation2 + $0xb0] sm:$0xff] %vm243_vm4, %v2316_v25  ;;  %v2314_v31 = vadd.f32 %v2183_v61, %v1791_v27  ;;  %1698 = vst.msk [vmem:[#allocation2 + $0xc0] sm:$0xff] %vm243_vm4, %v1650_v26  ;;  %v1653_v32 = vadd.f32 %v7916_v29, %v983_v28  ;;  %v991_v28 = vld [vmem:[#allocation2 + $0x118] sm:$0xff] }
 0x137   : > { %v1794_v36 = vld [vmem:[#allocation2 + $0xb8] sm:$0xff]  ;;  %v1534_v37 = vpop.f32.mrf.mxu1  ;;  %v7966_v38 = vpop.f32.mrf.mxu0 }
 0x138   : > { %2362 = vst.msk [vmem:[#allocation2 + $0xa0] sm:$0xff] %vm243_vm4, %v2314_v31  ;;  %v2317_v41 = vadd.f32 %v7962_v7, %v1794_v36  ;;  %1701 = vst.msk [vmem:[#allocation2 + $0xd8] sm:$0xff] %vm243_vm4, %v1653_v32  ;;  %v1651_v42 = vadd.f32 %v1534_v37, %v981_v20  ;;  %v9331_v36 = vld [vmem:[%s8601_s29 + $0xc4] sm:$0xff]  }
 0x139   : > { %v1792_v44 = vld [vmem:[#allocation2 + $0xa8] sm:$0xff]  ;;  %v7919_v46 = vpop.f32.mrf.mxu1  ;;  %8118 = vmatmul.mubr.msk.bf16.gmra.mxu1 %vm509_vm1, %v4072_v33  ;;  %v2202_v47 = vpop.f32.mrf.mxu0  ;;  %v4080_v33 = vsel %vm1944_vm2, %v4077_v55, %v4079_v18  ;;  %v8484_v18 = vld [vmem:[%s8601_s29 + $0x18] sm:$0xfe]  }
 0x13a   : > { %2365 = vst.msk [vmem:[#allocation2 + $0xb8] sm:$0xff] %vm243_vm4, %v2317_v41  ;;  %v2315_v48 = vadd.f32 %v2186_v16, %v1792_v44  ;;  %1699 = vst.msk [vmem:[#allocation2 + $0xc8] sm:$0xff] %vm243_vm4, %v1651_v42  ;;  %v1656_v49 = vadd.f32 %v7919_v46, %v986_v45  ;;  %8121 = vmatprep.mubr.msk.bf16.mxu1 %vm509_vm1, %v4074_v40  ;;  %v989_v37 = vld [vmem:[#allocation2 + $0x108] sm:$0xff]  ;;  %v9335_v41 = vld [vmem:[%s8601_s29 + $0x18] sm:$0xff]  }
 0x13b   : > { %v1797_v51 = vld [vmem:[#allocation2 + $0xd0] sm:$0xff]  ;;  %v1547_v53 = vpop.f32.mrf.mxu1  ;;  %v7969_v54 = vpop.f32.mrf.mxu0  ;;  %8168 = vmatmul.mubr.msk.bf16.gmra.mxu0 %vm509_vm1, %v8464_v34  ;;  %v8475_v44 = vld [vmem:[%s8601_s29 + $0xb8] sm:$0xff]  }
 0x13c   : > { %2363 = vst.msk [vmem:[#allocation2 + $0xa8] sm:$0xff] %vm243_vm4, %v2315_v48  ;;  %v2320_v56 = vadd.f32 %v7965_v23, %v1797_v51  ;;  %1704 = vst.msk [vmem:[#allocation2 + $0xf0] sm:$0xff] %vm243_vm4, %v1656_v49  ;;  %v1654_v57 = vadd.f32 %v1547_v53, %v984_v52  ;;  %8171 = vmatprep.mubr.msk.bf16.mxu0 %vm509_vm1, %v8467_v43  ;;  %v8472_v34 = vld [vmem:[%s8601_s29 + $0xb0] sm:$0xff]   ;;  %v4083_v51 = vrot.slane %v8474_v35, 1  ;;  %v992_v53 = vld [vmem:[#allocation2 + $0x120] sm:$0xff] }
 0x13d   : > { %v1795_v58 = vld [vmem:[#allocation2 + $0xc0] sm:$0xff]  ;;  %v7920_v60 = vpop.f32.mrf.mxu1  ;;  %v2215_v61 = vpop.f32.mrf.mxu0  ;;  %v994_v46 = vld [vmem:[#allocation2 + $0x130] sm:$0xff] }
 0x13e   : > { %2368 = vst.msk [vmem:[#allocation2 + $0xd0] sm:$0xff] %vm243_vm4, %v2320_v56  ;;  %v2318_v62 = vadd.f32 %v2199_v30, %v1795_v58  ;;  %1702 = vst.msk [vmem:[#allocation2 + $0xe0] sm:$0xff] %vm243_vm4, %v1654_v57  ;;  %v1657_v63 = vadd.f32 %v7920_v60, %v987_v59  ;;  %v4085_v56 = vrot.slane %v9331_v36, 1  ;;  %v9347_v57 = vld [vmem:[%s8601_s29 + $0x20] sm:$0xff]   ;;  %v5324_v58 = vshll.u32 %v9335_v41, 16 }
 0x13f   : > { %v1798_v3 = vld [vmem:[#allocation2 + $0xd8] sm:$0xff]  ;;  %v1550_v6 = vpop.f32.mrf.mxu1  ;;  %v7970_v7 = vpop.f32.mrf.mxu0 }
 0x140   : > { %2366 = vst.msk [vmem:[#allocation2 + $0xc0] sm:$0xff] %vm243_vm4, %v2318_v62  ;;  %v2321_v11 = vadd.f32 %v7966_v38, %v1798_v3  ;;  %1705 = vst.msk [vmem:[#allocation2 + $0xf8] sm:$0xff] %vm243_vm4, %v1657_v63  ;;  %v1655_v12 = vadd.f32 %v1550_v6, %v985_v4  ;;  %v995_v62 = vld [vmem:[#allocation2 + $0x138] sm:$0xff]  ;;  %v4084_v3 = vsel %vm1944_vm2, %v4081_v24, %v4083_v51  ;;  %v8478_v4 = vld [vmem:[%s8601_s29 + $0xcc] ss:$0 sps:$4 sm:$0x11]  }
 0x141   : > { %v1796_v5 = vld [vmem:[#allocation2 + $0xc8] sm:$0xff]  ;;  %v7923_v15 = vpop.f32.mrf.mxu1  ;;  %8122 = vmatmul.mubr.msk.bf16.gmra.mxu1 %vm509_vm1, %v4076_v0  ;;  %v2218_v16 = vpop.f32.mrf.mxu0  ;;  %v9372_v24 = vld [vmem:[%s8601_s29 + $0x20] sm:$0xff]  }
 0x142   : > { %2369 = vst.msk [vmem:[#allocation2 + $0xd8] sm:$0xff] %vm243_vm4, %v2321_v11  ;;  %v2319_v9 = vadd.f32 %v2202_v47, %v1796_v5  ;;  %1703 = vst.msk [vmem:[#allocation2 + $0xe8] sm:$0xff] %vm243_vm4, %v1655_v12  ;;  %v1660_v17 = vadd.f32 %v7923_v15, %v990_v14  ;;  %8125 = vmatprep.mubr.msk.bf16.mxu1 %vm509_vm1, %v4078_v8  ;;  %v8476_v11 = vld [vmem:[%s8601_s29 + $0xc0] sm:$0xff]   ;;  %v4086_v12 = vsel %vm1944_vm2, %v4083_v51, %v4085_v56 }
 0x143   : > { %v1801_v19 = vld [vmem:[#allocation2 + $0xf0] sm:$0xff]  ;;  %v1563_v22 = vpop.f32.mrf.mxu1  ;;  %v7973_v23 = vpop.f32.mrf.mxu0  ;;  %8172 = vmatmul.mubr.msk.bf16.gmra.mxu0 %vm509_vm1, %v8468_v1  ;;  %v5326_v5 = vrot.slane %v5324_v58, 1  ;;  %v5329_v14 = vshll.u32 %v9347_v57, 16  ;;  %v9399_v58 = vld [vmem:[%s8601_s29 + $0x28] sm:$0xff]  }
 0x144   : > { %2367 = vst.msk [vmem:[#allocation2 + $0xc8] sm:$0xff] %vm243_vm4, %v2319_v9  ;;  %v2324_v25 = vadd.f32 %v7969_v54, %v1801_v19  ;;  %1708 = vst.msk [vmem:[#allocation2 + $0x110] sm:$0xff] %vm243_vm4, %v1660_v17  ;;  %v1658_v26 = vadd.f32 %v1563_v22, %v988_v21  ;;  %8175 = vmatprep.mubr.msk.bf16.mxu0 %vm509_vm1, %v8471_v13  ;;  %v5322_v13 = vshrl.u32 %v9335_v41, 16  ;;  %v8479_v9 = vld [vmem:[%s8601_s29 + $0xc8] sm:$0xff]   ;;  %v998_v21 = vld [vmem:[#allocation2 + $0x150] sm:$0xff] }
 0x145   : > { %v1799_v27 = vld [vmem:[#allocation2 + $0xe0] sm:$0xff]  ;;  %v7924_v29 = vpop.f32.mrf.mxu1  ;;  %v2231_v30 = vpop.f32.mrf.mxu0  ;;  %v9367_v17 = vld [vmem:[%s8601_s29 + $0x28] sm:$0xff]  }
 0x146   : > { %2372 = vst.msk [vmem:[#allocation2 + $0xf0] sm:$0xff] %vm243_vm4, %v2324_v25  ;;  %v2322_v31 = vadd.f32 %v2215_v61, %v1799_v27  ;;  %1706 = vst.msk [vmem:[#allocation2 + $0x100] sm:$0xff] %vm243_vm4, %v1658_v26  ;;  %v1661_v32 = vadd.f32 %v7924_v29, %v991_v28  ;;  %v4087_v27 = vrot.slane %v8478_v4, 1  ;;  %v996_v29 = vld [vmem:[#allocation2 + $0x140] sm:$0xff]  ;;  %v5337_v41 = vshll.u32 %v9367_v17, 16 }
 0x147   : > { %v1802_v20 = vld [vmem:[#allocation2 + $0xf8] sm:$0xff]  ;;  %v1566_v38 = vpop.f32.mrf.mxu1  ;;  %v7974_v40 = vpop.f32.mrf.mxu0 }
 0x148   : > { %2370 = vst.msk [vmem:[#allocation2 + $0xe0] sm:$0xff] %vm243_vm4, %v2322_v31  ;;  %v2325_v42 = vadd.f32 %v7970_v7, %v1802_v20  ;;  %1709 = vst.msk [vmem:[#allocation2 + $0x118] sm:$0xff] %vm243_vm4, %v1661_v32  ;;  %v1659_v43 = vadd.f32 %v1566_v38, %v989_v37  ;;  %v993_v7 = vld [vmem:[#allocation2 + $0x128] sm:$0xff]  ;;  %v5327_v32 = vor.u32 %v5326_v5, %v5322_v13  ;;  %v999_v38 = vld [vmem:[#allocation2 + $0x158] sm:$0xff] }
 0x149   : > { %v1800_v45 = vld [vmem:[#allocation2 + $0xe8] sm:$0xff]  ;;  %v7927_v47 = vpop.f32.mrf.mxu1  ;;  %8126 = vmatmul.mubr.msk.bf16.gmra.mxu1 %vm509_vm1, %v4080_v33  ;;  %v2234_v48 = vpop.f32.mrf.mxu0  ;;  %v5331_v33 = vrot.slane %v5329_v14, 1  ;;  %v9416_v13 = vld [vmem:[%s8601_s29 + $0x40] sm:$0xff]  }
 0x14a   : > { %2373 = vst.msk [vmem:[#allocation2 + $0xf8] sm:$0xff] %vm243_vm4, %v2325_v42  ;;  %v2323_v49 = vadd.f32 %v2218_v16, %v1800_v45  ;;  %1707 = vst.msk [vmem:[#allocation2 + $0x108] sm:$0xff] %vm243_vm4, %v1659_v43  ;;  %v1664_v50 = vadd.f32 %v7927_v47, %v994_v46  ;;  %8129 = vmatprep.mubr.msk.bf16.mxu1 %vm509_vm1, %v4082_v39  ;;  %v6135_v42 = vrot.slane %v8484_v18, 1  ;;  %v6136_v43 = vrot.slane %v9372_v24, 1 }
 0x14b   : > { %v1805_v52 = vld [vmem:[#allocation2 + $0x110] sm:$0xff]  ;;  %v1579_v54 = vpop.f32.mrf.mxu1  ;;  %v7977_v55 = vpop.f32.mrf.mxu0  ;;  %8176 = vmatmul.mubr.msk.bf16.gmra.mxu0 %vm509_vm1, %v8472_v34  ;;  %v4088_v46 = vsel %vm1944_vm2, %v4085_v56, %v4087_v27  ;;  %v5333_v47 = vshrl.u32 %v9347_v57, 16  ;;  %v9402_v57 = vld [vmem:[%s8601_s29 + $0x38] sm:$0xff]  }
 0x14c   : > { %2371 = vst.msk [vmem:[#allocation2 + $0xe8] sm:$0xff] %vm243_vm4, %v2323_v49  ;;  %v2328_v59 = vadd.f32 %v7973_v23, %v1805_v52  ;;  %1712 = vst.msk [vmem:[#allocation2 + $0x130] sm:$0xff] %vm243_vm4, %v1664_v50  ;;  %v1662_v60 = vadd.f32 %v1579_v54, %v992_v53  ;;  %8179 = vmatprep.mubr.msk.bf16.mxu0 %vm509_vm1, %v8475_v44  ;;  %v9379_v34 = vld [vmem:[%s8601_s29 + $0x30] sm:$0xff]   ;;  %v997_v49 = vld [vmem:[#allocation2 + $0x148] sm:$0xff]  ;;  %v5332_v53 = vsel %vm1129_vm3, %v5327_v32, %v5331_v33 }
 0x14d   : > { %v1803_v61 = vld [vmem:[#allocation2 + $0x100] sm:$0xff]  ;;  %v7928_v63 = vpop.f32.mrf.mxu1  ;;  %v2247_v0 = vpop.f32.mrf.mxu0  ;;  %v8480_v52 = vld [vmem:[%s8601_s29 + $0xd0] sm:$0xff]   ;;  %v5341_v54 = vshrl.u32 %v9367_v17, 16  ;;  %v5335_v4 = vor.u32 %v5333_v47, %v5331_v33  ;;  %v5357_v32 = vshrl.u32 %v9402_v57, 16  ;;  %v5361_v33 = vshll.u32 %v9416_v13, 16 }
 0x14e   : > { %2376 = vst.msk [vmem:[#allocation2 + $0x110] sm:$0xff] %vm243_vm4, %v2328_v59  ;;  %v2326_v1 = vadd.f32 %v2231_v30, %v1803_v61  ;;  %1710 = vst.msk [vmem:[#allocation2 + $0x120] sm:$0xff] %vm243_vm4, %v1662_v60  ;;  %v1665_v2 = vadd.f32 %v7928_v63, %v995_v62  ;;  %v1002_v60 = vld [vmem:[#allocation2 + $0x170] sm:$0xff]  ;;  %v5339_v63 = vrot.slane %v5337_v41, 1 }
 0x14f   : > { %v1806_v6 = vld [vmem:[#allocation2 + $0x118] sm:$0xff]  ;;  %v1582_v8 = vpop.f32.mrf.mxu1  ;;  %v7978_v10 = vpop.f32.mrf.mxu0 }
 0x150   : > { %2374 = vst.msk [vmem:[#allocation2 + $0x100] sm:$0xff] %vm243_vm4, %v2326_v1  ;;  %v2329_v15 = vadd.f32 %v7974_v40, %v1806_v6  ;;  %1713 = vst.msk [vmem:[#allocation2 + $0x138] sm:$0xff] %vm243_vm4, %v1665_v2  ;;  %v1663_v16 = vadd.f32 %v1582_v8, %v993_v7  ;;  %v9409_v1 = vld [vmem:[%s8601_s29 + $0x30] sm:$0xff]   ;;  %v1000_v7 = vld [vmem:[#allocation2 + $0x160] sm:$0xff] }
 0x151   : > { %v1804_v19 = vld [vmem:[#allocation2 + $0x108] sm:$0xff]  ;;  %v7931_v22 = vpop.f32.mrf.mxu1  ;;  %8130 = vmatmul.mubr.msk.bf16.gmra.mxu1 %vm509_vm1, %v4084_v3  ;;  %v2250_v23 = vpop.f32.mrf.mxu0 }
 0x152   : > { %2377 = vst.msk [vmem:[#allocation2 + $0x118] sm:$0xff] %vm243_vm4, %v2329_v15  ;;  %v2327_v25 = vadd.f32 %v2234_v48, %v1804_v19  ;;  %1711 = vst.msk [vmem:[#allocation2 + $0x128] sm:$0xff] %vm243_vm4, %v1663_v16  ;;  %v1668_v26 = vadd.f32 %v7931_v22, %v998_v21  ;;  %8133 = vmatprep.mubr.msk.bf16.mxu1 %vm509_vm1, %v4086_v12  ;;  %v6138_v15 = vrot.slane %v9399_v58, 1  ;;  %v5353_v19 = vshll.u32 %v9402_v57, 16  ;;  %v2441_v57 = vld [vmem:[#allocation2 + $0x18] sm:$0xff] }
 0x153   : > { %v1809_v28 = vld [vmem:[#allocation2 + $0x130] sm:$0xff]  ;;  %v1595_v30 = vpop.f32.mrf.mxu1  ;;  %v7981_v31 = vpop.f32.mrf.mxu0  ;;  %8180 = vmatmul.mubr.msk.bf16.gmra.mxu0 %vm509_vm1, %v8476_v11  ;;  %v5343_v11 = vor.u32 %v5341_v54, %v5339_v63  ;;  %v6140_v21 = vrot.slane %v9409_v1, 1 }
 0x154   : > { %2375 = vst.msk [vmem:[#allocation2 + $0x108] sm:$0xff] %vm243_vm4, %v2327_v25  ;;  %v2332_v35 = vadd.f32 %v7977_v55, %v1809_v28  ;;  %1716 = vst.msk [vmem:[#allocation2 + $0x150] sm:$0xff] %vm243_vm4, %v1668_v26  ;;  %v1666_v20 = vadd.f32 %v1595_v30, %v996_v29  ;;  %8183 = vmatprep.mubr.msk.bf16.mxu0 %vm509_vm1, %v8479_v9  ;;  %v5345_v55 = vshll.u32 %v9379_v34, 16  ;;  %v1003_v9 = vld [vmem:[#allocation2 + $0x178] sm:$0xff]  ;;  %v5349_v26 = vshrl.u32 %v9379_v34, 16  ;;  %v1001_v28 = vld [vmem:[#allocation2 + $0x168] sm:$0xff] }
 0x155   : > { %v1807_v37 = vld [vmem:[#allocation2 + $0x120] sm:$0xff]  ;;  %v7932_v40 = vpop.f32.mrf.mxu1  ;;  %v2263_v39 = vpop.f32.mrf.mxu0  ;;  %v5340_v25 = vsel %vm1129_vm3, %v5335_v4, %v5339_v63  ;;  %v6139_v34 = vsel %vm1944_vm2, %v6136_v43, %v6138_v15  ;;  %v9454_v54 = vld [vmem:[%s8601_s29 + $0x50] sm:$0xff]  }
 0x156   : > { %2380 = vst.msk [vmem:[#allocation2 + $0x130] sm:$0xff] %vm243_vm4, %v2332_v35  ;;  %v2330_v44 = vadd.f32 %v2247_v0, %v1807_v37  ;;  %1714 = vst.msk [vmem:[#allocation2 + $0x140] sm:$0xff] %vm243_vm4, %v1666_v20  ;;  %v1669_v45 = vadd.f32 %v7932_v40, %v999_v38  ;;  %v6137_v0 = vsel %vm1944_vm2, %v6135_v42, %v6136_v43  ;;  %v5347_v12 = vrot.slane %v5345_v55, 1  ;;  %v9437_v37 = vld [vmem:[%s8601_s29 + $0x38] sm:$0xff]   ;;  %v9440_v38 = vld [vmem:[%s8601_s29 + $0x48] sm:$0xff]  }
 0x157   : > { %v1810_v48 = vld [vmem:[#allocation2 + $0x138] sm:$0xff]  ;;  %v1598_v50 = vpop.f32.mrf.mxu1  ;;  %v7982_v51 = vpop.f32.mrf.mxu0 }
 0x158   : > { %2378 = vst.msk [vmem:[#allocation2 + $0x120] sm:$0xff] %vm243_vm4, %v2330_v44  ;;  %v2333_v36 = vadd.f32 %v7978_v10, %v1810_v48  ;;  %1717 = vst.msk [vmem:[#allocation2 + $0x158] sm:$0xff] %vm243_vm4, %v1669_v45  ;;  %v1667_v56 = vadd.f32 %v1598_v50, %v997_v49  ;;  %v5355_v44 = vrot.slane %v5353_v19, 1  ;;  %v6141_v45 = vsel %vm1944_vm2, %v6138_v15, %v6140_v21  ;;  %v2438_v49 = vld [vmem:[#allocation2] sm:$0xff]  ;;  %v9475_v15 = vld [vmem:[%s8601_s29 + $0x48] sm:$0xff]  }
 0x159   : > { %v1808_v59 = vld [vmem:[#allocation2 + $0x128] sm:$0xff]  ;;  %v7935_v61 = vpop.f32.mrf.mxu1  ;;  %8134 = vmatmul.mubr.msk.bf16.gmra.mxu1 %vm509_vm1, %v4088_v46  ;;  %v2266_v62 = vpop.f32.mrf.mxu0  ;;  %v9447_v46 = vld [vmem:[%s8601_s29 + $0x40] sm:$0xff]   ;;  %v5351_v47 = vor.u32 %v5349_v26, %v5347_v12 }
 0x15a   : > { %2381 = vst.msk [vmem:[#allocation2 + $0x138] sm:$0xff] %vm243_vm4, %v2333_v36  ;;  %v2331_v2 = vadd.f32 %v2250_v23, %v1808_v59  ;;  %1715 = vst.msk [vmem:[#allocation2 + $0x148] sm:$0xff] %vm243_vm4, %v1667_v56  ;;  %v1672_v3 = vadd.f32 %v7935_v61, %v1002_v60  ;;  %8189 = vmatprep.mubr.msk.bf16.mxu1 %vm509_vm1, %v5332_v53  ;;  %v5363_v53 = vrot.slane %v5361_v33, 1  ;;  %v6142_v56 = vrot.slane %v9437_v37, 1  ;;  %v9492_v33 = vld [vmem:[%s8601_s29 + $0x60] sm:$0xff]  }
 0x15b   : > { %v1813_v6 = vld [vmem:[#allocation2 + $0x150] sm:$0xff]  ;;  %v1611_v8 = vpop.f32.mrf.mxu1  ;;  %v7985_v10 = vpop.f32.mrf.mxu0  ;;  %8184 = vmatmul.mubr.msk.bf16.gmra.mxu0 %vm509_vm1, %v8480_v52  ;;  %v5359_v52 = vor.u32 %v5357_v32, %v5355_v44  ;;  %v5369_v61 = vshll.u32 %v9440_v38, 16 }
 0x15c   : > { %2379 = vst.msk [vmem:[#allocation2 + $0x128] sm:$0xff] %vm243_vm4, %v2331_v2  ;;  %v2336_v5 = vadd.f32 %v7981_v31, %v1813_v6  ;;  %1720 = vst.msk [vmem:[#allocation2 + $0x170] sm:$0xff] %vm243_vm4, %v1672_v3  ;;  %v1670_v14 = vadd.f32 %v1611_v8, %v1000_v7  ;;  %8239 = vmatprep.mubr.msk.bf16.mxu0 %vm509_vm1, %v6137_v0  ;;  %v5348_v31 = vsel %vm1129_vm3, %v5343_v11, %v5347_v12  ;;  %v2439_v6 = vld [vmem:[#allocation2 + $0x8] sm:$0xff] }
 0x15d   : > { %v1811_v16 = vld [vmem:[#allocation2 + $0x140] sm:$0xff]  ;;  %v7936_v17 = vpop.f32.mrf.mxu1  ;;  %v2279_v18 = vpop.f32.mrf.mxu0  ;;  %v5356_v2 = vsel %vm1129_vm3, %v5351_v47, %v5355_v44  ;;  %v5365_v3 = vshrl.u32 %v9416_v13, 16  ;;  %v5373_v11 = vshrl.u32 %v9440_v38, 16  ;;  %v5377_v12 = vshll.u32 %v9454_v54, 16  ;;  %v2445_v38 = vld [vmem:[#allocation2 + $0x38] sm:$0xff] }
 0x15e   : > { %2384 = vst.msk [vmem:[#allocation2 + $0x150] sm:$0xff] %vm243_vm4, %v2336_v5  ;;  %v2334_v22 = vadd.f32 %v2263_v39, %v1811_v16  ;;  %1718 = vst.msk [vmem:[#allocation2 + $0x160] sm:$0xff] %vm243_vm4, %v1670_v14  ;;  %v1673_v23 = vadd.f32 %v7936_v17, %v1003_v9  ;;  %v2440_v39 = vld [vmem:[#allocation2 + $0x10] sm:$0xff]  ;;  %v6143_v13 = vsel %vm1944_vm2, %v6140_v21, %v6142_v56  ;;  %v9478_v16 = vld [vmem:[%s8601_s29 + $0x58] sm:$0xff]  }
 0x15f   : > { %v1814_v27 = vld [vmem:[#allocation2 + $0x158] sm:$0xff]  ;;  %v1614_v29 = vpop.f32.mrf.mxu1  ;;  %v7986_v30 = vpop.f32.mrf.mxu0  ;;  %v2444_v17 = vld [vmem:[#allocation2 + $0x30] sm:$0xff]  ;;  %v5367_v26 = vor.u32 %v5365_v3, %v5363_v53  ;;  %v5379_v32 = vrot.slane %v5377_v12, 1 }
 0x160   : > { %2382 = vst.msk [vmem:[#allocation2 + $0x140] sm:$0xff] %vm243_vm4, %v2334_v22  ;;  %v2337_v35 = vadd.f32 %v7982_v51, %v1814_v27  ;;  %1721 = vst.msk [vmem:[#allocation2 + $0x178] sm:$0xff] %vm243_vm4, %v1673_v23  ;;  %v1671_v20 = vadd.f32 %v1614_v29, %v1001_v28  ;;  %v5371_v22 = vrot.slane %v5369_v61, 1  ;;  %v2442_v28 = vld [vmem:[#allocation2 + $0x20] sm:$0xff]  ;;  %v9530_v12 = vld [vmem:[%s8601_s29 + $0x70] sm:$0xff]  }
 0x161   : > { %v1812_v40 = vld [vmem:[#allocation2 + $0x148] sm:$0xff]  ;;  %v7991_v41 = vpop.f32.mrf.mxu1  ;;  %8190 = vmatmul.mubr.msk.bf16.vlgmr.msra.gmra.mxu1 %vm509_vm1, %v5340_v25  ;;  %v2282_v42 = vpop.f32.mrf.mxu0  ;;  %v9485_v25 = vld [vmem:[%s8601_s29 + $0x50] sm:$0xff]  }
 0x162   : > { %2385 = vst.msk [vmem:[#allocation2 + $0x158] sm:$0xff] %vm243_vm4, %v2337_v35  ;;  %v2335_v24 = vadd.f32 %v2266_v62, %v1812_v40  ;;  %1719 = vst.msk [vmem:[#allocation2 + $0x168] sm:$0xff] %vm243_vm4, %v1671_v20  ;;  %v2910_v43 = vadd.f32 %v7991_v41, %v2440_v39  ;;  %8193 = vmatprep.mubr.msk.bf16.mxu1 %vm509_vm1, %v5348_v31  ;;  %v6144_v62 = vrot.slane %v9447_v46, 1  ;;  %v5385_v41 = vshll.u32 %v9478_v16, 16 }
 0x163   : > { %v1817_v48 = vld [vmem:[#allocation2 + $0x170] sm:$0xff]  ;;  %v2717_v50 = vpop.f32.mrf.mxu1  ;;  %v8041_v51 = vpop.f32.mrf.mxu0  ;;  %8240 = vmatmul.mubr.msk.bf16.vlgmr.msra.gmra.mxu0 %vm509_vm1, %v6139_v34  ;;  %v5375_v31 = vor.u32 %v5373_v11, %v5371_v22  ;;  %v6146_v34 = vrot.slane %v9475_v15, 1 }
 0x164   : > { %2383 = vst.msk [vmem:[#allocation2 + $0x148] sm:$0xff] %vm243_vm4, %v2335_v24  ;;  %v2340_v55 = vadd.f32 %v7985_v10, %v1817_v48  ;;  %2958 = vst.msk [vmem:[#allocation2 + $0x10] sm:$0xff] %vm243_vm4, %v2910_v43  ;;  %v2908_v36 = vadd.f32 %v2717_v50, %v2438_v49  ;;  %8243 = vmatprep.mubr.msk.bf16.mxu0 %vm509_vm1, %v6141_v45  ;;  %v5364_v10 = vsel %vm1129_vm3, %v5359_v52, %v5363_v53  ;;  %v2443_v48 = vld [vmem:[#allocation2 + $0x28] sm:$0xff] }
 0x165   : > { %v1815_v58 = vld [vmem:[#allocation2 + $0x160] sm:$0xff]  ;;  %v7992_v59 = vpop.f32.mrf.mxu1  ;;  %v3531_v60 = vpop.f32.mrf.mxu0  ;;  %v6145_v23 = vsel %vm1944_vm2, %v6142_v56, %v6144_v62  ;;  %v5372_v24 = vsel %vm1129_vm3, %v5367_v26, %v5371_v22  ;;  %v5381_v43 = vshrl.u32 %v9454_v54, 16  ;;  %v5389_v52 = vshrl.u32 %v9478_v16, 16  ;;  %v9513_v56 = vld [vmem:[%s8601_s29 + $0x58] sm:$0xff]  }
 0x166   : > { %2388 = vst.msk [vmem:[#allocation2 + $0x170] sm:$0xff] %vm243_vm4, %v2340_v55  ;;  %v2338_v63 = vadd.f32 %v2279_v18, %v1815_v58  ;;  %2956 = vst.msk [vmem:[#allocation2] sm:$0xff] %vm243_vm4, %v2908_v36  ;;  %v2911_v0 = vadd.f32 %v7992_v59, %v2441_v57  ;;  %v5393_v53 = vshll.u32 %v9492_v33, 16  ;;  %v6147_v54 = vsel %vm1944_vm2, %v6144_v62, %v6146_v34  ;;  %v9516_v58 = vld [vmem:[%s8601_s29 + $0x68] sm:$0xff]   ;;  %v2448_v59 = vld [vmem:[#allocation2 + $0x50] sm:$0xff] }
 0x167   : > { %v1818_v4 = vld [vmem:[#allocation2 + $0x178] sm:$0xff]  ;;  %v2720_v7 = vpop.f32.mrf.mxu1  ;;  %v8042_v8 = vpop.f32.mrf.mxu0  ;;  %v5383_v3 = vor.u32 %v5381_v43, %v5379_v32 }
 0x168   : > { %2386 = vst.msk [vmem:[#allocation2 + $0x160] sm:$0xff] %vm243_vm4, %v2338_v63  ;;  %v2341_v5 = vadd.f32 %v7986_v30, %v1818_v4  ;;  %2959 = vst.msk [vmem:[#allocation2 + $0x18] sm:$0xff] %vm243_vm4, %v2911_v0  ;;  %v2909_v14 = vadd.f32 %v2720_v7, %v2439_v6  ;;  %v5387_v63 = vrot.slane %v5385_v41, 1  ;;  %v2446_v6 = vld [vmem:[#allocation2 + $0x40] sm:$0xff]  ;;  %v5395_v11 = vrot.slane %v5393_v53, 1  ;;  %v2449_v16 = vld [vmem:[#allocation2 + $0x58] sm:$0xff] }
 0x169   : > { %v1816_v9 = vld [vmem:[#allocation2 + $0x168] sm:$0xff]  ;;  %v7995_v18 = vpop.f32.mrf.mxu1  ;;  %8194 = vmatmul.mubr.msk.bf16.gmra.mxu1 %vm509_vm1, %v5356_v2  ;;  %v3534_v19 = vpop.f32.mrf.mxu0  ;;  %v9523_v2 = vld [vmem:[%s8601_s29 + $0x60] sm:$0xff]  }
 0x16a   : > { %2389 = vst.msk [vmem:[#allocation2 + $0x178] sm:$0xff] %vm243_vm4, %v2341_v5  ;;  %v2339_v1 = vadd.f32 %v2282_v42, %v1816_v9  ;;  %2957 = vst.msk [vmem:[#allocation2 + $0x8] sm:$0xff] %vm243_vm4, %v2909_v14  ;;  %v2914_v21 = vadd.f32 %v7995_v18, %v2444_v17  ;;  %8197 = vmatprep.mubr.msk.bf16.mxu1 %vm509_vm1, %v5364_v10  ;;  %v6148_v42 = vrot.slane %v9485_v25, 1  ;;  %v5401_v18 = vshll.u32 %v9516_v58, 16  ;;  %v9568_v53 = vld [vmem:[%s8601_s29 + $0x80] sm:$0xff]  }
 0x16b   : > { %v3055_v27 = vld [vmem:[#allocation2 + $0x10] sm:$0xff]  ;;  %v2733_v29 = vpop.f32.mrf.mxu1  ;;  %v8045_v30 = vpop.f32.mrf.mxu0  ;;  %8244 = vmatmul.mubr.msk.bf16.gmra.mxu0 %vm509_vm1, %v6143_v13  ;;  %v5391_v10 = vor.u32 %v5389_v52, %v5387_v63  ;;  %v6150_v13 = vrot.slane %v9513_v56, 1 }
 0x16c   : > { %2387 = vst.msk [vmem:[#allocation2 + $0x168] sm:$0xff] %vm243_vm4, %v2339_v1  ;;  %v3724_v35 = vadd.f32 %v8041_v51, %v3055_v27  ;;  %2962 = vst.msk [vmem:[#allocation2 + $0x30] sm:$0xff] %vm243_vm4, %v2914_v21  ;;  %v2912_v20 = vadd.f32 %v2733_v29, %v2442_v28  ;;  %8247 = vmatprep.mubr.msk.bf16.mxu0 %vm509_vm1, %v6145_v23  ;;  %v5380_v51 = vsel %vm1129_vm3, %v5375_v31, %v5379_v32  ;;  %v2447_v27 = vld [vmem:[#allocation2 + $0x48] sm:$0xff] }
 0x16d   : > { %v3053_v37 = vld [vmem:[#allocation2] sm:$0xff]  ;;  %v7996_v40 = vpop.f32.mrf.mxu1  ;;  %v3547_v39 = vpop.f32.mrf.mxu0  ;;  %v6149_v0 = vsel %vm1944_vm2, %v6146_v34, %v6148_v42  ;;  %v5388_v1 = vsel %vm1129_vm3, %v5383_v3, %v5387_v63  ;;  %v5397_v21 = vshrl.u32 %v9492_v33, 16  ;;  %v5405_v31 = vshrl.u32 %v9516_v58, 16  ;;  %v9551_v34 = vld [vmem:[%s8601_s29 + $0x68] sm:$0xff]   ;;  %v2453_v58 = vld [vmem:[#allocation2 + $0x78] sm:$0xff] }
 0x16e   : > { %3772 = vst.msk [vmem:[#allocation2 + $0x10] sm:$0xff] %vm243_vm4, %v3724_v35  ;;  %v3722_v44 = vadd.f32 %v3531_v60, %v3053_v37  ;;  %2960 = vst.msk [vmem:[#allocation2 + $0x20] sm:$0xff] %vm243_vm4, %v2912_v20  ;;  %v2915_v45 = vadd.f32 %v7996_v40, %v2445_v38  ;;  %v5409_v32 = vshll.u32 %v9530_v12, 16  ;;  %v6151_v33 = vsel %vm1944_vm2, %v6148_v42, %v6150_v13  ;;  %v9554_v37 = vld [vmem:[%s8601_s29 + $0x78] sm:$0xff]   ;;  %v2452_v40 = vld [vmem:[#allocation2 + $0x70] sm:$0xff] }
 0x16f   : > { %v3056_v47 = vld [vmem:[#allocation2 + $0x18] sm:$0xff]  ;;  %v2736_v49 = vpop.f32.mrf.mxu1  ;;  %v8046_v50 = vpop.f32.mrf.mxu0  ;;  %v5399_v43 = vor.u32 %v5397_v21, %v5395_v11 }
 0x170   : > { %3770 = vst.msk [vmem:[#allocation2] sm:$0xff] %vm243_vm4, %v3722_v44  ;;  %v3725_v55 = vadd.f32 %v8042_v8, %v3056_v47  ;;  %2963 = vst.msk [vmem:[#allocation2 + $0x38] sm:$0xff] %vm243_vm4, %v2915_v45  ;;  %v2913_v36 = vadd.f32 %v2736_v49, %v2443_v48  ;;  %v5403_v44 = vrot.slane %v5401_v18, 1  ;;  %v2450_v48 = vld [vmem:[#allocation2 + $0x60] sm:$0xff]  ;;  %v5411_v52 = vrot.slane %v5409_v32, 1  ;;  %v9606_v32 = vld [vmem:[%s8601_s29 + $0x90] sm:$0xff]  }
 0x171   : > { %v3054_v57 = vld [vmem:[#allocation2 + $0x8] sm:$0xff]  ;;  %v7999_v60 = vpop.f32.mrf.mxu1  ;;  %8198 = vmatmul.mubr.msk.bf16.gmra.mxu1 %vm509_vm1, %v5372_v24  ;;  %v3550_v61 = vpop.f32.mrf.mxu0  ;;  %v9561_v24 = vld [vmem:[%s8601_s29 + $0x70] sm:$0xff]  }
 0x172   : > { %3773 = vst.msk [vmem:[#allocation2 + $0x18] sm:$0xff] %vm243_vm4, %v3725_v55  ;;  %v3723_v46 = vadd.f32 %v3534_v19, %v3054_v57  ;;  %2961 = vst.msk [vmem:[#allocation2 + $0x28] sm:$0xff] %vm243_vm4, %v2913_v36  ;;  %v2918_v62 = vadd.f32 %v7999_v60, %v2448_v59  ;;  %8201 = vmatprep.mubr.msk.bf16.mxu1 %vm509_vm1, %v5380_v51  ;;  %v6152_v19 = vrot.slane %v9523_v2, 1  ;;  %v5417_v60 = vshll.u32 %v9554_v37, 16 }
 0x173   : > { %v3059_v4 = vld [vmem:[#allocation2 + $0x30] sm:$0xff]  ;;  %v2749_v7 = vpop.f32.mrf.mxu1  ;;  %v8049_v8 = vpop.f32.mrf.mxu0  ;;  %8248 = vmatmul.mubr.msk.bf16.gmra.mxu0 %vm509_vm1, %v6147_v54  ;;  %v5407_v51 = vor.u32 %v5405_v31, %v5403_v44  ;;  %v6154_v54 = vrot.slane %v9551_v34, 1 }
 0x174   : > { %3771 = vst.msk [vmem:[#allocation2 + $0x8] sm:$0xff] %vm243_vm4, %v3723_v46  ;;  %v3728_v5 = vadd.f32 %v8045_v30, %v3059_v4  ;;  %2966 = vst.msk [vmem:[#allocation2 + $0x50] sm:$0xff] %vm243_vm4, %v2918_v62  ;;  %v2916_v14 = vadd.f32 %v2749_v7, %v2446_v6  ;;  %8251 = vmatprep.mubr.msk.bf16.mxu0 %vm509_vm1, %v6149_v0  ;;  %v5396_v30 = vsel %vm1129_vm3, %v5391_v10, %v5395_v11  ;;  %v2451_v4 = vld [vmem:[#allocation2 + $0x68] sm:$0xff] }
 0x175   : > { %v3057_v15 = vld [vmem:[#allocation2 + $0x20] sm:$0xff]  ;;  %v8000_v9 = vpop.f32.mrf.mxu1  ;;  %v3563_v17 = vpop.f32.mrf.mxu0  ;;  %v6153_v45 = vsel %vm1944_vm2, %v6150_v13, %v6152_v19  ;;  %v5404_v46 = vsel %vm1129_vm3, %v5399_v43, %v5403_v44  ;;  %v5413_v62 = vshrl.u32 %v9530_v12, 16  ;;  %v5421_v10 = vshrl.u32 %v9554_v37, 16  ;;  %v9589_v13 = vld [vmem:[%s8601_s29 + $0x78] sm:$0xff]  }
 0x176   : > { %3776 = vst.msk [vmem:[#allocation2 + $0x30] sm:$0xff] %vm243_vm4, %v3728_v5  ;;  %v3726_v22 = vadd.f32 %v3547_v39, %v3057_v15  ;;  %2964 = vst.msk [vmem:[#allocation2 + $0x40] sm:$0xff] %vm243_vm4, %v2916_v14  ;;  %v2919_v23 = vadd.f32 %v8000_v9, %v2449_v16  ;;  %v5425_v11 = vshll.u32 %v9568_v53, 16  ;;  %v6155_v12 = vsel %vm1944_vm2, %v6152_v19, %v6154_v54  ;;  %v9592_v15 = vld [vmem:[%s8601_s29 + $0x88] sm:$0xff]   ;;  %v2456_v9 = vld [vmem:[#allocation2 + $0x90] sm:$0xff] }
 0x177   : > { %v3060_v26 = vld [vmem:[#allocation2 + $0x38] sm:$0xff]  ;;  %v2752_v28 = vpop.f32.mrf.mxu1  ;;  %v8050_v29 = vpop.f32.mrf.mxu0  ;;  %v5415_v21 = vor.u32 %v5413_v62, %v5411_v52 }
 0x178   : > { %3774 = vst.msk [vmem:[#allocation2 + $0x20] sm:$0xff] %vm243_vm4, %v3726_v22  ;;  %v3729_v35 = vadd.f32 %v8046_v50, %v3060_v26  ;;  %2967 = vst.msk [vmem:[#allocation2 + $0x58] sm:$0xff] %vm243_vm4, %v2919_v23  ;;  %v2917_v20 = vadd.f32 %v2752_v28, %v2447_v27  ;;  %v5419_v22 = vrot.slane %v5417_v60, 1  ;;  %v2454_v27 = vld [vmem:[#allocation2 + $0x80] sm:$0xff]  ;;  %v5427_v31 = vrot.slane %v5425_v11, 1  ;;  %v2457_v37 = vld [vmem:[#allocation2 + $0x98] sm:$0xff] }
 0x179   : > { %v3058_v38 = vld [vmem:[#allocation2 + $0x28] sm:$0xff]  ;;  %v8003_v39 = vpop.f32.mrf.mxu1  ;;  %8202 = vmatmul.mubr.msk.bf16.gmra.mxu1 %vm509_vm1, %v5388_v1  ;;  %v3566_v41 = vpop.f32.mrf.mxu0  ;;  %v9599_v1 = vld [vmem:[%s8601_s29 + $0x80] sm:$0xff]  }
 0x17a   : > { %3777 = vst.msk [vmem:[#allocation2 + $0x38] sm:$0xff] %vm243_vm4, %v3729_v35  ;;  %v3727_v25 = vadd.f32 %v3550_v61, %v3058_v38  ;;  %2965 = vst.msk [vmem:[#allocation2 + $0x48] sm:$0xff] %vm243_vm4, %v2917_v20  ;;  %v2922_v42 = vadd.f32 %v8003_v39, %v2452_v40  ;;  %8205 = vmatprep.mubr.msk.bf16.mxu1 %vm509_vm1, %v5396_v30  ;;  %v6156_v61 = vrot.slane %v9561_v24, 1  ;;  %v5433_v39 = vshll.u32 %v9592_v15, 16  ;;  %v9644_v11 = vld [vmem:[%s8601_s29 + $0xa0] sm:$0xff]  }
 0x17b   : > { %v3063_v47 = vld [vmem:[#allocation2 + $0x50] sm:$0xff]  ;;  %v2765_v49 = vpop.f32.mrf.mxu1  ;;  %v8053_v50 = vpop.f32.mrf.mxu0  ;;  %8252 = vmatmul.mubr.msk.bf16.gmra.mxu0 %vm509_vm1, %v6151_v33  ;;  %v5423_v30 = vor.u32 %v5421_v10, %v5419_v22  ;;  %v6158_v33 = vrot.slane %v9589_v13, 1 }
 0x17c   : > { %3775 = vst.msk [vmem:[#allocation2 + $0x28] sm:$0xff] %vm243_vm4, %v3727_v25  ;;  %v3732_v55 = vadd.f32 %v8049_v8, %v3063_v47  ;;  %2970 = vst.msk [vmem:[#allocation2 + $0x70] sm:$0xff] %vm243_vm4, %v2922_v42  ;;  %v2920_v36 = vadd.f32 %v2765_v49, %v2450_v48  ;;  %8255 = vmatprep.mubr.msk.bf16.mxu0 %vm509_vm1, %v6153_v45  ;;  %v5412_v8 = vsel %vm1129_vm3, %v5407_v51, %v5411_v52  ;;  %v2455_v47 = vld [vmem:[#allocation2 + $0x88] sm:$0xff] }
 0x17d   : > { %v3061_v56 = vld [vmem:[#allocation2 + $0x40] sm:$0xff]  ;;  %v8004_v57 = vpop.f32.mrf.mxu1  ;;  %v3579_v59 = vpop.f32.mrf.mxu0  ;;  %v6157_v23 = vsel %vm1944_vm2, %v6154_v54, %v6156_v61  ;;  %v5420_v25 = vsel %vm1129_vm3, %v5415_v21, %v5419_v22  ;;  %v5429_v42 = vshrl.u32 %v9568_v53, 16  ;;  %v5437_v51 = vshrl.u32 %v9592_v15, 16  ;;  %v9627_v54 = vld [vmem:[%s8601_s29 + $0x88] sm:$0xff]   ;;  %v2461_v15 = vld [vmem:[#allocation2 + $0xb8] sm:$0xff] }
 0x17e   : > { %3780 = vst.msk [vmem:[#allocation2 + $0x50] sm:$0xff] %vm243_vm4, %v3732_v55  ;;  %v3730_v63 = vadd.f32 %v3563_v17, %v3061_v56  ;;  %2968 = vst.msk [vmem:[#allocation2 + $0x60] sm:$0xff] %vm243_vm4, %v2920_v36  ;;  %v2923_v0 = vadd.f32 %v8004_v57, %v2453_v58  ;;  %v5441_v52 = vshll.u32 %v9606_v32, 16  ;;  %v6159_v53 = vsel %vm1944_vm2, %v6156_v61, %v6158_v33  ;;  %v9630_v56 = vld [vmem:[%s8601_s29 + $0x98] sm:$0xff]   ;;  %v2460_v57 = vld [vmem:[#allocation2 + $0xb0] sm:$0xff] }
 0x17f   : > { %v3064_v3 = vld [vmem:[#allocation2 + $0x58] sm:$0xff]  ;;  %v2768_v6 = vpop.f32.mrf.mxu1  ;;  %v8054_v7 = vpop.f32.mrf.mxu0  ;;  %v5431_v62 = vor.u32 %v5429_v42, %v5427_v31 }
 0x180   : > { %3778 = vst.msk [vmem:[#allocation2 + $0x40] sm:$0xff] %vm243_vm4, %v3730_v63  ;;  %v3733_v5 = vadd.f32 %v8050_v29, %v3064_v3  ;;  %2971 = vst.msk [vmem:[#allocation2 + $0x78] sm:$0xff] %vm243_vm4, %v2923_v0  ;;  %v2921_v14 = vadd.f32 %v2768_v6, %v2451_v4  ;;  %v5435_v63 = vrot.slane %v5433_v39, 1  ;;  %v2458_v4 = vld [vmem:[#allocation2 + $0xa0] sm:$0xff]  ;;  %v5443_v10 = vrot.slane %v5441_v52, 1  ;;  %v9682_v52 = vld [vmem:[%s8601_s29 + $0xb0] sm:$0xff]  }
 0x181   : > { %v3062_v16 = vld [vmem:[#allocation2 + $0x48] sm:$0xff]  ;;  %v8007_v17 = vpop.f32.mrf.mxu1  ;;  %8206 = vmatmul.mubr.msk.bf16.gmra.mxu1 %vm509_vm1, %v5404_v46  ;;  %v3582_v18 = vpop.f32.mrf.mxu0  ;;  %v9637_v46 = vld [vmem:[%s8601_s29 + $0x90] sm:$0xff]  }
 0x182   : > { %3781 = vst.msk [vmem:[#allocation2 + $0x58] sm:$0xff] %vm243_vm4, %v3733_v5  ;;  %v3731_v2 = vadd.f32 %v3566_v41, %v3062_v16  ;;  %2969 = vst.msk [vmem:[#allocation2 + $0x68] sm:$0xff] %vm243_vm4, %v2921_v14  ;;  %v2926_v19 = vadd.f32 %v8007_v17, %v2456_v9  ;;  %8209 = vmatprep.mubr.msk.bf16.mxu1 %vm509_vm1, %v5412_v8  ;;  %v6160_v41 = vrot.slane %v9599_v1, 1  ;;  %v5449_v17 = vshll.u32 %v9630_v56, 16 }
 0x183   : > { %v3067_v26 = vld [vmem:[#allocation2 + $0x70] sm:$0xff]  ;;  %v2781_v28 = vpop.f32.mrf.mxu1  ;;  %v8057_v29 = vpop.f32.mrf.mxu0  ;;  %8256 = vmatmul.mubr.msk.bf16.gmra.mxu0 %vm509_vm1, %v6155_v12  ;;  %v5439_v8 = vor.u32 %v5437_v51, %v5435_v63  ;;  %v6162_v12 = vrot.slane %v9627_v54, 1 }
 0x184   : > { %3779 = vst.msk [vmem:[#allocation2 + $0x48] sm:$0xff] %vm243_vm4, %v3731_v2  ;;  %v3736_v35 = vadd.f32 %v8053_v50, %v3067_v26  ;;  %2974 = vst.msk [vmem:[#allocation2 + $0x90] sm:$0xff] %vm243_vm4, %v2926_v19  ;;  %v2924_v20 = vadd.f32 %v2781_v28, %v2454_v27  ;;  %8259 = vmatprep.mubr.msk.bf16.mxu0 %vm509_vm1, %v6157_v23  ;;  %v5428_v50 = vsel %vm1129_vm3, %v5423_v30, %v5427_v31  ;;  %v2459_v26 = vld [vmem:[#allocation2 + $0xa8] sm:$0xff] }
 0x185   : > { %v3065_v34 = vld [vmem:[#allocation2 + $0x60] sm:$0xff]  ;;  %v8008_v38 = vpop.f32.mrf.mxu1  ;;  %v3595_v40 = vpop.f32.mrf.mxu0  ;;  %v6161_v0 = vsel %vm1944_vm2, %v6158_v33, %v6160_v41  ;;  %v5436_v2 = vsel %vm1129_vm3, %v5431_v62, %v5435_v63  ;;  %v5445_v19 = vshrl.u32 %v9606_v32, 16  ;;  %v5453_v30 = vshrl.u32 %v9630_v56, 16  ;;  %v9665_v33 = vld [vmem:[%s8601_s29 + $0x98] sm:$0xff]  }
 0x186   : > { %3784 = vst.msk [vmem:[#allocation2 + $0x70] sm:$0xff] %vm243_vm4, %v3736_v35  ;;  %v3734_v44 = vadd.f32 %v3579_v59, %v3065_v34  ;;  %2972 = vst.msk [vmem:[#allocation2 + $0x80] sm:$0xff] %vm243_vm4, %v2924_v20  ;;  %v2927_v45 = vadd.f32 %v8008_v38, %v2457_v37  ;;  %v5457_v31 = vshll.u32 %v9644_v11, 16  ;;  %v6163_v32 = vsel %vm1944_vm2, %v6160_v41, %v6162_v12  ;;  %v9668_v34 = vld [vmem:[%s8601_s29 + $0xa8] sm:$0xff]   ;;  %v2464_v38 = vld [vmem:[#allocation2 + $0xd0] sm:$0xff] }
 0x187   : > { %v3068_v43 = vld [vmem:[#allocation2 + $0x78] sm:$0xff]  ;;  %v2784_v48 = vpop.f32.mrf.mxu1  ;;  %v8058_v49 = vpop.f32.mrf.mxu0  ;;  %v5447_v42 = vor.u32 %v5445_v19, %v5443_v10 }
 0x188   : > { %3782 = vst.msk [vmem:[#allocation2 + $0x60] sm:$0xff] %vm243_vm4, %v3734_v44  ;;  %v3737_v55 = vadd.f32 %v8054_v7, %v3068_v43  ;;  %2975 = vst.msk [vmem:[#allocation2 + $0x98] sm:$0xff] %vm243_vm4, %v2927_v45  ;;  %v2925_v36 = vadd.f32 %v2784_v48, %v2455_v47  ;;  %v5451_v44 = vrot.slane %v5449_v17, 1  ;;  %v2462_v47 = vld [vmem:[#allocation2 + $0xc0] sm:$0xff]  ;;  %v5459_v51 = vrot.slane %v5457_v31, 1  ;;  %v2465_v56 = vld [vmem:[#allocation2 + $0xd8] sm:$0xff] }
 0x189   : > { %v3066_v58 = vld [vmem:[#allocation2 + $0x68] sm:$0xff]  ;;  %v8011_v59 = vpop.f32.mrf.mxu1  ;;  %8210 = vmatmul.mubr.msk.bf16.gmra.mxu1 %vm509_vm1, %v5420_v25  ;;  %v3598_v60 = vpop.f32.mrf.mxu0  ;;  %v9675_v25 = vld [vmem:[%s8601_s29 + $0xa0] sm:$0xff]  }
 0x18a   : > { %3785 = vst.msk [vmem:[#allocation2 + $0x78] sm:$0xff] %vm243_vm4, %v3737_v55  ;;  %v3735_v24 = vadd.f32 %v3582_v18, %v3066_v58  ;;  %2973 = vst.msk [vmem:[#allocation2 + $0x88] sm:$0xff] %vm243_vm4, %v2925_v36  ;;  %v2930_v61 = vadd.f32 %v8011_v59, %v2460_v57  ;;  %8213 = vmatprep.mubr.msk.bf16.mxu1 %vm509_vm1, %v5428_v50  ;;  %v6164_v18 = vrot.slane %v9637_v46, 1  ;;  %v5465_v59 = vshll.u32 %v9668_v34, 16  ;;  %v9720_v31 = vld [vmem:[%s8601_s29 + $0xc0] sm:$0xff]  }
 0x18b   : > { %v3071_v3 = vld [vmem:[#allocation2 + $0x90] sm:$0xff]  ;;  %v2797_v6 = vpop.f32.mrf.mxu1  ;;  %v8061_v7 = vpop.f32.mrf.mxu0  ;;  %8260 = vmatmul.mubr.msk.bf16.gmra.mxu0 %vm509_vm1, %v6159_v53  ;;  %v5455_v50 = vor.u32 %v5453_v30, %v5451_v44  ;;  %v6166_v53 = vrot.slane %v9665_v33, 1 }
 0x18c   : > { %3783 = vst.msk [vmem:[#allocation2 + $0x68] sm:$0xff] %vm243_vm4, %v3735_v24  ;;  %v3740_v5 = vadd.f32 %v8057_v29, %v3071_v3  ;;  %2978 = vst.msk [vmem:[#allocation2 + $0xb0] sm:$0xff] %vm243_vm4, %v2930_v61  ;;  %v2928_v14 = vadd.f32 %v2797_v6, %v2458_v4  ;;  %8263 = vmatprep.mubr.msk.bf16.mxu0 %vm509_vm1, %v6161_v0  ;;  %v5444_v29 = vsel %vm1129_vm3, %v5439_v8, %v5443_v10  ;;  %v2463_v3 = vld [vmem:[#allocation2 + $0xc8] sm:$0xff] }
 0x18d   : > { %v3069_v13 = vld [vmem:[#allocation2 + $0x80] sm:$0xff]  ;;  %v8012_v16 = vpop.f32.mrf.mxu1  ;;  %v3611_v9 = vpop.f32.mrf.mxu0  ;;  %v6165_v45 = vsel %vm1944_vm2, %v6162_v12, %v6164_v18  ;;  %v5452_v24 = vsel %vm1129_vm3, %v5447_v42, %v5451_v44  ;;  %v5461_v61 = vshrl.u32 %v9644_v11, 16  ;;  %v5469_v8 = vshrl.u32 %v9668_v34, 16  ;;  %v9703_v12 = vld [vmem:[%s8601_s29 + $0xa8] sm:$0xff]   ;;  %v2469_v34 = vld [vmem:[#allocation2 + $0xf8] sm:$0xff] }
 0x18e   : > { %3788 = vst.msk [vmem:[#allocation2 + $0x90] sm:$0xff] %vm243_vm4, %v3740_v5  ;;  %v3738_v22 = vadd.f32 %v3595_v40, %v3069_v13  ;;  %2976 = vst.msk [vmem:[#allocation2 + $0xa0] sm:$0xff] %vm243_vm4, %v2928_v14  ;;  %v2931_v23 = vadd.f32 %v8012_v16, %v2461_v15  ;;  %v5473_v10 = vshll.u32 %v9682_v52, 16  ;;  %v6167_v11 = vsel %vm1944_vm2, %v6164_v18, %v6166_v53  ;;  %v9706_v13 = vld [vmem:[%s8601_s29 + $0xb8] sm:$0xff]   ;;  %v2468_v16 = vld [vmem:[#allocation2 + $0xf0] sm:$0xff] }
 0x18f   : > { %v3072_v21 = vld [vmem:[#allocation2 + $0x98] sm:$0xff]  ;;  %v2800_v27 = vpop.f32.mrf.mxu1  ;;  %v8062_v28 = vpop.f32.mrf.mxu0  ;;  %v5463_v19 = vor.u32 %v5461_v61, %v5459_v51 }
 0x190   : > { %3786 = vst.msk [vmem:[#allocation2 + $0x80] sm:$0xff] %vm243_vm4, %v3738_v22  ;;  %v3741_v35 = vadd.f32 %v8058_v49, %v3072_v21  ;;  %2979 = vst.msk [vmem:[#allocation2 + $0xb8] sm:$0xff] %vm243_vm4, %v2931_v23  ;;  %v2929_v20 = vadd.f32 %v2800_v27, %v2459_v26  ;;  %v5467_v22 = vrot.slane %v5465_v59, 1  ;;  %v2466_v26 = vld [vmem:[#allocation2 + $0xe0] sm:$0xff]  ;;  %v5475_v30 = vrot.slane %v5473_v10, 1  ;;  %v9758_v10 = vld [vmem:[%s8601_s29 + $0xd0] sm:$0xff]  }
 0x191   : > { %v3070_v37 = vld [vmem:[#allocation2 + $0x88] sm:$0xff]  ;;  %v8015_v40 = vpop.f32.mrf.mxu1  ;;  %8214 = vmatmul.mubr.msk.bf16.gmra.mxu1 %vm509_vm1, %v5436_v2  ;;  %v3614_v39 = vpop.f32.mrf.mxu0  ;;  %v9713_v2 = vld [vmem:[%s8601_s29 + $0xb0] sm:$0xff]  }
 0x192   : > { %3789 = vst.msk [vmem:[#allocation2 + $0x98] sm:$0xff] %vm243_vm4, %v3741_v35  ;;  %v3739_v1 = vadd.f32 %v3598_v60, %v3070_v37  ;;  %2977 = vst.msk [vmem:[#allocation2 + $0xa8] sm:$0xff] %vm243_vm4, %v2929_v20  ;;  %v2934_v41 = vadd.f32 %v8015_v40, %v2464_v38  ;;  %8217 = vmatprep.mubr.msk.bf16.mxu1 %vm509_vm1, %v5444_v29  ;;  %v6168_v60 = vrot.slane %v9675_v25, 1  ;;  %v5481_v40 = vshll.u32 %v9706_v13, 16 }
 0x193   : > { %v3075_v43 = vld [vmem:[#allocation2 + $0xb0] sm:$0xff]  ;;  %v2813_v48 = vpop.f32.mrf.mxu1  ;;  %v8065_v49 = vpop.f32.mrf.mxu0  ;;  %8264 = vmatmul.mubr.msk.bf16.gmra.mxu0 %vm509_vm1, %v6163_v32  ;;  %v5471_v29 = vor.u32 %v5469_v8, %v5467_v22  ;;  %v6170_v32 = vrot.slane %v9703_v12, 1 }
 0x194   : > { %3787 = vst.msk [vmem:[#allocation2 + $0x88] sm:$0xff] %vm243_vm4, %v3739_v1  ;;  %v3744_v55 = vadd.f32 %v8061_v7, %v3075_v43  ;;  %2982 = vst.msk [vmem:[#allocation2 + $0xd0] sm:$0xff] %vm243_vm4, %v2934_v41  ;;  %v2932_v36 = vadd.f32 %v2813_v48, %v2462_v47  ;;  %8267 = vmatprep.mubr.msk.bf16.mxu0 %vm509_vm1, %v6165_v45  ;;  %v5460_v7 = vsel %vm1129_vm3, %v5455_v50, %v5459_v51  ;;  %v2467_v43 = vld [vmem:[#allocation2 + $0xe8] sm:$0xff] }
 0x195   : > { %v3073_v54 = vld [vmem:[#allocation2 + $0xa0] sm:$0xff]  ;;  %v8016_v58 = vpop.f32.mrf.mxu1  ;;  %v3627_v57 = vpop.f32.mrf.mxu0  ;;  %v6169_v23 = vsel %vm1944_vm2, %v6166_v53, %v6168_v60  ;;  %v5468_v1 = vsel %vm1129_vm3, %v5463_v19, %v5467_v22  ;;  %v5477_v41 = vshrl.u32 %v9682_v52, 16  ;;  %v5485_v50 = vshrl.u32 %v9706_v13, 16  ;;  %v9741_v53 = vld [vmem:[%s8601_s29 + $0xb8] sm:$0xff]  }
 0x196   : > { %3792 = vst.msk [vmem:[#allocation2 + $0xb0] sm:$0xff] %vm243_vm4, %v3744_v55  ;;  %v3742_v63 = vadd.f32 %v3611_v9, %v3073_v54  ;;  %2980 = vst.msk [vmem:[#allocation2 + $0xc0] sm:$0xff] %vm243_vm4, %v2932_v36  ;;  %v2935_v0 = vadd.f32 %v8016_v58, %v2465_v56  ;;  %v5489_v51 = vshll.u32 %v9720_v31, 16  ;;  %v6171_v52 = vsel %vm1944_vm2, %v6168_v60, %v6170_v32  ;;  %v9744_v54 = vld [vmem:[%s8601_s29 + $0xc8] sm:$0xff]   ;;  %v2472_v58 = vld [vmem:[#allocation2 + $0x110] sm:$0xff] }
 0x197   : > { %v3076_v62 = vld [vmem:[#allocation2 + $0xb8] sm:$0xff]  ;;  %v2816_v4 = vpop.f32.mrf.mxu1  ;;  %v8066_v6 = vpop.f32.mrf.mxu0  ;;  %v5479_v61 = vor.u32 %v5477_v41, %v5475_v30 }
 0x198   : > { %3790 = vst.msk [vmem:[#allocation2 + $0xa0] sm:$0xff] %vm243_vm4, %v3742_v63  ;;  %v3745_v5 = vadd.f32 %v8062_v28, %v3076_v62  ;;  %2983 = vst.msk [vmem:[#allocation2 + $0xd8] sm:$0xff] %vm243_vm4, %v2935_v0  ;;  %v2933_v14 = vadd.f32 %v2816_v4, %v2463_v3  ;;  %v5483_v63 = vrot.slane %v5481_v40, 1  ;;  %v2470_v3 = vld [vmem:[#allocation2 + $0x100] sm:$0xff]  ;;  %v5491_v8 = vrot.slane %v5489_v51, 1  ;;  %v2473_v13 = vld [vmem:[#allocation2 + $0x118] sm:$0xff] }
 0x199   : > { %v3074_v15 = vld [vmem:[#allocation2 + $0xa8] sm:$0xff]  ;;  %v8019_v9 = vpop.f32.mrf.mxu1  ;;  %8218 = vmatmul.mubr.msk.bf16.gmra.mxu1 %vm509_vm1, %v5452_v24  ;;  %v3630_v17 = vpop.f32.mrf.mxu0  ;;  %v9751_v24 = vld [vmem:[%s8601_s29 + $0xc0] sm:$0xff]   ;;  %v8528_v41 = vld [vmem:[%s8601_s29 + $0xd8] ss:$0 sps:$4 sm:$0x11]  }
 0x19a   : > { %3793 = vst.msk [vmem:[#allocation2 + $0xb8] sm:$0xff] %vm243_vm4, %v3745_v5  ;;  %v3743_v46 = vadd.f32 %v3614_v39, %v3074_v15  ;;  %2981 = vst.msk [vmem:[#allocation2 + $0xc8] sm:$0xff] %vm243_vm4, %v2933_v14  ;;  %v2938_v18 = vadd.f32 %v8019_v9, %v2468_v16  ;;  %8221 = vmatprep.mubr.msk.bf16.mxu1 %vm509_vm1, %v5460_v7  ;;  %v6172_v39 = vrot.slane %v9713_v2, 1  ;;  %v5493_v9 = vshrl.u32 %v9720_v31, 16 }
 0x19b   : > { %v3079_v21 = vld [vmem:[#allocation2 + $0xd0] sm:$0xff]  ;;  %v2829_v27 = vpop.f32.mrf.mxu1  ;;  %v8069_v28 = vpop.f32.mrf.mxu0  ;;  %8268 = vmatmul.mubr.msk.bf16.gmra.mxu0 %vm509_vm1, %v6167_v11  ;;  %v5487_v7 = vor.u32 %v5485_v50, %v5483_v63  ;;  %v6174_v11 = vrot.slane %v9741_v53, 1  ;;  %v6176_v22 = vrot.slane %v9751_v24, 1  ;;  %v2477_v53 = vld [vmem:[#allocation2 + $0x138] sm:$0xff] }
 0x19c   : > { %3791 = vst.msk [vmem:[#allocation2 + $0xa8] sm:$0xff] %vm243_vm4, %v3743_v46  ;;  %v3748_v35 = vadd.f32 %v8065_v49, %v3079_v21  ;;  %2986 = vst.msk [vmem:[#allocation2 + $0xf0] sm:$0xff] %vm243_vm4, %v2938_v18  ;;  %v2936_v20 = vadd.f32 %v2829_v27, %v2466_v26  ;;  %8271 = vmatprep.mubr.msk.bf16.mxu0 %vm509_vm1, %v6169_v23  ;;  %v5476_v49 = vsel %vm1129_vm3, %v5471_v29, %v5475_v30  ;;  %v2471_v21 = vld [vmem:[#allocation2 + $0x108] sm:$0xff] }
 0x19d   : > { %v3077_v33 = vld [vmem:[#allocation2 + $0xc0] sm:$0xff]  ;;  %v8020_v37 = vpop.f32.mrf.mxu1  ;;  %v3643_v38 = vpop.f32.mrf.mxu0  ;;  %v6173_v0 = vsel %vm1944_vm2, %v6170_v32, %v6172_v39  ;;  %v5484_v18 = vsel %vm1129_vm3, %v5479_v61, %v5483_v63  ;;  %v5501_v29 = vshrl.u32 %v9744_v54, 16  ;;  %v5505_v30 = vshll.u32 %v9758_v10, 16  ;;  %v8526_v32 = vld [vmem:[%s8601_s29 + $0xc8] sm:$0xff]  }
 0x19e   : > { %3796 = vst.msk [vmem:[#allocation2 + $0xd0] sm:$0xff] %vm243_vm4, %v3748_v35  ;;  %v3746_v44 = vadd.f32 %v3627_v57, %v3077_v33  ;;  %2984 = vst.msk [vmem:[#allocation2 + $0xe0] sm:$0xff] %vm243_vm4, %v2936_v20  ;;  %v2939_v45 = vadd.f32 %v8020_v37, %v2469_v34  ;;  %v6175_v20 = vsel %vm1944_vm2, %v6172_v39, %v6174_v11  ;;  %v2476_v34 = vld [vmem:[#allocation2 + $0x130] sm:$0xff]  ;;  %v2475_v61 = vld [vmem:[#allocation2 + $0x128] sm:$0xff] }
 0x19f   : > { %v3080_v42 = vld [vmem:[#allocation2 + $0xd8] sm:$0xff]  ;;  %v2832_v47 = vpop.f32.mrf.mxu1  ;;  %v8070_v48 = vpop.f32.mrf.mxu0  ;;  %v5495_v40 = vor.u32 %v5493_v9, %v5491_v8  ;;  %v5507_v50 = vrot.slane %v5505_v30, 1 }
 0x1a0   : > { %3794 = vst.msk [vmem:[#allocation2 + $0xc0] sm:$0xff] %vm243_vm4, %v3746_v44  ;;  %v3749_v55 = vadd.f32 %v8066_v6, %v3080_v42  ;;  %2987 = vst.msk [vmem:[#allocation2 + $0xf8] sm:$0xff] %vm243_vm4, %v2939_v45  ;;  %v2937_v36 = vadd.f32 %v2832_v47, %v2467_v43  ;;  %v6177_v45 = vsel %vm1944_vm2, %v6174_v11, %v6176_v22  ;;  %v2474_v43 = vld [vmem:[#allocation2 + $0x120] sm:$0xff] }
 0x1a1   : > { %v3078_v56 = vld [vmem:[#allocation2 + $0xc8] sm:$0xff]  ;;  %v8023_v57 = vpop.f32.mrf.mxu1  ;;  %8222 = vmatmul.mubr.msk.bf16.gmra.mxu1 %vm509_vm1, %v5468_v1  ;;  %v3646_v59 = vpop.f32.mrf.mxu0  ;;  %v9784_v1 = vld [vmem:[%s8601_s29 + $0xd0] sm:$0xff]  }
 0x1a2   : > { %3797 = vst.msk [vmem:[#allocation2 + $0xd8] sm:$0xff] %vm243_vm4, %v3749_v55  ;;  %v3747_v25 = vadd.f32 %v3630_v17, %v3078_v56  ;;  %2985 = vst.msk [vmem:[#allocation2 + $0xe8] sm:$0xff] %vm243_vm4, %v2937_v36  ;;  %v2942_v60 = vadd.f32 %v8023_v57, %v2472_v58  ;;  %8225 = vmatprep.mubr.msk.bf16.mxu1 %vm509_vm1, %v5476_v49  ;;  %v5497_v17 = vshll.u32 %v9744_v54, 16  ;;  %v6178_v36 = vrot.slane %v8526_v32, 1  ;;  %v2479_v32 = vld [vmem:[#allocation2 + $0x148] sm:$0xff] }
 0x1a3   : > { %v3083_v62 = vld [vmem:[#allocation2 + $0xf0] sm:$0xff]  ;;  %v2845_v4 = vpop.f32.mrf.mxu1  ;;  %v8073_v6 = vpop.f32.mrf.mxu0  ;;  %8272 = vmatmul.mubr.msk.bf16.gmra.mxu0 %vm509_vm1, %v6171_v52  ;;  %v6180_v57 = vrot.slane %v9784_v1, 1 }
 0x1a4   : > { %3795 = vst.msk [vmem:[#allocation2 + $0xc8] sm:$0xff] %vm243_vm4, %v3747_v25  ;;  %v3752_v5 = vadd.f32 %v8069_v28, %v3083_v62  ;;  %2990 = vst.msk [vmem:[#allocation2 + $0x110] sm:$0xff] %vm243_vm4, %v2942_v60  ;;  %v2940_v14 = vadd.f32 %v2845_v4, %v2470_v3  ;;  %8275 = vmatprep.mubr.msk.bf16.mxu0 %vm509_vm1, %v6173_v0  ;;  %v5492_v28 = vsel %vm1129_vm3, %v5487_v7, %v5491_v8 }
 0x1a5   : > { %v3081_v12 = vld [vmem:[#allocation2 + $0xe0] sm:$0xff]  ;;  %v8024_v15 = vpop.f32.mrf.mxu1  ;;  %v3659_v16 = vpop.f32.mrf.mxu0  ;;  %v5499_v44 = vrot.slane %v5497_v17, 1  ;;  %v5509_v0 = vshrl.u32 %v9758_v10, 16  ;;  %v5513_v25 = vshll.u32 %v8528_v41, 16  ;;  %v6179_v8 = vsel %vm1944_vm2, %v6176_v22, %v6178_v36  ;;  %v2480_v10 = vld [vmem:[#allocation2 + $0x150] sm:$0xff] }
 0x1a6   : > { %3800 = vst.msk [vmem:[#allocation2 + $0xf0] sm:$0xff] %vm243_vm4, %v3752_v5  ;;  %v3750_v23 = vadd.f32 %v3643_v38, %v3081_v12  ;;  %2988 = vst.msk [vmem:[#allocation2 + $0x100] sm:$0xff] %vm243_vm4, %v2940_v14  ;;  %v2943_v46 = vadd.f32 %v8024_v15, %v2473_v13  ;;  %v8530_v5 = vld [vmem:[%s8601_s29 + $0xd8] ss:$0 sps:$4 sm:$0x11]   ;;  %v6181_v13 = vsel %vm1944_vm2, %v6178_v36, %v6180_v57  ;;  %v2478_v22 = vld [vmem:[#allocation2 + $0x140] sm:$0xff] }
 0x1a7   : > { %v3084_v19 = vld [vmem:[#allocation2 + $0xf8] sm:$0xff]  ;;  %v2848_v26 = vpop.f32.mrf.mxu1  ;;  %v8074_v27 = vpop.f32.mrf.mxu0  ;;  %v5503_v49 = vor.u32 %v5501_v29, %v5499_v44  ;;  %v5500_v58 = vsel %vm1129_vm3, %v5495_v40, %v5499_v44  ;;  %v5511_v9 = vor.u32 %v5509_v0, %v5507_v50  ;;  %v5515_v24 = vrot.slane %v5513_v25, 1 }
 0x1a8   : > { %3798 = vst.msk [vmem:[#allocation2 + $0xe0] sm:$0xff] %vm243_vm4, %v3750_v23  ;;  %v3753_v31 = vadd.f32 %v8070_v48, %v3084_v19  ;;  %2991 = vst.msk [vmem:[#allocation2 + $0x118] sm:$0xff] %vm243_vm4, %v2943_v46  ;;  %v2941_v35 = vadd.f32 %v2848_v26, %v2471_v21  ;;  %v6182_v21 = vrot.slane %v8530_v5, 1 }
 0x1a9   : > { %v3082_v33 = vld [vmem:[#allocation2 + $0xe8] sm:$0xff]  ;;  %v8027_v37 = vpop.f32.mrf.mxu1  ;;  %8226 = vmatmul.mubr.msk.bf16.gmra.mxu1 %vm509_vm1, %v5484_v18  ;;  %v3662_v38 = vpop.f32.mrf.mxu0  ;;  %v5508_v4 = vsel %vm1129_vm3, %v5503_v49, %v5507_v50 }
 0x1aa   : > { %3801 = vst.msk [vmem:[#allocation2 + $0xf8] sm:$0xff] %vm243_vm4, %v3753_v31  ;;  %v3751_v2 = vadd.f32 %v3646_v59, %v3082_v33  ;;  %2989 = vst.msk [vmem:[#allocation2 + $0x108] sm:$0xff] %vm243_vm4, %v2941_v35  ;;  %v2946_v39 = vadd.f32 %v8027_v37, %v2476_v34  ;;  %8229 = vmatprep.mubr.msk.bf16.mxu1 %vm509_vm1, %v5492_v28  ;;  %v5516_v35 = vsel %vm1129_vm3, %v5511_v9, %v5515_v24 }
 0x1ab   : > { %v3087_v42 = vld [vmem:[#allocation2 + $0x110] sm:$0xff]  ;;  %v2861_v47 = vpop.f32.mrf.mxu1  ;;  %v8077_v48 = vpop.f32.mrf.mxu0  ;;  %8276 = vmatmul.mubr.msk.bf16.gmra.mxu0 %vm509_vm1, %v6175_v20  ;;  %v6183_v40 = vsel %vm1944_vm2, %v6180_v57, %v6182_v21 }
 0x1ac   : > { %3799 = vst.msk [vmem:[#allocation2 + $0xe8] sm:$0xff] %vm243_vm4, %v3751_v2  ;;  %v3756_v51 = vadd.f32 %v8073_v6, %v3087_v42  ;;  %2994 = vst.msk [vmem:[#allocation2 + $0x130] sm:$0xff] %vm243_vm4, %v2946_v39  ;;  %v2944_v55 = vadd.f32 %v2861_v47, %v2474_v43  ;;  %8279 = vmatprep.mubr.msk.bf16.mxu0 %vm509_vm1, %v6177_v45  ;;  %v2484_v45 = vld [vmem:[#allocation2 + $0x170] sm:$0xff]  ;;  %v2482_v43 = vld [vmem:[#allocation2 + $0x160] sm:$0xff] }
 0x1ad   : > { %v3085_v52 = vld [vmem:[#allocation2 + $0x100] sm:$0xff]  ;;  %v8028_v54 = vpop.f32.mrf.mxu1  ;;  %v3675_v56 = vpop.f32.mrf.mxu0  ;;  %v3873_v21 = vld [vmem:[#allocation2 + $0x30] sm:$0xff] }
 0x1ae   : > { %3804 = vst.msk [vmem:[#allocation2 + $0x110] sm:$0xff] %vm243_vm4, %v3756_v51  ;;  %v3754_v59 = vadd.f32 %v3659_v16, %v3085_v52  ;;  %2992 = vst.msk [vmem:[#allocation2 + $0x120] sm:$0xff] %vm243_vm4, %v2944_v55  ;;  %v2947_v63 = vadd.f32 %v8028_v54, %v2477_v53  ;;  %v2485_v55 = vld [vmem:[#allocation2 + $0x178] sm:$0xff] }
 0x1af   : > { %v3088_v60 = vld [vmem:[#allocation2 + $0x118] sm:$0xff]  ;;  %v2864_v62 = vpop.f32.mrf.mxu1  ;;  %v8078_v3 = vpop.f32.mrf.mxu0 }
 0x1b0   : > { %3802 = vst.msk [vmem:[#allocation2 + $0x100] sm:$0xff] %vm243_vm4, %v3754_v59  ;;  %v3757_v6 = vadd.f32 %v8074_v27, %v3088_v60  ;;  %2995 = vst.msk [vmem:[#allocation2 + $0x138] sm:$0xff] %vm243_vm4, %v2947_v63  ;;  %v2945_v7 = vadd.f32 %v2864_v62, %v2475_v61  ;;  %v2481_v27 = vld [vmem:[#allocation2 + $0x158] sm:$0xff]  ;;  %v3869_v60 = vld [vmem:[#allocation2 + $0x10] sm:$0xff] }
 0x1b1   : > { %v3086_v14 = vld [vmem:[#allocation2 + $0x108] sm:$0xff]  ;;  %v8031_v11 = vpop.f32.mrf.mxu1  ;;  %8230 = vmatmul.mubr.msk.bf16.gmra.mxu1 %vm509_vm1, %v5500_v58  ;;  %v3678_v12 = vpop.f32.mrf.mxu0 }
 0x1b2   : > { %3805 = vst.msk [vmem:[#allocation2 + $0x118] sm:$0xff] %vm243_vm4, %v3757_v6  ;;  %v3755_v15 = vadd.f32 %v3662_v38, %v3086_v14  ;;  %2993 = vst.msk [vmem:[#allocation2 + $0x128] sm:$0xff] %vm243_vm4, %v2945_v7  ;;  %v2950_v16 = vadd.f32 %v8031_v11, %v2480_v10  ;;  %8233 = vmatprep.mubr.msk.bf16.mxu1 %vm509_vm1, %v5508_v4  ;;  %v2483_v58 = vld [vmem:[#allocation2 + $0x168] sm:$0xff]  ;;  %v3867_v7 = vld [vmem:[#allocation2] sm:$0xff] }
 0x1b3   : > { %v3091_v17 = vld [vmem:[#allocation2 + $0x130] sm:$0xff]  ;;  %v2877_v23 = vpop.f32.mrf.mxu1  ;;  %v8081_v46 = vpop.f32.mrf.mxu0  ;;  %8280 = vmatmul.mubr.msk.bf16.gmra.mxu0 %vm509_vm1, %v6179_v8 }
 0x1b4   : > { %3803 = vst.msk [vmem:[#allocation2 + $0x108] sm:$0xff] %vm243_vm4, %v3755_v15  ;;  %v3760_v18 = vadd.f32 %v8077_v48, %v3091_v17  ;;  %2998 = vst.msk [vmem:[#allocation2 + $0x150] sm:$0xff] %vm243_vm4, %v2950_v16  ;;  %v2948_v19 = vadd.f32 %v2877_v23, %v2478_v22  ;;  %8283 = vmatprep.mubr.msk.bf16.mxu0 %vm509_vm1, %v6181_v13  ;;  %v3868_v17 = vld [vmem:[#allocation2 + $0x8] sm:$0xff] }
 0x1b5   : > { %v3089_v26 = vld [vmem:[#allocation2 + $0x120] sm:$0xff]  ;;  %v8032_v28 = vpop.f32.mrf.mxu1  ;;  %v3691_v29 = vpop.f32.mrf.mxu0 }
 0x1b6   : > { %3808 = vst.msk [vmem:[#allocation2 + $0x130] sm:$0xff] %vm243_vm4, %v3760_v18  ;;  %v3758_v30 = vadd.f32 %v3675_v56, %v3089_v26  ;;  %2996 = vst.msk [vmem:[#allocation2 + $0x140] sm:$0xff] %vm243_vm4, %v2948_v19  ;;  %v2951_v31 = vadd.f32 %v8032_v28, %v2481_v27 }
 0x1b7   : > { %v3092_v20 = vld [vmem:[#allocation2 + $0x138] sm:$0xff]  ;;  %v2880_v33 = vpop.f32.mrf.mxu1  ;;  %v8082_v34 = vpop.f32.mrf.mxu0 }
 0x1b8   : > { %3806 = vst.msk [vmem:[#allocation2 + $0x120] sm:$0xff] %vm243_vm4, %v3758_v30  ;;  %v3761_v37 = vadd.f32 %v8078_v3, %v3092_v20  ;;  %2999 = vst.msk [vmem:[#allocation2 + $0x158] sm:$0xff] %vm243_vm4, %v2951_v31  ;;  %v2949_v38 = vadd.f32 %v2880_v33, %v2479_v32  ;;  %v3871_v31 = vld [vmem:[#allocation2 + $0x20] sm:$0xff] }
 0x1b9   : > { %v3090_v44 = vld [vmem:[#allocation2 + $0x128] sm:$0xff]  ;;  %v8035_v1 = vpop.f32.mrf.mxu1  ;;  %8234 = vmatmul.mubr.msk.bf16.gmra.mxu1 %vm509_vm1, %v5516_v35  ;;  %v3694_v2 = vpop.f32.mrf.mxu0 }
 0x1ba   : > { %3809 = vst.msk [vmem:[#allocation2 + $0x138] sm:$0xff] %vm243_vm4, %v3761_v37  ;;  %v3759_v39 = vadd.f32 %v3678_v12, %v3090_v44  ;;  %2997 = vst.msk [vmem:[#allocation2 + $0x148] sm:$0xff] %vm243_vm4, %v2949_v38  ;;  %v2954_v41 = vadd.f32 %v8035_v1, %v2484_v45  ;;  %v3870_v12 = vld [vmem:[#allocation2 + $0x18] sm:$0xff] }
 0x1bb   : > { %v3095_v42 = vld [vmem:[#allocation2 + $0x150] sm:$0xff]  ;;  %v2893_v47 = vpop.f32.mrf.mxu1  ;;  %v8085_v48 = vpop.f32.mrf.mxu0  ;;  %8284 = vmatmul.mubr.msk.bf16.gmra.mxu0 %vm509_vm1, %v6183_v40  ;;  %v3874_v37 = vld [vmem:[#allocation2 + $0x38] sm:$0xff] }
 0x1bc   : > { %3807 = vst.msk [vmem:[#allocation2 + $0x128] sm:$0xff] %vm243_vm4, %v3759_v39  ;;  %v3764_v49 = vadd.f32 %v8081_v46, %v3095_v42  ;;  %3002 = vst.msk [vmem:[#allocation2 + $0x170] sm:$0xff] %vm243_vm4, %v2954_v41  ;;  %v2952_v50 = vadd.f32 %v2893_v47, %v2482_v43 }
 0x1bd   : > { %v3093_v51 = vld [vmem:[#allocation2 + $0x140] sm:$0xff]  ;;  %v8036_v36 = vpop.f32.mrf.mxu1  ;;  %v3707_v52 = vpop.f32.mrf.mxu0 }
 0x1be   : > { %3812 = vst.msk [vmem:[#allocation2 + $0x150] sm:$0xff] %vm243_vm4, %v3764_v49  ;;  %v3762_v53 = vadd.f32 %v3691_v29, %v3093_v51  ;;  %3000 = vst.msk [vmem:[#allocation2 + $0x160] sm:$0xff] %vm243_vm4, %v2952_v50  ;;  %v2955_v54 = vadd.f32 %v8036_v36, %v2485_v55 }
 0x1bf   : > { %v3096_v56 = vld [vmem:[#allocation2 + $0x158] sm:$0xff]  ;;  %v2896_v57 = vpop.f32.mrf.mxu1  ;;  %v8086_v59 = vpop.f32.mrf.mxu0 }
 0x1c0   : > { %3810 = vst.msk [vmem:[#allocation2 + $0x140] sm:$0xff] %vm243_vm4, %v3762_v53  ;;  %v3765_v63 = vadd.f32 %v8082_v34, %v3096_v56  ;;  %3003 = vst.msk [vmem:[#allocation2 + $0x178] sm:$0xff] %vm243_vm4, %v2955_v54  ;;  %v2953_v0 = vadd.f32 %v2896_v57, %v2483_v58 }
 0x1c1   : > { %v3094_v25 = vld [vmem:[#allocation2 + $0x148] sm:$0xff]  ;;  %v8091_v61 = vpop.f32.mrf.mxu1  ;;  %v3710_v62 = vpop.f32.mrf.mxu0 }
 0x1c2   : > { %3813 = vst.msk [vmem:[#allocation2 + $0x158] sm:$0xff] %vm243_vm4, %v3765_v63  ;;  %v3763_v3 = vadd.f32 %v3694_v2, %v3094_v25  ;;  %3001 = vst.msk [vmem:[#allocation2 + $0x168] sm:$0xff] %vm243_vm4, %v2953_v0  ;;  %v4391_v4 = vadd.f32 %v8091_v61, %v3869_v60  ;;  %v3872_v2 = vld [vmem:[#allocation2 + $0x28] sm:$0xff] }
 0x1c3   : > { %v3099_v6 = vld [vmem:[#allocation2 + $0x170] sm:$0xff]  ;;  %v4198_v8 = vpop.f32.mrf.mxu1  ;;  %v8141_v5 = vpop.f32.mrf.mxu0 }
 0x1c4   : > { %3811 = vst.msk [vmem:[#allocation2 + $0x148] sm:$0xff] %vm243_vm4, %v3763_v3  ;;  %v3768_v14 = vadd.f32 %v8085_v48, %v3099_v6  ;;  %4439 = vst.msk [vmem:[#allocation2 + $0x10] sm:$0xff] %vm243_vm4, %v4391_v4  ;;  %v4389_v10 = vadd.f32 %v4198_v8, %v3867_v7  ;;  %v3877_v48 = vld [vmem:[#allocation2 + $0x50] sm:$0xff] }
 0x1c5   : > { %v3097_v11 = vld [vmem:[#allocation2 + $0x160] sm:$0xff]  ;;  %v8092_v13 = vpop.f32.mrf.mxu1  ;;  %v4812_v15 = vpop.f32.mrf.mxu0 }
 0x1c6   : > { %3816 = vst.msk [vmem:[#allocation2 + $0x170] sm:$0xff] %vm243_vm4, %v3768_v14  ;;  %v3766_v16 = vadd.f32 %v3707_v52, %v3097_v11  ;;  %4437 = vst.msk [vmem:[#allocation2] sm:$0xff] %vm243_vm4, %v4389_v10  ;;  %v4392_v9 = vadd.f32 %v8092_v13, %v3870_v12  ;;  %v3875_v52 = vld [vmem:[#allocation2 + $0x40] sm:$0xff] }
 0x1c7   : > { %v3100_v24 = vld [vmem:[#allocation2 + $0x178] sm:$0xff]  ;;  %v4201_v22 = vpop.f32.mrf.mxu1  ;;  %v8142_v23 = vpop.f32.mrf.mxu0 }
 0x1c8   : > { %3814 = vst.msk [vmem:[#allocation2 + $0x160] sm:$0xff] %vm243_vm4, %v3766_v16  ;;  %v3769_v46 = vadd.f32 %v8086_v59, %v3100_v24  ;;  %4440 = vst.msk [vmem:[#allocation2 + $0x18] sm:$0xff] %vm243_vm4, %v4392_v9  ;;  %v4390_v18 = vadd.f32 %v4201_v22, %v3868_v17  ;;  %v3878_v59 = vld [vmem:[#allocation2 + $0x58] sm:$0xff] }
 0x1c9   : > { %v3098_v19 = vld [vmem:[#allocation2 + $0x168] sm:$0xff]  ;;  %v8095_v26 = vpop.f32.mrf.mxu1  ;;  %v4815_v27 = vpop.f32.mrf.mxu0 }
 0x1ca   : > { %3817 = vst.msk [vmem:[#allocation2 + $0x178] sm:$0xff] %vm243_vm4, %v3769_v46  ;;  %v3767_v28 = vadd.f32 %v3710_v62, %v3098_v19  ;;  %4438 = vst.msk [vmem:[#allocation2 + $0x8] sm:$0xff] %vm243_vm4, %v4390_v18  ;;  %v4395_v29 = vadd.f32 %v8095_v26, %v3873_v21  ;;  %v3876_v62 = vld [vmem:[#allocation2 + $0x48] sm:$0xff] }
 0x1cb   : > { %v4535_v30 = vld [vmem:[#allocation2 + $0x10] sm:$0xff]  ;;  %v4214_v35 = vpop.f32.mrf.mxu1  ;;  %v8145_v20 = vpop.f32.mrf.mxu0 }
 0x1cc   : > { %3815 = vst.msk [vmem:[#allocation2 + $0x168] sm:$0xff] %vm243_vm4, %v3767_v28  ;;  %v5005_v32 = vadd.f32 %v8141_v5, %v4535_v30  ;;  %4443 = vst.msk [vmem:[#allocation2 + $0x30] sm:$0xff] %vm243_vm4, %v4395_v29  ;;  %v4393_v33 = vadd.f32 %v4214_v35, %v3871_v31  ;;  %v3881_v5 = vld [vmem:[#allocation2 + $0x70] sm:$0xff] }
 0x1cd   : > { %v4533_v34 = vld [vmem:[#allocation2] sm:$0xff]  ;;  %v8096_v38 = vpop.f32.mrf.mxu1  ;;  %v4828_v40 = vpop.f32.mrf.mxu0 }
 0x1ce   : > { %5053 = vst.msk [vmem:[#allocation2 + $0x10] sm:$0xff] %vm243_vm4, %v5005_v32  ;;  %v5003_v44 = vadd.f32 %v4812_v15, %v4533_v34  ;;  %4441 = vst.msk [vmem:[#allocation2 + $0x20] sm:$0xff] %vm243_vm4, %v4393_v33  ;;  %v4396_v45 = vadd.f32 %v8096_v38, %v3874_v37  ;;  %v3879_v15 = vld [vmem:[#allocation2 + $0x60] sm:$0xff] }
 0x1cf   : > { %v4536_v1 = vld [vmem:[#allocation2 + $0x18] sm:$0xff]  ;;  %v4217_v39 = vpop.f32.mrf.mxu1  ;;  %v8146_v41 = vpop.f32.mrf.mxu0 }
 0x1d0   : > { %5051 = vst.msk [vmem:[#allocation2] sm:$0xff] %vm243_vm4, %v5003_v44  ;;  %v5006_v42 = vadd.f32 %v8142_v23, %v4536_v1  ;;  %4444 = vst.msk [vmem:[#allocation2 + $0x38] sm:$0xff] %vm243_vm4, %v4396_v45  ;;  %v4394_v43 = vadd.f32 %v4217_v39, %v3872_v2  ;;  %v3882_v23 = vld [vmem:[#allocation2 + $0x78] sm:$0xff] }
 0x1d1   : > { %v4534_v47 = vld [vmem:[#allocation2 + $0x8] sm:$0xff]  ;;  %v8099_v49 = vpop.f32.mrf.mxu1  ;;  %v4831_v50 = vpop.f32.mrf.mxu0 }
 0x1d2   : > { %5054 = vst.msk [vmem:[#allocation2 + $0x18] sm:$0xff] %vm243_vm4, %v5006_v42  ;;  %v5004_v51 = vadd.f32 %v4815_v27, %v4534_v47  ;;  %4442 = vst.msk [vmem:[#allocation2 + $0x28] sm:$0xff] %vm243_vm4, %v4394_v43  ;;  %v4399_v55 = vadd.f32 %v8099_v49, %v3877_v48  ;;  %v3880_v27 = vld [vmem:[#allocation2 + $0x68] sm:$0xff] }
 0x1d3   : > { %v4539_v36 = vld [vmem:[#allocation2 + $0x30] sm:$0xff]  ;;  %v4230_v53 = vpop.f32.mrf.mxu1  ;;  %v8149_v54 = vpop.f32.mrf.mxu0 }
 0x1d4   : > { %5052 = vst.msk [vmem:[#allocation2 + $0x8] sm:$0xff] %vm243_vm4, %v5004_v51  ;;  %v5009_v56 = vadd.f32 %v8145_v20, %v4539_v36  ;;  %4447 = vst.msk [vmem:[#allocation2 + $0x50] sm:$0xff] %vm243_vm4, %v4399_v55  ;;  %v4397_v58 = vadd.f32 %v4230_v53, %v3875_v52  ;;  %v3885_v20 = vld [vmem:[#allocation2 + $0x90] sm:$0xff] }
 0x1d5   : > { %v4537_v57 = vld [vmem:[#allocation2 + $0x20] sm:$0xff]  ;;  %v8100_v63 = vpop.f32.mrf.mxu1  ;;  %v4844_v0 = vpop.f32.mrf.mxu0 }
 0x1d6   : > { %5057 = vst.msk [vmem:[#allocation2 + $0x30] sm:$0xff] %vm243_vm4, %v5009_v56  ;;  %v5007_v25 = vadd.f32 %v4828_v40, %v4537_v57  ;;  %4445 = vst.msk [vmem:[#allocation2 + $0x40] sm:$0xff] %vm243_vm4, %v4397_v58  ;;  %v4400_v60 = vadd.f32 %v8100_v63, %v3878_v59  ;;  %v3883_v40 = vld [vmem:[#allocation2 + $0x80] sm:$0xff] }
 0x1d7   : > { %v4540_v61 = vld [vmem:[#allocation2 + $0x38] sm:$0xff]  ;;  %v4233_v3 = vpop.f32.mrf.mxu1  ;;  %v8150_v4 = vpop.f32.mrf.mxu0 }
 0x1d8   : > { %5055 = vst.msk [vmem:[#allocation2 + $0x20] sm:$0xff] %vm243_vm4, %v5007_v25  ;;  %v5010_v6 = vadd.f32 %v8146_v41, %v4540_v61  ;;  %4448 = vst.msk [vmem:[#allocation2 + $0x58] sm:$0xff] %vm243_vm4, %v4400_v60  ;;  %v4398_v7 = vadd.f32 %v4233_v3, %v3876_v62  ;;  %v3886_v41 = vld [vmem:[#allocation2 + $0x98] sm:$0xff] }
 0x1d9   : > { %v4538_v8 = vld [vmem:[#allocation2 + $0x28] sm:$0xff]  ;;  %v8103_v14 = vpop.f32.mrf.mxu1  ;;  %v4847_v10 = vpop.f32.mrf.mxu0 }
 0x1da   : > { %5058 = vst.msk [vmem:[#allocation2 + $0x38] sm:$0xff] %vm243_vm4, %v5010_v6  ;;  %v5008_v11 = vadd.f32 %v4831_v50, %v4538_v8  ;;  %4446 = vst.msk [vmem:[#allocation2 + $0x48] sm:$0xff] %vm243_vm4, %v4398_v7  ;;  %v4403_v12 = vadd.f32 %v8103_v14, %v3881_v5  ;;  %v3884_v50 = vld [vmem:[#allocation2 + $0x88] sm:$0xff] }
 0x1db   : > { %v4543_v13 = vld [vmem:[#allocation2 + $0x50] sm:$0xff]  ;;  %v4246_v16 = vpop.f32.mrf.mxu1  ;;  %v8153_v9 = vpop.f32.mrf.mxu0 }
 0x1dc   : > { %5056 = vst.msk [vmem:[#allocation2 + $0x28] sm:$0xff] %vm243_vm4, %v5008_v11  ;;  %v5013_v24 = vadd.f32 %v8149_v54, %v4543_v13  ;;  %4451 = vst.msk [vmem:[#allocation2 + $0x70] sm:$0xff] %vm243_vm4, %v4403_v12  ;;  %v4401_v17 = vadd.f32 %v4246_v16, %v3879_v15  ;;  %v3889_v54 = vld [vmem:[#allocation2 + $0xb0] sm:$0xff] }
 0x1dd   : > { %v4541_v22 = vld [vmem:[#allocation2 + $0x40] sm:$0xff]  ;;  %v8104_v46 = vpop.f32.mrf.mxu1  ;;  %v4860_v18 = vpop.f32.mrf.mxu0 }
 0x1de   : > { %5061 = vst.msk [vmem:[#allocation2 + $0x50] sm:$0xff] %vm243_vm4, %v5013_v24  ;;  %v5011_v19 = vadd.f32 %v4844_v0, %v4541_v22  ;;  %4449 = vst.msk [vmem:[#allocation2 + $0x60] sm:$0xff] %vm243_vm4, %v4401_v17  ;;  %v4404_v21 = vadd.f32 %v8104_v46, %v3882_v23  ;;  %v3887_v0 = vld [vmem:[#allocation2 + $0xa0] sm:$0xff] }
 0x1df   : > { %v4544_v26 = vld [vmem:[#allocation2 + $0x58] sm:$0xff]  ;;  %v4249_v28 = vpop.f32.mrf.mxu1  ;;  %v8154_v29 = vpop.f32.mrf.mxu0 }
 0x1e0   : > { %5059 = vst.msk [vmem:[#allocation2 + $0x40] sm:$0xff] %vm243_vm4, %v5011_v19  ;;  %v5014_v30 = vadd.f32 %v8150_v4, %v4544_v26  ;;  %4452 = vst.msk [vmem:[#allocation2 + $0x78] sm:$0xff] %vm243_vm4, %v4404_v21  ;;  %v4402_v31 = vadd.f32 %v4249_v28, %v3880_v27  ;;  %v3890_v4 = vld [vmem:[#allocation2 + $0xb8] sm:$0xff] }
 0x1e1   : > { %v4542_v35 = vld [vmem:[#allocation2 + $0x48] sm:$0xff]  ;;  %v8107_v32 = vpop.f32.mrf.mxu1  ;;  %v4863_v33 = vpop.f32.mrf.mxu0 }
 0x1e2   : > { %5062 = vst.msk [vmem:[#allocation2 + $0x58] sm:$0xff] %vm243_vm4, %v5014_v30  ;;  %v5012_v34 = vadd.f32 %v4847_v10, %v4542_v35  ;;  %4450 = vst.msk [vmem:[#allocation2 + $0x68] sm:$0xff] %vm243_vm4, %v4402_v31  ;;  %v4407_v37 = vadd.f32 %v8107_v32, %v3885_v20  ;;  %v3888_v10 = vld [vmem:[#allocation2 + $0xa8] sm:$0xff] }
 0x1e3   : > { %v4547_v38 = vld [vmem:[#allocation2 + $0x70] sm:$0xff]  ;;  %v4262_v44 = vpop.f32.mrf.mxu1  ;;  %v8157_v45 = vpop.f32.mrf.mxu0 }
 0x1e4   : > { %5060 = vst.msk [vmem:[#allocation2 + $0x48] sm:$0xff] %vm243_vm4, %v5012_v34  ;;  %v5017_v1 = vadd.f32 %v8153_v9, %v4547_v38  ;;  %4455 = vst.msk [vmem:[#allocation2 + $0x90] sm:$0xff] %vm243_vm4, %v4407_v37  ;;  %v4405_v2 = vadd.f32 %v4262_v44, %v3883_v40  ;;  %v3893_v9 = vld [vmem:[#allocation2 + $0xd0] sm:$0xff] }
 0x1e5   : > { %v4545_v39 = vld [vmem:[#allocation2 + $0x60] sm:$0xff]  ;;  %v8108_v42 = vpop.f32.mrf.mxu1  ;;  %v4876_v43 = vpop.f32.mrf.mxu0 }
 0x1e6   : > { %5065 = vst.msk [vmem:[#allocation2 + $0x70] sm:$0xff] %vm243_vm4, %v5017_v1  ;;  %v5015_v47 = vadd.f32 %v4860_v18, %v4545_v39  ;;  %4453 = vst.msk [vmem:[#allocation2 + $0x80] sm:$0xff] %vm243_vm4, %v4405_v2  ;;  %v4408_v48 = vadd.f32 %v8108_v42, %v3886_v41  ;;  %v3891_v18 = vld [vmem:[#allocation2 + $0xc0] sm:$0xff] }
 0x1e7   : > { %v4548_v49 = vld [vmem:[#allocation2 + $0x78] sm:$0xff]  ;;  %v4265_v51 = vpop.f32.mrf.mxu1  ;;  %v8158_v55 = vpop.f32.mrf.mxu0 }
 0x1e8   : > { %5063 = vst.msk [vmem:[#allocation2 + $0x60] sm:$0xff] %vm243_vm4, %v5015_v47  ;;  %v5018_v36 = vadd.f32 %v8154_v29, %v4548_v49  ;;  %4456 = vst.msk [vmem:[#allocation2 + $0x98] sm:$0xff] %vm243_vm4, %v4408_v48  ;;  %v4406_v52 = vadd.f32 %v4265_v51, %v3884_v50  ;;  %v3894_v29 = vld [vmem:[#allocation2 + $0xd8] sm:$0xff] }
 0x1e9   : > { %v4546_v53 = vld [vmem:[#allocation2 + $0x68] sm:$0xff]  ;;  %v8111_v56 = vpop.f32.mrf.mxu1  ;;  %v4879_v58 = vpop.f32.mrf.mxu0 }
 0x1ea   : > { %5066 = vst.msk [vmem:[#allocation2 + $0x78] sm:$0xff] %vm243_vm4, %v5018_v36  ;;  %v5016_v57 = vadd.f32 %v4863_v33, %v4546_v53  ;;  %4454 = vst.msk [vmem:[#allocation2 + $0x88] sm:$0xff] %vm243_vm4, %v4406_v52  ;;  %v4411_v59 = vadd.f32 %v8111_v56, %v3889_v54  ;;  %v3892_v33 = vld [vmem:[#allocation2 + $0xc8] sm:$0xff] }
 0x1eb   : > { %v4551_v63 = vld [vmem:[#allocation2 + $0x90] sm:$0xff]  ;;  %v4278_v25 = vpop.f32.mrf.mxu1  ;;  %v8161_v60 = vpop.f32.mrf.mxu0 }
 0x1ec   : > { %5064 = vst.msk [vmem:[#allocation2 + $0x68] sm:$0xff] %vm243_vm4, %v5016_v57  ;;  %v5021_v61 = vadd.f32 %v8157_v45, %v4551_v63  ;;  %4459 = vst.msk [vmem:[#allocation2 + $0xb0] sm:$0xff] %vm243_vm4, %v4411_v59  ;;  %v4409_v62 = vadd.f32 %v4278_v25, %v3887_v0  ;;  %v3897_v45 = vld [vmem:[#allocation2 + $0xf0] sm:$0xff] }
 0x1ed   : > { %v4549_v3 = vld [vmem:[#allocation2 + $0x80] sm:$0xff]  ;;  %v8112_v6 = vpop.f32.mrf.mxu1  ;;  %v4892_v7 = vpop.f32.mrf.mxu0 }
 0x1ee   : > { %5069 = vst.msk [vmem:[#allocation2 + $0x90] sm:$0xff] %vm243_vm4, %v5021_v61  ;;  %v5019_v8 = vadd.f32 %v4876_v43, %v4549_v3  ;;  %4457 = vst.msk [vmem:[#allocation2 + $0xa0] sm:$0xff] %vm243_vm4, %v4409_v62  ;;  %v4412_v5 = vadd.f32 %v8112_v6, %v3890_v4  ;;  %v3895_v43 = vld [vmem:[#allocation2 + $0xe0] sm:$0xff] }
 0x1ef   : > { %v4552_v14 = vld [vmem:[#allocation2 + $0x98] sm:$0xff]  ;;  %v4281_v11 = vpop.f32.mrf.mxu1  ;;  %v8162_v12 = vpop.f32.mrf.mxu0 }
 0x1f0   : > { %5067 = vst.msk [vmem:[#allocation2 + $0x80] sm:$0xff] %vm243_vm4, %v5019_v8  ;;  %v5022_v13 = vadd.f32 %v8158_v55, %v4552_v14  ;;  %4460 = vst.msk [vmem:[#allocation2 + $0xb8] sm:$0xff] %vm243_vm4, %v4412_v5  ;;  %v4410_v15 = vadd.f32 %v4281_v11, %v3888_v10  ;;  %v3898_v55 = vld [vmem:[#allocation2 + $0xf8] sm:$0xff] }
 0x1f1   : > { %v4550_v16 = vld [vmem:[#allocation2 + $0x88] sm:$0xff]  ;;  %v8115_v24 = vpop.f32.mrf.mxu1  ;;  %v4895_v17 = vpop.f32.mrf.mxu0 }
 0x1f2   : > { %5070 = vst.msk [vmem:[#allocation2 + $0x98] sm:$0xff] %vm243_vm4, %v5022_v13  ;;  %v5020_v22 = vadd.f32 %v4879_v58, %v4550_v16  ;;  %4458 = vst.msk [vmem:[#allocation2 + $0xa8] sm:$0xff] %vm243_vm4, %v4410_v15  ;;  %v4415_v23 = vadd.f32 %v8115_v24, %v3893_v9  ;;  %v3896_v58 = vld [vmem:[#allocation2 + $0xe8] sm:$0xff] }
 0x1f3   : > { %v4555_v46 = vld [vmem:[#allocation2 + $0xb0] sm:$0xff]  ;;  %v4294_v19 = vpop.f32.mrf.mxu1  ;;  %v8165_v21 = vpop.f32.mrf.mxu0 }
 0x1f4   : > { %5068 = vst.msk [vmem:[#allocation2 + $0x88] sm:$0xff] %vm243_vm4, %v5020_v22  ;;  %v5025_v26 = vadd.f32 %v8161_v60, %v4555_v46  ;;  %4463 = vst.msk [vmem:[#allocation2 + $0xd0] sm:$0xff] %vm243_vm4, %v4415_v23  ;;  %v4413_v27 = vadd.f32 %v4294_v19, %v3891_v18  ;;  %v3901_v60 = vld [vmem:[#allocation2 + $0x110] sm:$0xff] }
 0x1f5   : > { %v4553_v28 = vld [vmem:[#allocation2 + $0xa0] sm:$0xff]  ;;  %v8116_v30 = vpop.f32.mrf.mxu1  ;;  %v4908_v31 = vpop.f32.mrf.mxu0 }
 0x1f6   : > { %5073 = vst.msk [vmem:[#allocation2 + $0xb0] sm:$0xff] %vm243_vm4, %v5025_v26  ;;  %v5023_v35 = vadd.f32 %v4892_v7, %v4553_v28  ;;  %4461 = vst.msk [vmem:[#allocation2 + $0xc0] sm:$0xff] %vm243_vm4, %v4413_v27  ;;  %v4416_v20 = vadd.f32 %v8116_v30, %v3894_v29  ;;  %v3899_v7 = vld [vmem:[#allocation2 + $0x100] sm:$0xff] }
 0x1f7   : > { %v4556_v32 = vld [vmem:[#allocation2 + $0xb8] sm:$0xff]  ;;  %v4297_v34 = vpop.f32.mrf.mxu1  ;;  %v8166_v37 = vpop.f32.mrf.mxu0 }
 0x1f8   : > { %5071 = vst.msk [vmem:[#allocation2 + $0xa0] sm:$0xff] %vm243_vm4, %v5023_v35  ;;  %v5026_v38 = vadd.f32 %v8162_v12, %v4556_v32  ;;  %4464 = vst.msk [vmem:[#allocation2 + $0xd8] sm:$0xff] %vm243_vm4, %v4416_v20  ;;  %v4414_v40 = vadd.f32 %v4297_v34, %v3892_v33  ;;  %v3902_v12 = vld [vmem:[#allocation2 + $0x118] sm:$0xff] }
 0x1f9   : > { %v4554_v44 = vld [vmem:[#allocation2 + $0xa8] sm:$0xff]  ;;  %v8119_v1 = vpop.f32.mrf.mxu1  ;;  %v4911_v2 = vpop.f32.mrf.mxu0 }
 0x1fa   : > { %5074 = vst.msk [vmem:[#allocation2 + $0xb8] sm:$0xff] %vm243_vm4, %v5026_v38  ;;  %v5024_v39 = vadd.f32 %v4895_v17, %v4554_v44  ;;  %4462 = vst.msk [vmem:[#allocation2 + $0xc8] sm:$0xff] %vm243_vm4, %v4414_v40  ;;  %v4419_v41 = vadd.f32 %v8119_v1, %v3897_v45  ;;  %v3900_v17 = vld [vmem:[#allocation2 + $0x108] sm:$0xff] }
 0x1fb   : > { %v4559_v42 = vld [vmem:[#allocation2 + $0xd0] sm:$0xff]  ;;  %v4310_v47 = vpop.f32.mrf.mxu1  ;;  %v8169_v48 = vpop.f32.mrf.mxu0 }
 0x1fc   : > { %5072 = vst.msk [vmem:[#allocation2 + $0xa8] sm:$0xff] %vm243_vm4, %v5024_v39  ;;  %v5029_v49 = vadd.f32 %v8165_v21, %v4559_v42  ;;  %4467 = vst.msk [vmem:[#allocation2 + $0xf0] sm:$0xff] %vm243_vm4, %v4419_v41  ;;  %v4417_v50 = vadd.f32 %v4310_v47, %v3895_v43  ;;  %v3905_v21 = vld [vmem:[#allocation2 + $0x130] sm:$0xff] }
 0x1fd   : > { %v4557_v51 = vld [vmem:[#allocation2 + $0xc0] sm:$0xff]  ;;  %v8120_v36 = vpop.f32.mrf.mxu1  ;;  %v4924_v52 = vpop.f32.mrf.mxu0 }
 0x1fe   : > { %5077 = vst.msk [vmem:[#allocation2 + $0xd0] sm:$0xff] %vm243_vm4, %v5029_v49  ;;  %v5027_v53 = vadd.f32 %v4908_v31, %v4557_v51  ;;  %4465 = vst.msk [vmem:[#allocation2 + $0xe0] sm:$0xff] %vm243_vm4, %v4417_v50  ;;  %v4420_v54 = vadd.f32 %v8120_v36, %v3898_v55  ;;  %v3903_v31 = vld [vmem:[#allocation2 + $0x120] sm:$0xff] }
 0x1ff   : > { %v4560_v56 = vld [vmem:[#allocation2 + $0xd8] sm:$0xff]  ;;  %v4313_v57 = vpop.f32.mrf.mxu1  ;;  %v8170_v59 = vpop.f32.mrf.mxu0 }
 0x200   : > { %5075 = vst.msk [vmem:[#allocation2 + $0xc0] sm:$0xff] %vm243_vm4, %v5027_v53  ;;  %v5030_v63 = vadd.f32 %v8166_v37, %v4560_v56  ;;  %4468 = vst.msk [vmem:[#allocation2 + $0xf8] sm:$0xff] %vm243_vm4, %v4420_v54  ;;  %v4418_v0 = vadd.f32 %v4313_v57, %v3896_v58  ;;  %v3906_v37 = vld [vmem:[#allocation2 + $0x138] sm:$0xff] }
 0x201   : > { %v4558_v25 = vld [vmem:[#allocation2 + $0xc8] sm:$0xff]  ;;  %v8123_v61 = vpop.f32.mrf.mxu1  ;;  %v4927_v62 = vpop.f32.mrf.mxu0 }
 0x202   : > { %5078 = vst.msk [vmem:[#allocation2 + $0xd8] sm:$0xff] %vm243_vm4, %v5030_v63  ;;  %v5028_v3 = vadd.f32 %v4911_v2, %v4558_v25  ;;  %4466 = vst.msk [vmem:[#allocation2 + $0xe8] sm:$0xff] %vm243_vm4, %v4418_v0  ;;  %v4423_v4 = vadd.f32 %v8123_v61, %v3901_v60  ;;  %v3904_v2 = vld [vmem:[#allocation2 + $0x128] sm:$0xff] }
 0x203   : > { %v4563_v6 = vld [vmem:[#allocation2 + $0xf0] sm:$0xff]  ;;  %v4326_v8 = vpop.f32.mrf.mxu1  ;;  %v8173_v5 = vpop.f32.mrf.mxu0 }
 0x204   : > { %5076 = vst.msk [vmem:[#allocation2 + $0xc8] sm:$0xff] %vm243_vm4, %v5028_v3  ;;  %v5033_v14 = vadd.f32 %v8169_v48, %v4563_v6  ;;  %4471 = vst.msk [vmem:[#allocation2 + $0x110] sm:$0xff] %vm243_vm4, %v4423_v4  ;;  %v4421_v10 = vadd.f32 %v4326_v8, %v3899_v7  ;;  %v3909_v48 = vld [vmem:[#allocation2 + $0x150] sm:$0xff] }
 0x205   : > { %v4561_v11 = vld [vmem:[#allocation2 + $0xe0] sm:$0xff]  ;;  %v8124_v13 = vpop.f32.mrf.mxu1  ;;  %v4940_v15 = vpop.f32.mrf.mxu0 }
 0x206   : > { %5081 = vst.msk [vmem:[#allocation2 + $0xf0] sm:$0xff] %vm243_vm4, %v5033_v14  ;;  %v5031_v16 = vadd.f32 %v4924_v52, %v4561_v11  ;;  %4469 = vst.msk [vmem:[#allocation2 + $0x100] sm:$0xff] %vm243_vm4, %v4421_v10  ;;  %v4424_v9 = vadd.f32 %v8124_v13, %v3902_v12  ;;  %v3907_v52 = vld [vmem:[#allocation2 + $0x140] sm:$0xff] }
 0x207   : > { %v4564_v24 = vld [vmem:[#allocation2 + $0xf8] sm:$0xff]  ;;  %v4329_v22 = vpop.f32.mrf.mxu1  ;;  %v8174_v23 = vpop.f32.mrf.mxu0 }
 0x208   : > { %5079 = vst.msk [vmem:[#allocation2 + $0xe0] sm:$0xff] %vm243_vm4, %v5031_v16  ;;  %v5034_v46 = vadd.f32 %v8170_v59, %v4564_v24  ;;  %4472 = vst.msk [vmem:[#allocation2 + $0x118] sm:$0xff] %vm243_vm4, %v4424_v9  ;;  %v4422_v18 = vadd.f32 %v4329_v22, %v3900_v17  ;;  %v3910_v59 = vld [vmem:[#allocation2 + $0x158] sm:$0xff] }
 0x209   : > { %v4562_v19 = vld [vmem:[#allocation2 + $0xe8] sm:$0xff]  ;;  %v8127_v26 = vpop.f32.mrf.mxu1  ;;  %v4943_v27 = vpop.f32.mrf.mxu0 }
 0x20a   : > { %5082 = vst.msk [vmem:[#allocation2 + $0xf8] sm:$0xff] %vm243_vm4, %v5034_v46  ;;  %v5032_v28 = vadd.f32 %v4927_v62, %v4562_v19  ;;  %4470 = vst.msk [vmem:[#allocation2 + $0x108] sm:$0xff] %vm243_vm4, %v4422_v18  ;;  %v4427_v29 = vadd.f32 %v8127_v26, %v3905_v21  ;;  %v3908_v62 = vld [vmem:[#allocation2 + $0x148] sm:$0xff] }
 0x20b   : > { %v4567_v30 = vld [vmem:[#allocation2 + $0x110] sm:$0xff]  ;;  %v4342_v35 = vpop.f32.mrf.mxu1  ;;  %v8177_v20 = vpop.f32.mrf.mxu0 }
 0x20c   : > { %5080 = vst.msk [vmem:[#allocation2 + $0xe8] sm:$0xff] %vm243_vm4, %v5032_v28  ;;  %v5037_v32 = vadd.f32 %v8173_v5, %v4567_v30  ;;  %4475 = vst.msk [vmem:[#allocation2 + $0x130] sm:$0xff] %vm243_vm4, %v4427_v29  ;;  %v4425_v33 = vadd.f32 %v4342_v35, %v3903_v31  ;;  %v3913_v5 = vld [vmem:[#allocation2 + $0x170] sm:$0xff] }
 0x20d   : > { %v4565_v34 = vld [vmem:[#allocation2 + $0x100] sm:$0xff]  ;;  %v8128_v38 = vpop.f32.mrf.mxu1  ;;  %v4956_v40 = vpop.f32.mrf.mxu0 }
 0x20e   : > { %5085 = vst.msk [vmem:[#allocation2 + $0x110] sm:$0xff] %vm243_vm4, %v5037_v32  ;;  %v5035_v44 = vadd.f32 %v4940_v15, %v4565_v34  ;;  %4473 = vst.msk [vmem:[#allocation2 + $0x120] sm:$0xff] %vm243_vm4, %v4425_v33  ;;  %v4428_v45 = vadd.f32 %v8128_v38, %v3906_v37  ;;  %v3911_v15 = vld [vmem:[#allocation2 + $0x160] sm:$0xff] }
 0x20f   : > { %v4568_v1 = vld [vmem:[#allocation2 + $0x118] sm:$0xff]  ;;  %v4345_v39 = vpop.f32.mrf.mxu1  ;;  %v8178_v41 = vpop.f32.mrf.mxu0 }
 0x210   : > { %5083 = vst.msk [vmem:[#allocation2 + $0x100] sm:$0xff] %vm243_vm4, %v5035_v44  ;;  %v5038_v42 = vadd.f32 %v8174_v23, %v4568_v1  ;;  %4476 = vst.msk [vmem:[#allocation2 + $0x138] sm:$0xff] %vm243_vm4, %v4428_v45  ;;  %v4426_v43 = vadd.f32 %v4345_v39, %v3904_v2  ;;  %v3914_v23 = vld [vmem:[#allocation2 + $0x178] sm:$0xff] }
 0x211   : > { %v4566_v47 = vld [vmem:[#allocation2 + $0x108] sm:$0xff]  ;;  %v8131_v49 = vpop.f32.mrf.mxu1  ;;  %v4959_v50 = vpop.f32.mrf.mxu0 }
 0x212   : > { %5086 = vst.msk [vmem:[#allocation2 + $0x118] sm:$0xff] %vm243_vm4, %v5038_v42  ;;  %v5036_v51 = vadd.f32 %v4943_v27, %v4566_v47  ;;  %4474 = vst.msk [vmem:[#allocation2 + $0x128] sm:$0xff] %vm243_vm4, %v4426_v43  ;;  %v4431_v55 = vadd.f32 %v8131_v49, %v3909_v48  ;;  %v3912_v27 = vld [vmem:[#allocation2 + $0x168] sm:$0xff] }
 0x213   : > { %v4571_v36 = vld [vmem:[#allocation2 + $0x130] sm:$0xff]  ;;  %v4358_v53 = vpop.f32.mrf.mxu1  ;;  %v8181_v54 = vpop.f32.mrf.mxu0 }
 0x214   : > { %5084 = vst.msk [vmem:[#allocation2 + $0x108] sm:$0xff] %vm243_vm4, %v5036_v51  ;;  %v5041_v56 = vadd.f32 %v8177_v20, %v4571_v36  ;;  %4479 = vst.msk [vmem:[#allocation2 + $0x150] sm:$0xff] %vm243_vm4, %v4431_v55  ;;  %v4429_v58 = vadd.f32 %v4358_v53, %v3907_v52  ;;  %v5150_v20 = vld [vmem:[#allocation2 + $0x10] sm:$0xff] }
 0x215   : > { %v4569_v57 = vld [vmem:[#allocation2 + $0x120] sm:$0xff]  ;;  %v8132_v63 = vpop.f32.mrf.mxu1  ;;  %v4972_v0 = vpop.f32.mrf.mxu0 }
 0x216   : > { %5089 = vst.msk [vmem:[#allocation2 + $0x130] sm:$0xff] %vm243_vm4, %v5041_v56  ;;  %v5039_v25 = vadd.f32 %v4956_v40, %v4569_v57  ;;  %4477 = vst.msk [vmem:[#allocation2 + $0x140] sm:$0xff] %vm243_vm4, %v4429_v58  ;;  %v4432_v60 = vadd.f32 %v8132_v63, %v3910_v59  ;;  %v5148_v40 = vld [vmem:[#allocation2] sm:$0xff] }
 0x217   : > { %v4572_v61 = vld [vmem:[#allocation2 + $0x138] sm:$0xff]  ;;  %v4361_v3 = vpop.f32.mrf.mxu1  ;;  %v8182_v4 = vpop.f32.mrf.mxu0 }
 0x218   : > { %5087 = vst.msk [vmem:[#allocation2 + $0x120] sm:$0xff] %vm243_vm4, %v5039_v25  ;;  %v5042_v6 = vadd.f32 %v8178_v41, %v4572_v61  ;;  %4480 = vst.msk [vmem:[#allocation2 + $0x158] sm:$0xff] %vm243_vm4, %v4432_v60  ;;  %v4430_v7 = vadd.f32 %v4361_v3, %v3908_v62  ;;  %v5151_v41 = vld [vmem:[#allocation2 + $0x18] sm:$0xff] }
 0x219   : > { %v4570_v8 = vld [vmem:[#allocation2 + $0x128] sm:$0xff]  ;;  %v8135_v14 = vpop.f32.mrf.mxu1  ;;  %v4975_v10 = vpop.f32.mrf.mxu0 }
 0x21a   : > { %5090 = vst.msk [vmem:[#allocation2 + $0x138] sm:$0xff] %vm243_vm4, %v5042_v6  ;;  %v5040_v11 = vadd.f32 %v4959_v50, %v4570_v8  ;;  %4478 = vst.msk [vmem:[#allocation2 + $0x148] sm:$0xff] %vm243_vm4, %v4430_v7  ;;  %v4435_v12 = vadd.f32 %v8135_v14, %v3913_v5  ;;  %v5149_v50 = vld [vmem:[#allocation2 + $0x8] sm:$0xff] }
 0x21b   : > { %v4575_v13 = vld [vmem:[#allocation2 + $0x150] sm:$0xff]  ;;  %v4374_v16 = vpop.f32.mrf.mxu1  ;;  %v8185_v9 = vpop.f32.mrf.mxu0 }
 0x21c   : > { %5088 = vst.msk [vmem:[#allocation2 + $0x128] sm:$0xff] %vm243_vm4, %v5040_v11  ;;  %v5045_v24 = vadd.f32 %v8181_v54, %v4575_v13  ;;  %4483 = vst.msk [vmem:[#allocation2 + $0x170] sm:$0xff] %vm243_vm4, %v4435_v12  ;;  %v4433_v17 = vadd.f32 %v4374_v16, %v3911_v15  ;;  %v5154_v54 = vld [vmem:[#allocation2 + $0x30] sm:$0xff] }
 0x21d   : > { %v4573_v22 = vld [vmem:[#allocation2 + $0x140] sm:$0xff]  ;;  %v8136_v46 = vpop.f32.mrf.mxu1  ;;  %v4988_v18 = vpop.f32.mrf.mxu0 }
 0x21e   : > { %5093 = vst.msk [vmem:[#allocation2 + $0x150] sm:$0xff] %vm243_vm4, %v5045_v24  ;;  %v5043_v19 = vadd.f32 %v4972_v0, %v4573_v22  ;;  %4481 = vst.msk [vmem:[#allocation2 + $0x160] sm:$0xff] %vm243_vm4, %v4433_v17  ;;  %v4436_v21 = vadd.f32 %v8136_v46, %v3914_v23  ;;  %v5152_v0 = vld [vmem:[#allocation2 + $0x20] sm:$0xff] }
 0x21f   : > { %v4576_v26 = vld [vmem:[#allocation2 + $0x158] sm:$0xff]  ;;  %v4377_v28 = vpop.f32.mrf.mxu1  ;;  %v8186_v29 = vpop.f32.mrf.mxu0 }
 0x220   : > { %5091 = vst.msk [vmem:[#allocation2 + $0x140] sm:$0xff] %vm243_vm4, %v5043_v19  ;;  %v5046_v30 = vadd.f32 %v8182_v4, %v4576_v26  ;;  %4484 = vst.msk [vmem:[#allocation2 + $0x178] sm:$0xff] %vm243_vm4, %v4436_v21  ;;  %v4434_v31 = vadd.f32 %v4377_v28, %v3912_v27  ;;  %v5155_v4 = vld [vmem:[#allocation2 + $0x38] sm:$0xff]  ;;  %v9950_v28 = vld [vmem:[%s10313_s2] ss:$0 sm:$0xff] }
 0x221   : > { %v4574_v35 = vld [vmem:[#allocation2 + $0x148] sm:$0xff]  ;;  %v8191_v32 = vpop.f32.mrf.mxu1  ;;  %v4991_v33 = vpop.f32.mrf.mxu0 }
 0x222   : > { %5094 = vst.msk [vmem:[#allocation2 + $0x158] sm:$0xff] %vm243_vm4, %v5046_v30  ;;  %v5044_v34 = vadd.f32 %v4975_v10, %v4574_v35  ;;  %4482 = vst.msk [vmem:[#allocation2 + $0x168] sm:$0xff] %vm243_vm4, %v4434_v31  ;;  %v5819_v37 = vadd.f32 %v8191_v32, %v5150_v20  ;;  %v5153_v10 = vld [vmem:[#allocation2 + $0x28] sm:$0xff]  ;;  %v5159_v30 = vld [vmem:[#allocation2 + $0x58] sm:$0xff] }
 0x223   : > { %v4579_v38 = vld [vmem:[#allocation2 + $0x170] sm:$0xff]  ;;  %v5626_v44 = vpop.f32.mrf.mxu1  ;;  %v8241_v45 = vpop.f32.mrf.mxu0 }
 0x224   : > { %5092 = vst.msk [vmem:[#allocation2 + $0x148] sm:$0xff] %vm243_vm4, %v5044_v34  ;;  %v5049_v1 = vadd.f32 %v8185_v9, %v4579_v38  ;;  %5867 = vst.msk [vmem:[#allocation2 + $0x10] sm:$0xff] %vm243_vm4, %v5819_v37  ;;  %v5817_v2 = vadd.f32 %v5626_v44, %v5148_v40  ;;  %v5158_v9 = vld [vmem:[#allocation2 + $0x50] sm:$0xff]  ;;  %v5157_v37 = vld [vmem:[#allocation2 + $0x48] sm:$0xff] }
 0x225   : > { %v4577_v39 = vld [vmem:[#allocation2 + $0x160] sm:$0xff]  ;;  %v8192_v42 = vpop.f32.mrf.mxu1  ;;  %v6293_v43 = vpop.f32.mrf.mxu0 }
 0x226   : > { %5097 = vst.msk [vmem:[#allocation2 + $0x170] sm:$0xff] %vm243_vm4, %v5049_v1  ;;  %v5047_v47 = vadd.f32 %v4988_v18, %v4577_v39  ;;  %5865 = vst.msk [vmem:[#allocation2] sm:$0xff] %vm243_vm4, %v5817_v2  ;;  %v5820_v48 = vadd.f32 %v8192_v42, %v5151_v41  ;;  %v5156_v18 = vld [vmem:[#allocation2 + $0x40] sm:$0xff] }
 0x227   : > { %v4580_v49 = vld [vmem:[#allocation2 + $0x178] sm:$0xff]  ;;  %v5629_v51 = vpop.f32.mrf.mxu1  ;;  %v8242_v55 = vpop.f32.mrf.mxu0 }
 0x228   : > { %5095 = vst.msk [vmem:[#allocation2 + $0x160] sm:$0xff] %vm243_vm4, %v5047_v47  ;;  %v5050_v36 = vadd.f32 %v8186_v29, %v4580_v49  ;;  %5868 = vst.msk [vmem:[#allocation2 + $0x18] sm:$0xff] %vm243_vm4, %v5820_v48  ;;  %v5818_v52 = vadd.f32 %v5629_v51, %v5149_v50  ;;  %v5162_v48 = vld [vmem:[#allocation2 + $0x70] sm:$0xff] }
 0x229   : > { %v4578_v53 = vld [vmem:[#allocation2 + $0x168] sm:$0xff]  ;;  %v8195_v56 = vpop.f32.mrf.mxu1  ;;  %v6296_v58 = vpop.f32.mrf.mxu0 }
 0x22a   : > { %5098 = vst.msk [vmem:[#allocation2 + $0x178] sm:$0xff] %vm243_vm4, %v5050_v36  ;;  %v5048_v57 = vadd.f32 %v4991_v33, %v4578_v53  ;;  %5866 = vst.msk [vmem:[#allocation2 + $0x8] sm:$0xff] %vm243_vm4, %v5818_v52  ;;  %v5823_v59 = vadd.f32 %v8195_v56, %v5154_v54  ;;  %v5160_v56 = vld [vmem:[#allocation2 + $0x60] sm:$0xff] }
 0x22b   : > { %v5964_v63 = vld [vmem:[#allocation2 + $0x10] sm:$0xff]  ;;  %v5642_v25 = vpop.f32.mrf.mxu1  ;;  %v8245_v60 = vpop.f32.mrf.mxu0 }
 0x22c   : > { %5096 = vst.msk [vmem:[#allocation2 + $0x168] sm:$0xff] %vm243_vm4, %v5048_v57  ;;  %v6486_v61 = vadd.f32 %v8241_v45, %v5964_v63  ;;  %5871 = vst.msk [vmem:[#allocation2 + $0x30] sm:$0xff] %vm243_vm4, %v5823_v59  ;;  %v5821_v62 = vadd.f32 %v5642_v25, %v5152_v0  ;;  %v5163_v25 = vld [vmem:[#allocation2 + $0x78] sm:$0xff] }
 0x22d   : > { %v5962_v3 = vld [vmem:[#allocation2] sm:$0xff]  ;;  %v8196_v6 = vpop.f32.mrf.mxu1  ;;  %v6309_v7 = vpop.f32.mrf.mxu0 }
 0x22e   : > { %6534 = vst.msk [vmem:[#allocation2 + $0x10] sm:$0xff] %vm243_vm4, %v6486_v61  ;;  %v6484_v8 = vadd.f32 %v6293_v43, %v5962_v3  ;;  %5869 = vst.msk [vmem:[#allocation2 + $0x20] sm:$0xff] %vm243_vm4, %v5821_v62  ;;  %v5824_v5 = vadd.f32 %v8196_v6, %v5155_v4 }
 0x22f   : > { %v5965_v14 = vld [vmem:[#allocation2 + $0x18] sm:$0xff]  ;;  %v5645_v11 = vpop.f32.mrf.mxu1  ;;  %v8246_v12 = vpop.f32.mrf.mxu0 }
 0x230   : > { %6532 = vst.msk [vmem:[#allocation2] sm:$0xff] %vm243_vm4, %v6484_v8  ;;  %v6487_v13 = vadd.f32 %v8242_v55, %v5965_v14  ;;  %5872 = vst.msk [vmem:[#allocation2 + $0x38] sm:$0xff] %vm243_vm4, %v5824_v5  ;;  %v5822_v15 = vadd.f32 %v5645_v11, %v5153_v10 }
 0x231   : > { %v5963_v16 = vld [vmem:[#allocation2 + $0x8] sm:$0xff]  ;;  %v8199_v24 = vpop.f32.mrf.mxu1  ;;  %v6312_v17 = vpop.f32.mrf.mxu0 }
 0x232   : > { %6535 = vst.msk [vmem:[#allocation2 + $0x18] sm:$0xff] %vm243_vm4, %v6487_v13  ;;  %v6485_v22 = vadd.f32 %v6296_v58, %v5963_v16  ;;  %5870 = vst.msk [vmem:[#allocation2 + $0x28] sm:$0xff] %vm243_vm4, %v5822_v15  ;;  %v5827_v23 = vadd.f32 %v8199_v24, %v5158_v9 }
 0x233   : > { %v5968_v46 = vld [vmem:[#allocation2 + $0x30] sm:$0xff]  ;;  %v5658_v19 = vpop.f32.mrf.mxu1  ;;  %v8249_v21 = vpop.f32.mrf.mxu0 }
 0x234   : > { %6533 = vst.msk [vmem:[#allocation2 + $0x8] sm:$0xff] %vm243_vm4, %v6485_v22  ;;  %v6490_v26 = vadd.f32 %v8245_v60, %v5968_v46  ;;  %5875 = vst.msk [vmem:[#allocation2 + $0x50] sm:$0xff] %vm243_vm4, %v5827_v23  ;;  %v5825_v27 = vadd.f32 %v5658_v19, %v5156_v18 }
 0x235   : > { %v5966_v29 = vld [vmem:[#allocation2 + $0x20] sm:$0xff]  ;;  %v8200_v31 = vpop.f32.mrf.mxu1  ;;  %v6325_v35 = vpop.f32.mrf.mxu0 }
 0x236   : > { %6538 = vst.msk [vmem:[#allocation2 + $0x30] sm:$0xff] %vm243_vm4, %v6490_v26  ;;  %v6488_v20 = vadd.f32 %v6309_v7, %v5966_v29  ;;  %5873 = vst.msk [vmem:[#allocation2 + $0x40] sm:$0xff] %vm243_vm4, %v5825_v27  ;;  %v5828_v32 = vadd.f32 %v8200_v31, %v5159_v30 }
 0x237   : > { %v6580_v33 = vld [vmem:[#allocation2] sm:$0xff]  ;;  %v5969_v34 = vld [vmem:[#allocation2 + $0x38] sm:$0xff]  ;;  %v5661_v38 = vpop.f32.mrf.mxu1  ;;  %v9955_v40 = vpop.f32.mrf.mxu0 }
 0x238   : > { %v6619_v44 = vadd.f32 %v9950_v28, %v6580_v33  ;;  %6536 = vst.msk [vmem:[#allocation2 + $0x20] sm:$0xff] %vm243_vm4, %v6488_v20  ;;  %v6491_v45 = vadd.f32 %v8246_v12, %v5969_v34  ;;  %5876 = vst.msk [vmem:[#allocation2 + $0x58] sm:$0xff] %vm243_vm4, %v5828_v32  ;;  %v5826_v1 = vadd.f32 %v5661_v38, %v5157_v37 }
 0x239   : > { %v6582_v2 = vld [vmem:[#allocation2 + $0x18] sm:$0xff]  ;;  %v5967_v39 = vld [vmem:[#allocation2 + $0x28] sm:$0xff]  ;;  %v8203_v41 = vpop.f32.mrf.mxu1  ;;  %v9965_v42 = vpop.f32.mrf.mxu0 }
 0x23a   : > { %v7580_v43 = vpack.c.bf16 %v6619_v44, %v6619_v44  ;;  %v6621_v47 = vadd.f32 %v9950_v28, %v6582_v2  ;;  %6539 = vst.msk [vmem:[#allocation2 + $0x38] sm:$0xff] %vm243_vm4, %v6491_v45  ;;  %5874 = vst.msk [vmem:[#allocation2 + $0x48] sm:$0xff] %vm243_vm4, %v5826_v1  ;;  %v6489_v50 = vadd.f32 %v6312_v17, %v5967_v39  ;;  %v6812_v7 = vsel %vm243_vm4, %v6619_v44, 0.0  ;;  %v5161_v17 = vld [vmem:[#allocation2 + $0x68] sm:$0xff]  ;;  %v5166_v1 = vld [vmem:[#allocation2 + $0x90] sm:$0xff] }
 0x23b   : > { %v6581_v49 = vld [vmem:[#allocation2 + $0x8] sm:$0xff]  ;;  %v5972_v51 = vld [vmem:[#allocation2 + $0x50] sm:$0xff]  ;;  %v5831_v55 = vadd.f32 %v8203_v41, %v5162_v48  ;;  %v5674_v36 = vpop.f32.mrf.mxu1  ;;  %v9970_v52 = vpop.f32.mrf.mxu0  ;;  %v6883_v53 = vmul.f32 %v6619_v44, %v6619_v44 }
 0x23c   : > { %6780 = vst.msk [vmem:[%s9963_s28] sm:$0xf] %vm6779_vm5, %v7580_v43  ;;  %v7582_v54 = vpack.c.bf16 %v6621_v47, %v6621_v47  ;;  %v6620_v58 = vadd.f32 %v9950_v28, %v6581_v49  ;;  %v6494_v59 = vadd.f32 %v8249_v21, %v5972_v51  ;;  %v5829_v0 = vadd.f32 %v5674_v36, %v5160_v56  ;;  %v5164_v43 = vld [vmem:[#allocation2 + $0x80] sm:$0xff] }
 0x23d   : > { %v6584_v57 = vld [vmem:[#allocation2 + $0x30] sm:$0xff]  ;;  %6537 = vst.msk [vmem:[#allocation2 + $0x28] sm:$0xff] %vm243_vm4, %v6489_v50  ;;  %v5970_v63 = vld [vmem:[#allocation2 + $0x40] sm:$0xff]  ;;  %5879 = vst.msk [vmem:[#allocation2 + $0x70] sm:$0xff] %vm243_vm4, %v5831_v55  ;;  %v8204_v60 = vpop.f32.mrf.mxu1  ;;  %v9977_v61 = vpop.f32.mrf.mxu0  ;;  %v6885_v62 = vmul.f32 %v6621_v47, %v6621_v47  ;;  %v6915_v15 = vsel %vm243_vm4, %v6883_v53, 0.0  ;;  %v6815_v16 = vsel %vm243_vm4, %v6621_v47, 0.0 }
 0x23e   : > { %6782 = vst.msk [vmem:[%s9963_s28 + $0x8] sm:$0xf] %vm6779_vm5, %v7582_v54  ;;  %v9982_v3 = vadd.f32 %v9950_v28, %v6584_v57  ;;  %v6492_v4 = vadd.f32 %v6325_v35, %v5970_v63  ;;  %v5832_v6 = vadd.f32 %v8204_v60, %v5163_v25  ;;  %v7581_v8 = vpack.c.bf16 %v6620_v58, %v6620_v58  ;;  %v5167_v47 = vld [vmem:[#allocation2 + $0x98] sm:$0xff]  ;;  %v5165_v57 = vld [vmem:[#allocation2 + $0x88] sm:$0xff] }
 0x23f   : > { %v6813_v5 = vsel %vm243_vm4, %v6620_v58, 0.0  ;;  %v6884_v14 = vmul.f32 %v6620_v58, %v6620_v58  ;;  %v6583_v10 = vld [vmem:[#allocation2 + $0x20] sm:$0xff]  ;;  %6542 = vst.msk [vmem:[#allocation2 + $0x50] sm:$0xff] %vm243_vm4, %v6494_v59  ;;  %v5973_v11 = vld [vmem:[#allocation2 + $0x58] sm:$0xff]  ;;  %5877 = vst.msk [vmem:[#allocation2 + $0x60] sm:$0xff] %vm243_vm4, %v5829_v0  ;;  %v5677_v12 = vpop.f32.mrf.mxu1  ;;  %v8254_v13 = vpop.f32.mrf.mxu0  ;;  %v6918_v29 = vsel %vm243_vm4, %v6885_v62, 0.0 }
 0x240   : > { %v6814_v9 = vadd.f32 %v6813_v5, %v6812_v7  ;;  %v7584_v24 = vpack.c.bf16 %v9982_v3, %v9982_v3  ;;  %6540 = vst.msk [vmem:[#allocation2 + $0x40] sm:$0xff] %vm243_vm4, %v6492_v4  ;;  %5880 = vst.msk [vmem:[#allocation2 + $0x78] sm:$0xff] %vm243_vm4, %v5832_v6  ;;  %v6622_v23 = vadd.f32 %v9950_v28, %v6583_v10  ;;  %v6819_v60 = vsel %vm243_vm4, %v9982_v3, 0.0  ;;  %v5170_v6 = vld [vmem:[#allocation2 + $0xb0] sm:$0xff] }
 0x241   : > { %6781 = vst.msk [vmem:[%s9963_s28 + $0x4] sm:$0xf] %vm6779_vm5, %v7581_v8  ;;  %v6916_v22 = vsel %vm243_vm4, %v6884_v14, 0.0  ;;  %v6585_v46 = vld [vmem:[#allocation2 + $0x38] sm:$0xff]  ;;  %v6495_v18 = vadd.f32 %v9955_v40, %v5973_v11  ;;  %v5971_v19 = vld [vmem:[#allocation2 + $0x48] sm:$0xff]  ;;  %v5830_v21 = vadd.f32 %v5677_v12, %v5161_v17  ;;  %v8207_v26 = vpop.f32.mrf.mxu1  ;;  %v6344_v27 = vpop.f32.mrf.mxu0  ;;  %v6887_v2 = vmul.f32 %v9982_v3, %v9982_v3  ;;  %v5168_v12 = vld [vmem:[#allocation2 + $0xa0] sm:$0xff] }
 0x242   : > { %v6917_v30 = vadd.f32 %v6916_v22, %v6915_v15  ;;  %6784 = vst.msk [vmem:[%s9963_s28 + $0x10] sm:$0xf] %vm6779_vm5, %v7584_v24  ;;  %v6816_v31 = vadd.f32 %v6815_v16, %v6814_v9  ;;  %v10003_v35 = vadd.f32 %v9950_v28, %v6585_v46  ;;  %v7583_v20 = vpack.c.bf16 %v6622_v23, %v6622_v23  ;;  %v5171_v46 = vld [vmem:[#allocation2 + $0xb8] sm:$0xff] }
 0x243   : > { %v6817_v32 = vsel %vm243_vm4, %v6622_v23, 0.0  ;;  %v6886_v33 = vmul.f32 %v6622_v23, %v6622_v23  ;;  %6543 = vst.msk [vmem:[#allocation2 + $0x58] sm:$0xff] %vm243_vm4, %v6495_v18  ;;  %v6493_v34 = vadd.f32 %v9965_v42, %v5971_v19  ;;  %5878 = vst.msk [vmem:[#allocation2 + $0x68] sm:$0xff] %vm243_vm4, %v5830_v21  ;;  %v5690_v37 = vpop.f32.mrf.mxu1  ;;  %v10009_v38 = vpop.f32.mrf.mxu0  ;;  %v5835_v42 = vadd.f32 %v8207_v26, %v5166_v1 }
 0x244   : > { %v6919_v40 = vadd.f32 %v6918_v29, %v6917_v30  ;;  %v7585_v44 = vpack.c.bf16 %v10003_v35, %v10003_v35  ;;  %v5976_v45 = vld [vmem:[#allocation2 + $0x70] sm:$0xff]  ;;  %6783 = vst.msk [vmem:[%s9963_s28 + $0xc] sm:$0xf] %vm6779_vm5, %v7583_v20  ;;  %v6818_v50 = vadd.f32 %v6817_v32, %v6816_v31  ;;  %v5833_v53 = vadd.f32 %v5690_v37, %v5164_v43 }
 0x245   : > { %v6920_v39 = vsel %vm243_vm4, %v6886_v33, 0.0  ;;  %6541 = vst.msk [vmem:[#allocation2 + $0x48] sm:$0xff] %vm243_vm4, %v6493_v34  ;;  %v6498_v41 = vadd.f32 %v9970_v52, %v5976_v45  ;;  %v8208_v48 = vpop.f32.mrf.mxu1  ;;  %v10020_v49 = vpop.f32.mrf.mxu0  ;;  %5883 = vst.msk [vmem:[#allocation2 + $0x90] sm:$0xff] %vm243_vm4, %v5835_v42  ;;  %v6922_v62 = vsel %vm243_vm4, %v6887_v2, 0.0  ;;  %v6821_v24 = vsel %vm243_vm4, %v10003_v35, 0.0  ;;  %v5169_v34 = vld [vmem:[#allocation2 + $0xa8] sm:$0xff] }
 0x246   : > { %v6921_v51 = vadd.f32 %v6920_v39, %v6919_v40  ;;  %6785 = vst.msk [vmem:[%s9963_s28 + $0x14] sm:$0xf] %vm6779_vm5, %v7585_v44  ;;  %v6587_v55 = vld [vmem:[#allocation2 + $0x50] sm:$0xff]  ;;  %v5974_v36 = vld [vmem:[#allocation2 + $0x60] sm:$0xff]  ;;  %v5836_v54 = vadd.f32 %v8208_v48, %v5167_v47  ;;  %v6820_v5 = vadd.f32 %v6819_v60, %v6818_v50 }
 0x247   : > { %v6626_v56 = vadd.f32 %v9950_v28, %v6587_v55  ;;  %6546 = vst.msk [vmem:[#allocation2 + $0x70] sm:$0xff] %vm243_vm4, %v6498_v41  ;;  %v6496_v52 = vadd.f32 %v9977_v61, %v5974_v36  ;;  %v5977_v58 = vld [vmem:[#allocation2 + $0x78] sm:$0xff]  ;;  %v5693_v59 = vpop.f32.mrf.mxu1  ;;  %v8258_v63 = vpop.f32.mrf.mxu0  ;;  %5881 = vst.msk [vmem:[#allocation2 + $0x80] sm:$0xff] %vm243_vm4, %v5833_v53  ;;  %v6888_v61 = vmul.f32 %v10003_v35, %v10003_v35 }
 0x248   : > { %v6499_v0 = vadd.f32 %v8254_v13, %v5977_v58  ;;  %5884 = vst.msk [vmem:[#allocation2 + $0x98] sm:$0xff] %vm243_vm4, %v5836_v54  ;;  %v5834_v25 = vadd.f32 %v5693_v59, %v5165_v57  ;;  %v6923_v14 = vadd.f32 %v6922_v62, %v6921_v51  ;;  %v6822_v21 = vadd.f32 %v6821_v24, %v6820_v5  ;;  %v5174_v54 = vld [vmem:[#allocation2 + $0xd0] sm:$0xff]  ;;  %v5175_v5 = vld [vmem:[#allocation2 + $0xd8] sm:$0xff] }
 0x249   : > { %v7587_v4 = vpack.c.bf16 %v6626_v56, %v6626_v56  ;;  %6544 = vst.msk [vmem:[#allocation2 + $0x60] sm:$0xff] %vm243_vm4, %v6496_v52  ;;  %v8211_v7 = vpop.f32.mrf.mxu1  ;;  %v6360_v8 = vpop.f32.mrf.mxu0  ;;  %v6924_v17 = vsel %vm243_vm4, %v6888_v61, 0.0  ;;  %v6890_v22 = vmul.f32 %v6626_v56, %v6626_v56  ;;  %v6825_v41 = vsel %vm243_vm4, %v6626_v56, 0.0 }
 0x24a   : > { %6547 = vst.msk [vmem:[#allocation2 + $0x78] sm:$0xff] %vm243_vm4, %v6499_v0  ;;  %v5975_v10 = vld [vmem:[#allocation2 + $0x68] sm:$0xff]  ;;  %5882 = vst.msk [vmem:[#allocation2 + $0x88] sm:$0xff] %vm243_vm4, %v5834_v25  ;;  %v5839_v11 = vadd.f32 %v8211_v7, %v5170_v6  ;;  %v6925_v26 = vadd.f32 %v6924_v17, %v6923_v14 }
 0x24b   : > { %6787 = vst.msk [vmem:[%s9963_s28 + $0x1c] sm:$0xf] %vm6779_vm5, %v7587_v4  ;;  %v6497_v3 = vadd.f32 %v6344_v27, %v5975_v10  ;;  %v5706_v13 = vpop.f32.mrf.mxu1  ;;  %v10040_v15 = vpop.f32.mrf.mxu0  ;;  %v6928_v42 = vsel %vm243_vm4, %v6890_v22, 0.0  ;;  %v5173_v22 = vld [vmem:[#allocation2 + $0xc8] sm:$0xff] }
 0x24c   : > { %v6586_v16 = vld [vmem:[#allocation2 + $0x48] sm:$0xff]  ;;  %5887 = vst.msk [vmem:[#allocation2 + $0xb0] sm:$0xff] %vm243_vm4, %v5839_v11  ;;  %v5837_v9 = vadd.f32 %v5706_v13, %v5168_v12  ;;  %v5980_v27 = vld [vmem:[#allocation2 + $0x90] sm:$0xff] }
 0x24d   : > { %v6625_v23 = vadd.f32 %v9950_v28, %v6586_v16  ;;  %6545 = vst.msk [vmem:[#allocation2 + $0x68] sm:$0xff] %vm243_vm4, %v6497_v3  ;;  %v8212_v18 = vpop.f32.mrf.mxu1  ;;  %v6373_v19 = vpop.f32.mrf.mxu0  ;;  %v6502_v20 = vadd.f32 %v10009_v38, %v5980_v27 }
 0x24e   : > { %5885 = vst.msk [vmem:[#allocation2 + $0xa0] sm:$0xff] %vm243_vm4, %v5837_v9  ;;  %v5840_v29 = vadd.f32 %v8212_v18, %v5171_v46  ;;  %v5978_v32 = vld [vmem:[#allocation2 + $0x80] sm:$0xff] }
 0x24f   : > { %v7586_v30 = vpack.c.bf16 %v6625_v23, %v6625_v23  ;;  %v6823_v31 = vsel %vm243_vm4, %v6625_v23, 0.0  ;;  %v6889_v35 = vmul.f32 %v6625_v23, %v6625_v23  ;;  %v5981_v33 = vld [vmem:[#allocation2 + $0x98] sm:$0xff]  ;;  %v5709_v37 = vpop.f32.mrf.mxu1  ;;  %v10051_v40 = vpop.f32.mrf.mxu0  ;;  %v6500_v1 = vadd.f32 %v10020_v49, %v5978_v32  ;;  %6550 = vst.msk [vmem:[#allocation2 + $0x90] sm:$0xff] %vm243_vm4, %v6502_v20 }
 0x250   : > { %v6824_v44 = vadd.f32 %v6823_v31, %v6822_v21  ;;  %v6588_v45 = vld [vmem:[#allocation2 + $0x60] sm:$0xff]  ;;  %v6503_v2 = vadd.f32 %v8258_v63, %v5981_v33  ;;  %5888 = vst.msk [vmem:[#allocation2 + $0xb8] sm:$0xff] %vm243_vm4, %v5840_v29  ;;  %v5838_v39 = vadd.f32 %v5709_v37, %v5169_v34 }
 0x251   : > { %6786 = vst.msk [vmem:[%s9963_s28 + $0x18] sm:$0xf] %vm6779_vm5, %v7586_v30  ;;  %v6926_v38 = vsel %vm243_vm4, %v6889_v35, 0.0  ;;  %v6627_v43 = vadd.f32 %v9950_v28, %v6588_v45  ;;  %v6590_v47 = vld [vmem:[#allocation2 + $0x78] sm:$0xff]  ;;  %v5979_v48 = vld [vmem:[#allocation2 + $0x88] sm:$0xff]  ;;  %v8215_v50 = vpop.f32.mrf.mxu1  ;;  %v10062_v49 = vpop.f32.mrf.mxu0 }
 0x252   : > { %v6927_v51 = vadd.f32 %v6926_v38, %v6925_v26  ;;  %v6826_v55 = vadd.f32 %v6825_v41, %v6824_v44  ;;  %v6629_v36 = vadd.f32 %v9950_v28, %v6590_v47  ;;  %6548 = vst.msk [vmem:[#allocation2 + $0x80] sm:$0xff] %vm243_vm4, %v6500_v1  ;;  %6551 = vst.msk [vmem:[#allocation2 + $0x98] sm:$0xff] %vm243_vm4, %v6503_v2 }
 0x253   : > { %v6501_v53 = vadd.f32 %v6360_v8, %v5979_v48  ;;  %5886 = vst.msk [vmem:[#allocation2 + $0xa8] sm:$0xff] %vm243_vm4, %v5838_v39  ;;  %v7588_v56 = vpack.c.bf16 %v6627_v43, %v6627_v43  ;;  %v6827_v52 = vsel %vm243_vm4, %v6627_v43, 0.0  ;;  %v6891_v58 = vmul.f32 %v6627_v43, %v6627_v43  ;;  %v5984_v57 = vld [vmem:[#allocation2 + $0xb0] sm:$0xff]  ;;  %v5722_v63 = vpop.f32.mrf.mxu1  ;;  %v10069_v0 = vpop.f32.mrf.mxu0  ;;  %v5172_v8 = vld [vmem:[#allocation2 + $0xc0] sm:$0xff] }
 0x254   : > { %v5843_v59 = vadd.f32 %v8215_v50, %v5174_v54  ;;  %v6929_v25 = vadd.f32 %v6928_v42, %v6927_v51  ;;  %v7590_v60 = vpack.c.bf16 %v6629_v36, %v6629_v36  ;;  %v6589_v62 = vld [vmem:[#allocation2 + $0x68] sm:$0xff]  ;;  %v6506_v6 = vadd.f32 %v10040_v15, %v5984_v57  ;;  %v5176_v57 = vld [vmem:[#allocation2 + $0xe0] sm:$0xff] }
 0x255   : > { %6549 = vst.msk [vmem:[#allocation2 + $0x88] sm:$0xff] %vm243_vm4, %v6501_v53  ;;  %v6930_v61 = vsel %vm243_vm4, %v6891_v58, 0.0  ;;  %v6628_v4 = vadd.f32 %v9950_v28, %v6589_v62  ;;  %v5982_v7 = vld [vmem:[#allocation2 + $0xa0] sm:$0xff]  ;;  %v8216_v14 = vpop.f32.mrf.mxu1  ;;  %v10078_v10 = vpop.f32.mrf.mxu0  ;;  %v6828_v11 = vadd.f32 %v6827_v52, %v6826_v55  ;;  %v5841_v12 = vadd.f32 %v5722_v63, %v5172_v8  ;;  %v5178_v55 = vld [vmem:[#allocation2 + $0xf0] sm:$0xff] }
 0x256   : > { %6788 = vst.msk [vmem:[%s9963_s28 + $0x20] sm:$0xf] %vm6779_vm5, %v7588_v56  ;;  %6790 = vst.msk [vmem:[%s9963_s28 + $0x28] sm:$0xf] %vm6779_vm5, %v7590_v60  ;;  %v6504_v3 = vadd.f32 %v6373_v19, %v5982_v7  ;;  %v5844_v13 = vadd.f32 %v8216_v14, %v5175_v5  ;;  %v6893_v16 = vmul.f32 %v6629_v36, %v6629_v36  ;;  %v6592_v26 = vld [vmem:[#allocation2 + $0x90] sm:$0xff]  ;;  %v6831_v29 = vsel %vm243_vm4, %v6629_v36, 0.0 }
 0x257   : > { %5891 = vst.msk [vmem:[#allocation2 + $0xd0] sm:$0xff] %vm243_vm4, %v5843_v59  ;;  %v7589_v9 = vpack.c.bf16 %v6628_v4, %v6628_v4  ;;  %v6829_v24 = vsel %vm243_vm4, %v6628_v4, 0.0  ;;  %v6892_v15 = vmul.f32 %v6628_v4, %v6628_v4  ;;  %6554 = vst.msk [vmem:[#allocation2 + $0xb0] sm:$0xff] %vm243_vm4, %v6506_v6  ;;  %v5985_v17 = vld [vmem:[#allocation2 + $0xb8] sm:$0xff]  ;;  %v5725_v23 = vpop.f32.mrf.mxu1  ;;  %v8266_v46 = vpop.f32.mrf.mxu0  ;;  %v6931_v18 = vadd.f32 %v6930_v61, %v6929_v25 }
 0x258   : > { %v6830_v21 = vadd.f32 %v6829_v24, %v6828_v11  ;;  %6552 = vst.msk [vmem:[#allocation2 + $0xa0] sm:$0xff] %vm243_vm4, %v6504_v3  ;;  %v6507_v19 = vadd.f32 %v10051_v40, %v5985_v17  ;;  %5889 = vst.msk [vmem:[#allocation2 + $0xc0] sm:$0xff] %vm243_vm4, %v5841_v12  ;;  %v5842_v27 = vadd.f32 %v5725_v23, %v5173_v22  ;;  %v6934_v1 = vsel %vm243_vm4, %v6893_v16, 0.0  ;;  %v5179_v61 = vld [vmem:[#allocation2 + $0xf8] sm:$0xff]  ;;  %v5182_v16 = vld [vmem:[#allocation2 + $0x110] sm:$0xff] }
 0x259   : > { %5892 = vst.msk [vmem:[#allocation2 + $0xd8] sm:$0xff] %vm243_vm4, %v5844_v13  ;;  %v6932_v30 = vsel %vm243_vm4, %v6892_v15, 0.0  ;;  %v6631_v31 = vadd.f32 %v9950_v28, %v6592_v26  ;;  %v6591_v35 = vld [vmem:[#allocation2 + $0x80] sm:$0xff]  ;;  %v6593_v20 = vld [vmem:[#allocation2 + $0x98] sm:$0xff]  ;;  %v8219_v33 = vpop.f32.mrf.mxu1  ;;  %v6392_v34 = vpop.f32.mrf.mxu0  ;;  %v5177_v13 = vld [vmem:[#allocation2 + $0xe8] sm:$0xff] }
 0x25a   : > { %6789 = vst.msk [vmem:[%s9963_s28 + $0x24] sm:$0xf] %vm6779_vm5, %v7589_v9  ;;  %v5983_v32 = vld [vmem:[#allocation2 + $0xa8] sm:$0xff]  ;;  %v6933_v37 = vadd.f32 %v6932_v30, %v6931_v18  ;;  %v6630_v40 = vadd.f32 %v9950_v28, %v6591_v35  ;;  %v6832_v44 = vadd.f32 %v6831_v29, %v6830_v21  ;;  %v10095_v45 = vadd.f32 %v9950_v28, %v6593_v20 }
 0x25b   : > { %6555 = vst.msk [vmem:[#allocation2 + $0xb8] sm:$0xff] %vm243_vm4, %v6507_v19  ;;  %5890 = vst.msk [vmem:[#allocation2 + $0xc8] sm:$0xff] %vm243_vm4, %v5842_v27  ;;  %v7592_v2 = vpack.c.bf16 %v6631_v31, %v6631_v31  ;;  %v6505_v39 = vadd.f32 %v10062_v49, %v5983_v32  ;;  %v5738_v41 = vpop.f32.mrf.mxu1  ;;  %v10101_v42 = vpop.f32.mrf.mxu0  ;;  %v5847_v58 = vadd.f32 %v8219_v33, %v5178_v55  ;;  %v6835_v14 = vsel %vm243_vm4, %v6631_v31, 0.0 }
 0x25c   : > { %v7591_v38 = vpack.c.bf16 %v6630_v40, %v6630_v40  ;;  %v6833_v43 = vsel %vm243_vm4, %v6630_v40, 0.0  ;;  %v6894_v47 = vmul.f32 %v6630_v40, %v6630_v40  ;;  %v6935_v48 = vadd.f32 %v6934_v1, %v6933_v37 }
 0x25d   : > { %6792 = vst.msk [vmem:[%s9963_s28 + $0x30] sm:$0xf] %vm6779_vm5, %v7592_v2  ;;  %v7593_v51 = vpack.c.bf16 %v10095_v45, %v10095_v45  ;;  %v8220_v36 = vpop.f32.mrf.mxu1  ;;  %v10109_v49 = vpop.f32.mrf.mxu0  ;;  %v6834_v53 = vadd.f32 %v6833_v43, %v6832_v44  ;;  %v6895_v59 = vmul.f32 %v6631_v31, %v6631_v31  ;;  %v5845_v62 = vadd.f32 %v5738_v41, %v5176_v57  ;;  %v5183_v31 = vld [vmem:[#allocation2 + $0x118] sm:$0xff]  ;;  %v5181_v2 = vld [vmem:[#allocation2 + $0x108] sm:$0xff] }
 0x25e   : > { %v5988_v50 = vld [vmem:[#allocation2 + $0xd0] sm:$0xff]  ;;  %6553 = vst.msk [vmem:[#allocation2 + $0xa8] sm:$0xff] %vm243_vm4, %v6505_v39  ;;  %v6936_v54 = vsel %vm243_vm4, %v6894_v47, 0.0  ;;  %5895 = vst.msk [vmem:[#allocation2 + $0xf0] sm:$0xff] %vm243_vm4, %v5847_v58  ;;  %v5848_v5 = vadd.f32 %v8220_v36, %v5179_v61  ;;  %v6896_v11 = vmul.f32 %v10095_v45, %v10095_v45  ;;  %v6837_v29 = vsel %vm243_vm4, %v10095_v45, 0.0 }
 0x25f   : > { %6791 = vst.msk [vmem:[%s9963_s28 + $0x2c] sm:$0xf] %vm6779_vm5, %v7591_v38  ;;  %v6595_v56 = vld [vmem:[#allocation2 + $0xb0] sm:$0xff]  ;;  %v6510_v52 = vadd.f32 %v10069_v0, %v5988_v50  ;;  %6793 = vst.msk [vmem:[%s9963_s28 + $0x34] sm:$0xf] %vm6779_vm5, %v7593_v51  ;;  %v5986_v25 = vld [vmem:[#allocation2 + $0xc0] sm:$0xff]  ;;  %v5741_v4 = vpop.f32.mrf.mxu1  ;;  %v10120_v6 = vpop.f32.mrf.mxu0  ;;  %v6937_v7 = vadd.f32 %v6936_v54, %v6935_v48  ;;  %v6836_v24 = vadd.f32 %v6835_v14, %v6834_v53 }
 0x260   : > { %v10118_v63 = vadd.f32 %v9950_v28, %v6595_v56  ;;  %v5989_v60 = vld [vmem:[#allocation2 + $0xd8] sm:$0xff]  ;;  %v6508_v0 = vadd.f32 %v10078_v10, %v5986_v25  ;;  %5893 = vst.msk [vmem:[#allocation2 + $0xe0] sm:$0xff] %vm243_vm4, %v5845_v62  ;;  %5896 = vst.msk [vmem:[#allocation2 + $0xf8] sm:$0xff] %vm243_vm4, %v5848_v5  ;;  %v5846_v17 = vadd.f32 %v5741_v4, %v5177_v13  ;;  %v6938_v23 = vsel %vm243_vm4, %v6895_v59, 0.0 }
 0x261   : > { %6558 = vst.msk [vmem:[#allocation2 + $0xd0] sm:$0xff] %vm243_vm4, %v6510_v52  ;;  %v6511_v8 = vadd.f32 %v8266_v46, %v5989_v60  ;;  %v8223_v9 = vpop.f32.mrf.mxu1  ;;  %v10131_v10 = vpop.f32.mrf.mxu0  ;;  %v5180_v46 = vld [vmem:[#allocation2 + $0x100] sm:$0xff]  ;;  %v6939_v26 = vadd.f32 %v6938_v23, %v6937_v7  ;;  %v6838_v32 = vadd.f32 %v6837_v29, %v6836_v24  ;;  %v6940_v33 = vsel %vm243_vm4, %v6896_v11, 0.0 }
 0x262   : > { %v7595_v3 = vpack.c.bf16 %v10118_v63, %v10118_v63  ;;  %v5987_v12 = vld [vmem:[#allocation2 + $0xc8] sm:$0xff]  ;;  %6556 = vst.msk [vmem:[#allocation2 + $0xc0] sm:$0xff] %vm243_vm4, %v6508_v0  ;;  %v5851_v22 = vadd.f32 %v8223_v9, %v5182_v16  ;;  %5894 = vst.msk [vmem:[#allocation2 + $0xe8] sm:$0xff] %vm243_vm4, %v5846_v17  ;;  %v6898_v37 = vmul.f32 %v10118_v63, %v10118_v63  ;;  %v6841_v51 = vsel %vm243_vm4, %v10118_v63, 0.0  ;;  %v5186_v63 = vld [vmem:[#allocation2 + $0x130] sm:$0xff] }
 0x263   : > { %6559 = vst.msk [vmem:[#allocation2 + $0xd8] sm:$0xff] %vm243_vm4, %v6511_v8  ;;  %v6509_v15 = vadd.f32 %v6392_v34, %v5987_v12  ;;  %v5754_v18 = vpop.f32.mrf.mxu1  ;;  %v10139_v21 = vpop.f32.mrf.mxu0  ;;  %v6941_v38 = vadd.f32 %v6940_v33, %v6939_v26  ;;  %v5184_v23 = vld [vmem:[#allocation2 + $0x120] sm:$0xff]  ;;  %v5185_v33 = vld [vmem:[#allocation2 + $0x128] sm:$0xff] }
 0x264   : > { %6795 = vst.msk [vmem:[%s9963_s28 + $0x3c] sm:$0xf] %vm6779_vm5, %v7595_v3  ;;  %v5849_v27 = vadd.f32 %v5754_v18, %v5180_v46  ;;  %v6944_v8 = vsel %vm243_vm4, %v6898_v37, 0.0 }
 0x265   : > { %v6594_v19 = vld [vmem:[#allocation2 + $0xa8] sm:$0xff]  ;;  %6557 = vst.msk [vmem:[#allocation2 + $0xc8] sm:$0xff] %vm243_vm4, %v6509_v15  ;;  %5899 = vst.msk [vmem:[#allocation2 + $0x110] sm:$0xff] %vm243_vm4, %v5851_v22  ;;  %v8224_v35 = vpop.f32.mrf.mxu1  ;;  %v10147_v20 = vpop.f32.mrf.mxu0  ;;  %v5992_v1 = vld [vmem:[#allocation2 + $0xf0] sm:$0xff] }
 0x266   : > { %v6633_v30 = vadd.f32 %v9950_v28, %v6594_v19  ;;  %5897 = vst.msk [vmem:[#allocation2 + $0x100] sm:$0xff] %vm243_vm4, %v5849_v27  ;;  %v5852_v34 = vadd.f32 %v8224_v35, %v5183_v31  ;;  %v6514_v47 = vadd.f32 %v10101_v42, %v5992_v1  ;;  %v5190_v1 = vld [vmem:[#allocation2 + $0x150] sm:$0xff] }
 0x267   : > { %v5757_v39 = vpop.f32.mrf.mxu1  ;;  %v8274_v41 = vpop.f32.mrf.mxu0  ;;  %v5990_v48 = vld [vmem:[#allocation2 + $0xe0] sm:$0xff]  ;;  %v5993_v56 = vld [vmem:[#allocation2 + $0xf8] sm:$0xff] }
 0x268   : > { %v7594_v40 = vpack.c.bf16 %v6633_v30, %v6633_v30  ;;  %v6839_v44 = vsel %vm243_vm4, %v6633_v30, 0.0  ;;  %v6897_v45 = vmul.f32 %v6633_v30, %v6633_v30  ;;  %5900 = vst.msk [vmem:[#allocation2 + $0x118] sm:$0xff] %vm243_vm4, %v5852_v34  ;;  %v5850_v50 = vadd.f32 %v5757_v39, %v5181_v2  ;;  %6562 = vst.msk [vmem:[#allocation2 + $0xf0] sm:$0xff] %vm243_vm4, %v6514_v47 }
 0x269   : > { %v6840_v43 = vadd.f32 %v6839_v44, %v6838_v32  ;;  %v6596_v36 = vld [vmem:[#allocation2 + $0xc0] sm:$0xff]  ;;  %v6512_v54 = vadd.f32 %v10109_v49, %v5990_v48  ;;  %v8227_v52 = vpop.f32.mrf.mxu1  ;;  %v10162_v58 = vpop.f32.mrf.mxu0  ;;  %v6515_v49 = vadd.f32 %v10120_v6, %v5993_v56  ;;  %v5991_v62 = vld [vmem:[#allocation2 + $0xe8] sm:$0xff] }
 0x26a   : > { %6794 = vst.msk [vmem:[%s9963_s28 + $0x38] sm:$0xf] %vm6779_vm5, %v7594_v40  ;;  %v6942_v55 = vsel %vm243_vm4, %v6897_v45, 0.0  ;;  %v6598_v53 = vld [vmem:[#allocation2 + $0xd8] sm:$0xff]  ;;  %v6635_v57 = vadd.f32 %v9950_v28, %v6596_v36  ;;  %v5855_v4 = vadd.f32 %v8227_v52, %v5186_v63  ;;  %v6513_v17 = vadd.f32 %v10131_v10, %v5991_v62  ;;  %v5188_v36 = vld [vmem:[#allocation2 + $0x140] sm:$0xff] }
 0x26b   : > { %v6943_v42 = vadd.f32 %v6942_v55, %v6941_v38  ;;  %v6842_v59 = vadd.f32 %v6841_v51, %v6840_v43  ;;  %v6637_v25 = vadd.f32 %v9950_v28, %v6598_v53  ;;  %5898 = vst.msk [vmem:[#allocation2 + $0x108] sm:$0xff] %vm243_vm4, %v5850_v50  ;;  %6560 = vst.msk [vmem:[#allocation2 + $0xe0] sm:$0xff] %vm243_vm4, %v6512_v54  ;;  %v5770_v7 = vpop.f32.mrf.mxu1  ;;  %v10170_v0 = vpop.f32.mrf.mxu0 }
 0x26c   : > { %v6597_v60 = vld [vmem:[#allocation2 + $0xc8] sm:$0xff]  ;;  %v5996_v61 = vld [vmem:[#allocation2 + $0x110] sm:$0xff]  ;;  %v7596_v5 = vpack.c.bf16 %v6635_v57, %v6635_v57  ;;  %v6843_v14 = vsel %vm243_vm4, %v6635_v57, 0.0  ;;  %v6899_v11 = vmul.f32 %v6635_v57, %v6635_v57  ;;  %6563 = vst.msk [vmem:[#allocation2 + $0xf8] sm:$0xff] %vm243_vm4, %v6515_v49  ;;  %5903 = vst.msk [vmem:[#allocation2 + $0x130] sm:$0xff] %vm243_vm4, %v5855_v4  ;;  %v5853_v27 = vadd.f32 %v5770_v7, %v5184_v23 }
 0x26d   : > { %v6844_v3 = vadd.f32 %v6843_v14, %v6842_v59  ;;  %v6945_v12 = vadd.f32 %v6944_v8, %v6943_v42  ;;  %v7598_v13 = vpack.c.bf16 %v6637_v25, %v6637_v25  ;;  %v5994_v6 = vld [vmem:[#allocation2 + $0x100] sm:$0xff]  ;;  %v8228_v16 = vpop.f32.mrf.mxu1  ;;  %v10176_v9 = vpop.f32.mrf.mxu0  ;;  %v6636_v15 = vadd.f32 %v9950_v28, %v6597_v60  ;;  %6561 = vst.msk [vmem:[#allocation2 + $0xe8] sm:$0xff] %vm243_vm4, %v6513_v17  ;;  %v5191_v8 = vld [vmem:[#allocation2 + $0x158] sm:$0xff] }
 0x26e   : > { %6796 = vst.msk [vmem:[%s9963_s28 + $0x40] sm:$0xf] %vm6779_vm5, %v7596_v5  ;;  %v6946_v24 = vsel %vm243_vm4, %v6899_v11, 0.0  ;;  %v6518_v22 = vadd.f32 %v10139_v21, %v5996_v61  ;;  %v6847_v46 = vsel %vm243_vm4, %v6637_v25, 0.0  ;;  %v6901_v18 = vmul.f32 %v6637_v25, %v6637_v25  ;;  %v5187_v21 = vld [vmem:[#allocation2 + $0x138] sm:$0xff] }
 0x26f   : > { %6798 = vst.msk [vmem:[%s9963_s28 + $0x48] sm:$0xf] %vm6779_vm5, %v7598_v13  ;;  %v6516_v26 = vadd.f32 %v10147_v20, %v5994_v6  ;;  %v5997_v19 = vld [vmem:[#allocation2 + $0x118] sm:$0xff]  ;;  %v5773_v29 = vpop.f32.mrf.mxu1  ;;  %v10188_v30 = vpop.f32.mrf.mxu0  ;;  %v7597_v31 = vpack.c.bf16 %v6636_v15, %v6636_v15  ;;  %v6845_v35 = vsel %vm243_vm4, %v6636_v15, 0.0  ;;  %v6900_v32 = vmul.f32 %v6636_v15, %v6636_v15  ;;  %v6600_v20 = vld [vmem:[#allocation2 + $0xf0] sm:$0xff]  ;;  %v5189_v15 = vld [vmem:[#allocation2 + $0x148] sm:$0xff] }
 0x270   : > { %6566 = vst.msk [vmem:[#allocation2 + $0x110] sm:$0xff] %vm243_vm4, %v6518_v22  ;;  %v6519_v10 = vadd.f32 %v8274_v41, %v5997_v19  ;;  %v6947_v34 = vadd.f32 %v6946_v24, %v6945_v12  ;;  %v6846_v37 = vadd.f32 %v6845_v35, %v6844_v3  ;;  %5901 = vst.msk [vmem:[#allocation2 + $0x120] sm:$0xff] %vm243_vm4, %v5853_v27  ;;  %v6950_v56 = vsel %vm243_vm4, %v6901_v18, 0.0  ;;  %v5194_v18 = vld [vmem:[#allocation2 + $0x170] sm:$0xff] }
 0x271   : > { %6564 = vst.msk [vmem:[#allocation2 + $0x100] sm:$0xff] %vm243_vm4, %v6516_v26  ;;  %v5856_v44 = vadd.f32 %v8228_v16, %v5187_v21  ;;  %v5854_v45 = vadd.f32 %v5773_v29, %v5185_v33  ;;  %v8231_v2 = vpop.f32.mrf.mxu1  ;;  %v10195_v39 = vpop.f32.mrf.mxu0  ;;  %v6948_v41 = vsel %vm243_vm4, %v6900_v32, 0.0  ;;  %v6639_v38 = vadd.f32 %v9950_v28, %v6600_v20 }
 0x272   : > { %v5995_v40 = vld [vmem:[#allocation2 + $0x108] sm:$0xff]  ;;  %6797 = vst.msk [vmem:[%s9963_s28 + $0x44] sm:$0xf] %vm6779_vm5, %v7597_v31  ;;  %v6599_v43 = vld [vmem:[#allocation2 + $0xe0] sm:$0xff]  ;;  %v5859_v48 = vadd.f32 %v8231_v2, %v5190_v1  ;;  %v6949_v50 = vadd.f32 %v6948_v41, %v6947_v34  ;;  %v6848_v55 = vadd.f32 %v6847_v46, %v6846_v37 }
 0x273   : > { %6567 = vst.msk [vmem:[#allocation2 + $0x118] sm:$0xff] %vm243_vm4, %v6519_v10  ;;  %v6517_v47 = vadd.f32 %v10162_v58, %v5995_v40  ;;  %v6638_v51 = vadd.f32 %v9950_v28, %v6599_v43  ;;  %5904 = vst.msk [vmem:[#allocation2 + $0x138] sm:$0xff] %vm243_vm4, %v5856_v44  ;;  %v5786_v53 = vpop.f32.mrf.mxu1  ;;  %v8281_v54 = vpop.f32.mrf.mxu0  ;;  %v7600_v52 = vpack.c.bf16 %v6639_v38, %v6639_v38  ;;  %v6601_v42 = vld [vmem:[#allocation2 + $0xf8] sm:$0xff]  ;;  %v6000_v58 = vld [vmem:[#allocation2 + $0x130] sm:$0xff]  ;;  %v6851_v6 = vsel %vm243_vm4, %v6639_v38, 0.0 }
 0x274   : > { %5902 = vst.msk [vmem:[#allocation2 + $0x128] sm:$0xff] %vm243_vm4, %v5854_v45  ;;  %5907 = vst.msk [vmem:[#allocation2 + $0x150] sm:$0xff] %vm243_vm4, %v5859_v48  ;;  %v5857_v57 = vadd.f32 %v5786_v53, %v5188_v36  ;;  %v6951_v60 = vadd.f32 %v6950_v56, %v6949_v50  ;;  %v6640_v4 = vadd.f32 %v9950_v28, %v6601_v42  ;;  %v5192_v45 = vld [vmem:[#allocation2 + $0x160] sm:$0xff]  ;;  %v5193_v36 = vld [vmem:[#allocation2 + $0x168] sm:$0xff] }
 0x275   : > { %6565 = vst.msk [vmem:[#allocation2 + $0x108] sm:$0xff] %vm243_vm4, %v6517_v47  ;;  %v7599_v59 = vpack.c.bf16 %v6638_v51, %v6638_v51  ;;  %v6849_v25 = vsel %vm243_vm4, %v6638_v51, 0.0  ;;  %v6902_v63 = vmul.f32 %v6638_v51, %v6638_v51  ;;  %v8232_v49 = vpop.f32.mrf.mxu1  ;;  %v6453_v62 = vpop.f32.mrf.mxu0  ;;  %v6522_v7 = vadd.f32 %v10170_v0, %v6000_v58 }
 0x276   : > { %6800 = vst.msk [vmem:[%s9963_s28 + $0x50] sm:$0xf] %vm6779_vm5, %v7600_v52  ;;  %v6850_v61 = vadd.f32 %v6849_v25, %v6848_v55  ;;  %v6903_v5 = vmul.f32 %v6639_v38, %v6639_v38  ;;  %v5860_v3 = vadd.f32 %v8232_v49, %v5191_v8  ;;  %v7601_v24 = vpack.c.bf16 %v6640_v4, %v6640_v4 }
 0x277   : > { %5905 = vst.msk [vmem:[#allocation2 + $0x140] sm:$0xff] %vm243_vm4, %v5857_v57  ;;  %v6952_v14 = vsel %vm243_vm4, %v6902_v63, 0.0  ;;  %v6603_v11 = vld [vmem:[#allocation2 + $0x110] sm:$0xff]  ;;  %v5789_v12 = vpop.f32.mrf.mxu1  ;;  %v8282_v13 = vpop.f32.mrf.mxu0  ;;  %6570 = vst.msk [vmem:[#allocation2 + $0x130] sm:$0xff] %vm243_vm4, %v6522_v7  ;;  %v5998_v0 = vld [vmem:[#allocation2 + $0x120] sm:$0xff]  ;;  %v6853_v35 = vsel %vm243_vm4, %v6640_v4, 0.0  ;;  %v6904_v32 = vmul.f32 %v6640_v4, %v6640_v4 }
 0x278   : > { %6799 = vst.msk [vmem:[%s9963_s28 + $0x4c] sm:$0xf] %vm6779_vm5, %v7599_v59  ;;  %v6953_v16 = vadd.f32 %v6952_v14, %v6951_v60  ;;  %v6852_v17 = vadd.f32 %v6851_v6, %v6850_v61  ;;  %v6642_v22 = vadd.f32 %v9950_v28, %v6603_v11  ;;  %v6520_v23 = vadd.f32 %v10176_v9, %v5998_v0 }
 0x279   : > { %5908 = vst.msk [vmem:[#allocation2 + $0x158] sm:$0xff] %vm243_vm4, %v5860_v3  ;;  %v5858_v46 = vadd.f32 %v5789_v12, %v5189_v15  ;;  %v8235_v26 = vpop.f32.mrf.mxu1  ;;  %v6954_v31 = vsel %vm243_vm4, %v6903_v5, 0.0  ;;  %v6456_v34 = vpop.f32.mrf.mxu0 }
 0x27a   : > { %6801 = vst.msk [vmem:[%s9963_s28 + $0x54] sm:$0xf] %vm6779_vm5, %v7601_v24  ;;  %v6001_v19 = vld [vmem:[#allocation2 + $0x138] sm:$0xff]  ;;  %v5863_v29 = vadd.f32 %v8235_v26, %v5194_v18  ;;  %v7603_v10 = vpack.c.bf16 %v6642_v22, %v6642_v22  ;;  %v6955_v37 = vadd.f32 %v6954_v31, %v6953_v16  ;;  %v6854_v1 = vadd.f32 %v6853_v35, %v6852_v17 }
 0x27b   : > { %v5999_v27 = vld [vmem:[#allocation2 + $0x128] sm:$0xff]  ;;  %6568 = vst.msk [vmem:[#allocation2 + $0x120] sm:$0xff] %vm243_vm4, %v6520_v23  ;;  %v6004_v9 = vld [vmem:[#allocation2 + $0x150] sm:$0xff]  ;;  %5906 = vst.msk [vmem:[#allocation2 + $0x148] sm:$0xff] %vm243_vm4, %v5858_v46  ;;  %v5802_v33 = vpop.f32.mrf.mxu1  ;;  %v6523_v40 = vadd.f32 %v10188_v30, %v6001_v19  ;;  %v8285_v55 = vpop.f32.mrf.mxu0  ;;  %v6906_v57 = vmul.f32 %v6642_v22, %v6642_v22  ;;  %v6857_v49 = vsel %vm243_vm4, %v6642_v22, 0.0 }
 0x27c   : > { %v6602_v21 = vld [vmem:[#allocation2 + $0x108] sm:$0xff]  ;;  %v6521_v44 = vadd.f32 %v10195_v39, %v5999_v27  ;;  %5911 = vst.msk [vmem:[#allocation2 + $0x170] sm:$0xff] %vm243_vm4, %v5863_v29  ;;  %v6526_v2 = vadd.f32 %v8281_v54, %v6004_v9  ;;  %v5861_v38 = vadd.f32 %v5802_v33, %v5192_v45  ;;  %v5195_v30 = vld [vmem:[#allocation2 + $0x178] sm:$0xff]  ;;  %v6956_v39 = vsel %vm243_vm4, %v6904_v32, 0.0 }
 0x27d   : > { %v6641_v20 = vadd.f32 %v9950_v28, %v6602_v21  ;;  %6803 = vst.msk [vmem:[%s9963_s28 + $0x5c] sm:$0xf] %vm6779_vm5, %v7603_v10  ;;  %v8236_v43 = vpop.f32.mrf.mxu1  ;;  %v6957_v54 = vadd.f32 %v6956_v39, %v6955_v37  ;;  %v6469_v8 = vpop.f32.mrf.mxu0  ;;  %v6960_v11 = vsel %vm243_vm4, %v6906_v57, 0.0 }
 0x27e   : > { %v6002_v41 = vld [vmem:[#allocation2 + $0x140] sm:$0xff]  ;;  %6571 = vst.msk [vmem:[#allocation2 + $0x138] sm:$0xff] %vm243_vm4, %v6523_v40  ;;  %6569 = vst.msk [vmem:[#allocation2 + $0x128] sm:$0xff] %vm243_vm4, %v6521_v44  ;;  %v5864_v51 = vadd.f32 %v8236_v43, %v5195_v30 }
 0x27f   : > { %v7602_v47 = vpack.c.bf16 %v6641_v20, %v6641_v20  ;;  %v6855_v48 = vsel %vm243_vm4, %v6641_v20, 0.0  ;;  %v6905_v50 = vmul.f32 %v6641_v20, %v6641_v20  ;;  %v6524_v28 = vadd.f32 %v6453_v62, %v6002_v41  ;;  %6574 = vst.msk [vmem:[#allocation2 + $0x150] sm:$0xff] %vm243_vm4, %v6526_v2  ;;  %5909 = vst.msk [vmem:[#allocation2 + $0x160] sm:$0xff] %vm243_vm4, %v5861_v38  ;;  %v5805_v53 = vpop.f32.mrf.mxu1  ;;  %v10251_v62 = vld [vmem:[%s10313_s2] ss:$0 sm:$0xff]  ;;  %v8286_v26 = vpop.f32.mrf.mxu0 }
 0x280   : > { %v6856_v56 = vadd.f32 %v6855_v48, %v6854_v1  ;;  %v6005_v42 = vld [vmem:[#allocation2 + $0x158] sm:$0xff]  ;;  %v5862_v58 = vadd.f32 %v5805_v53, %v5193_v36  ;;  %5912 = vst.msk [vmem:[#allocation2 + $0x178] sm:$0xff] %vm243_vm4, %v5864_v51 }
 0x281   : > { %6802 = vst.msk [vmem:[%s9963_s28 + $0x58] sm:$0xf] %vm6779_vm5, %v7602_v47  ;;  %v6958_v52 = vsel %vm243_vm4, %v6905_v50, 0.0  ;;  %v6527_v59 = vadd.f32 %v8282_v13, %v6005_v42  ;;  %v6472_v41 = vpop.f32.mrf.mxu0 }
 0x282   : > { %6572 = vst.msk [vmem:[#allocation2 + $0x140] sm:$0xff] %vm243_vm4, %v6524_v28  ;;  %v6959_v25 = vadd.f32 %v6958_v52, %v6957_v54  ;;  %v6604_v63 = vld [vmem:[#allocation2 + $0x120] sm:$0xff]  ;;  %v6003_v60 = vld [vmem:[#allocation2 + $0x148] sm:$0xff]  ;;  %5910 = vst.msk [vmem:[#allocation2 + $0x168] sm:$0xff] %vm243_vm4, %v5862_v58  ;;  %v6858_v5 = vadd.f32 %v6857_v49, %v6856_v56 }
 0x283   : > { %v6643_v61 = vadd.f32 %v10251_v62, %v6604_v63  ;;  %6575 = vst.msk [vmem:[#allocation2 + $0x158] sm:$0xff] %vm243_vm4, %v6527_v59  ;;  %v6525_v4 = vadd.f32 %v6456_v34, %v6003_v60  ;;  %v6008_v7 = vld [vmem:[#allocation2 + $0x170] sm:$0xff] }
 0x284   : > { %v6530_v14 = vadd.f32 %v8285_v55, %v6008_v7  ;;  %v6961_v24 = vadd.f32 %v6960_v11, %v6959_v25 }
 0x285   : > { %v7604_v3 = vpack.c.bf16 %v6643_v61, %v6643_v61  ;;  %v6859_v12 = vsel %vm243_vm4, %v6643_v61, 0.0  ;;  %v6907_v13 = vmul.f32 %v6643_v61, %v6643_v61  ;;  %v6606_v6 = vld [vmem:[#allocation2 + $0x138] sm:$0xff]  ;;  %v6605_v16 = vld [vmem:[#allocation2 + $0x128] sm:$0xff]  ;;  %6573 = vst.msk [vmem:[#allocation2 + $0x148] sm:$0xff] %vm243_vm4, %v6525_v4 }
 0x286   : > { %v6645_v0 = vadd.f32 %v10251_v62, %v6606_v6  ;;  %v6644_v15 = vadd.f32 %v10251_v62, %v6605_v16  ;;  %v6608_v17 = vld [vmem:[#allocation2 + $0x150] sm:$0xff]  ;;  %6578 = vst.msk [vmem:[#allocation2 + $0x170] sm:$0xff] %vm243_vm4, %v6530_v14  ;;  %v6006_v22 = vld [vmem:[#allocation2 + $0x160] sm:$0xff]  ;;  %v6860_v19 = vadd.f32 %v6859_v12, %v6858_v5 }
 0x287   : > { %6804 = vst.msk [vmem:[%s9963_s28 + $0x60] sm:$0xf] %vm6779_vm5, %v7604_v3  ;;  %v6962_v23 = vsel %vm243_vm4, %v6907_v13, 0.0  ;;  %v6647_v46 = vadd.f32 %v10251_v62, %v6608_v17  ;;  %v6528_v18 = vadd.f32 %v6469_v8, %v6006_v22  ;;  %v6009_v35 = vld [vmem:[#allocation2 + $0x178] sm:$0xff] }
 0x288   : > { %v7606_v27 = vpack.c.bf16 %v6645_v0, %v6645_v0  ;;  %v6909_v29 = vmul.f32 %v6645_v0, %v6645_v0  ;;  %v7605_v32 = vpack.c.bf16 %v6644_v15, %v6644_v15  ;;  %v6861_v10 = vsel %vm243_vm4, %v6644_v15, 0.0 }
 0x289   : > { %v6607_v31 = vld [vmem:[#allocation2 + $0x140] sm:$0xff]  ;;  %v6908_v21 = vmul.f32 %v6644_v15, %v6644_v15  ;;  %v7608_v9 = vpack.c.bf16 %v6647_v46, %v6647_v46  ;;  %6576 = vst.msk [vmem:[#allocation2 + $0x160] sm:$0xff] %vm243_vm4, %v6528_v18  ;;  %v6007_v33 = vld [vmem:[#allocation2 + $0x168] sm:$0xff]  ;;  %v6963_v34 = vadd.f32 %v6962_v23, %v6961_v24  ;;  %v6863_v37 = vsel %vm243_vm4, %v6645_v0, 0.0 }
 0x28a   : > { %6806 = vst.msk [vmem:[%s9963_s28 + $0x68] sm:$0xf] %vm6779_vm5, %v7606_v27  ;;  %v6862_v20 = vadd.f32 %v6861_v10, %v6860_v19  ;;  %v6609_v40 = vld [vmem:[#allocation2 + $0x158] sm:$0xff]  ;;  %6805 = vst.msk [vmem:[%s9963_s28 + $0x64] sm:$0xf] %vm6779_vm5, %v7605_v32  ;;  %v6646_v45 = vadd.f32 %v10251_v62, %v6607_v31  ;;  %v6531_v2 = vadd.f32 %v8286_v26, %v6009_v35  ;;  %v6966_v38 = vsel %vm243_vm4, %v6909_v29, 0.0 }
 0x28b   : > { %v6964_v44 = vsel %vm243_vm4, %v6908_v21, 0.0  ;;  %6808 = vst.msk [vmem:[%s9963_s28 + $0x70] sm:$0xf] %vm6779_vm5, %v7608_v9  ;;  %v6648_v1 = vadd.f32 %v10251_v62, %v6609_v40  ;;  %v6529_v48 = vadd.f32 %v6472_v41, %v6007_v33  ;;  %v6911_v56 = vmul.f32 %v6647_v46, %v6647_v46 }
 0x28c   : > { %v6965_v43 = vadd.f32 %v6964_v44, %v6963_v34  ;;  %v6864_v47 = vadd.f32 %v6863_v37, %v6862_v20  ;;  %v7607_v50 = vpack.c.bf16 %v6646_v45, %v6646_v45  ;;  %v6865_v28 = vsel %vm243_vm4, %v6646_v45, 0.0  ;;  %6579 = vst.msk [vmem:[#allocation2 + $0x178] sm:$0xff] %vm243_vm4, %v6531_v2 }
 0x28d   : > { %v6910_v30 = vmul.f32 %v6646_v45, %v6646_v45  ;;  %v7609_v39 = vpack.c.bf16 %v6648_v1, %v6648_v1  ;;  %v6611_v51 = vld [vmem:[#allocation2 + $0x170] sm:$0xff]  ;;  %6577 = vst.msk [vmem:[#allocation2 + $0x168] sm:$0xff] %vm243_vm4, %v6529_v48  ;;  %v6867_v58 = vsel %vm243_vm4, %v6647_v46, 0.0  ;;  %v6912_v59 = vmul.f32 %v6648_v1, %v6648_v1 }
 0x28e   : > { %v6967_v55 = vadd.f32 %v6966_v38, %v6965_v43  ;;  %6807 = vst.msk [vmem:[%s9963_s28 + $0x6c] sm:$0xf] %vm6779_vm5, %v7607_v50  ;;  %v6866_v36 = vadd.f32 %v6865_v28, %v6864_v47  ;;  %v6650_v54 = vadd.f32 %v10251_v62, %v6611_v51  ;;  %v6970_v25 = vsel %vm243_vm4, %v6911_v56, 0.0 }
 0x28f   : > { %v6968_v53 = vsel %vm243_vm4, %v6910_v30, 0.0  ;;  %6809 = vst.msk [vmem:[%s9963_s28 + $0x74] sm:$0xf] %vm6779_vm5, %v7609_v39  ;;  %v6869_v49 = vsel %vm243_vm4, %v6648_v1, 0.0  ;;  %v6972_v7 = vsel %vm243_vm4, %v6912_v59, 0.0 }
 0x290   : > { %v6969_v52 = vadd.f32 %v6968_v53, %v6967_v55  ;;  %v7611_v42 = vpack.c.bf16 %v6650_v54, %v6650_v54  ;;  %v6868_v57 = vadd.f32 %v6867_v58, %v6866_v36  ;;  %v6914_v8 = vmul.f32 %v6650_v54, %v6650_v54 }
 0x291   : > { %v6873_v13 = vsel %vm243_vm4, %v6650_v54, 0.0 }
 0x292   : > { %6811 = vst.msk [vmem:[%s9963_s28 + $0x7c] sm:$0xf] %vm6779_vm5, %v7611_v42  ;;  %v6971_v63 = vadd.f32 %v6970_v25, %v6969_v52  ;;  %v6870_v4 = vadd.f32 %v6869_v49, %v6868_v57 }
 0x294   : > { %v6610_v60 = vld [vmem:[#allocation2 + $0x168] sm:$0xff]  ;;  %v6973_v3 = vadd.f32 %v6972_v7, %v6971_v63 }
 0x295   : > { %v6649_v61 = vadd.f32 %v10251_v62, %v6610_v60  ;;  %v6976_v62 = vsel %vm243_vm4, %v6914_v8, 0.0 }
 0x297   : > { %v7610_v5 = vpack.c.bf16 %v6649_v61, %v6649_v61  ;;  %v6871_v14 = vsel %vm243_vm4, %v6649_v61, 0.0  ;;  %v6913_v11 = vmul.f32 %v6649_v61, %v6649_v61 }
 0x298   : > { %v6872_v12 = vadd.f32 %v6871_v14, %v6870_v4 }
 0x299   : > { %6810 = vst.msk [vmem:[%s9963_s28 + $0x78] sm:$0xf] %vm6779_vm5, %v7610_v5  ;;  %v6974_v6 = vsel %vm243_vm4, %v6913_v11, 0.0 }
 0x29a   : > { %v6874_v16 = vadd.f32 %v6873_v13, %v6872_v12  ;;  %v6975_v24 = vadd.f32 %v6974_v6, %v6973_v3 }
 0x29c   : > { %v6875_v0 = vrot.slane %v6874_v16, 4  ;;  %v6977_v15 = vadd.f32 %v6976_v62, %v6975_v24 }
 0x29e   : > { %v6876_v17 = vadd.f32 %v6875_v0, %v6874_v16  ;;  %v6978_v22 = vrot.slane %v6977_v15, 4 }
 0x2a0   : > { %v6877_v23 = vrot.slane %v6876_v17, 2  ;;  %v6979_v46 = vadd.f32 %v6978_v22, %v6977_v15 }
 0x2a2   : > { %v6878_v18 = vadd.f32 %v6877_v23, %v6876_v17  ;;  %v6980_v26 = vrot.slane %v6979_v46, 2 }
 0x2a4   : > { %v6879_v19 = vrot.slane %v6878_v18, 1  ;;  %v6981_v27 = vadd.f32 %v6980_v26, %v6979_v46 }
 0x2a6   : > { %v6880_v29 = vadd.f32 %v6879_v19, %v6878_v18  ;;  %v6982_v31 = vrot.slane %v6981_v27, 1 }
 0x2a8   : > { %6882 = vst.msk [vmem:[%s238_s8] sm:$0x1] %vm6881_vm6, %v6880_v29  ;;  %v6983_v35 = vadd.f32 %v6982_v31, %v6981_v27 }
 0x2aa   : > { %6984 = vst.msk [vmem:[%s241_s11] sm:$0x1] %vm6881_vm6, %v6983_v35 }
 0x2ab PF: > { %s16_s18 = sadd.s32 1, %s8540_s18  }
 0x2ac   : > { %p13_p4 = scmp.ge.s32.totalorder %s16_s18, 4  }
 0x2ae   :  { %15 = sbr.rel (!%p13_p4) target bundleno = 1 (0x1), region = 94 }

</bundles_post_ra>
